<compile_context>
chip_gen: v5e
topology: v5e:2x2
jax: 0.10.0
libtpu: 0.0.40
codegen_flags: <defaults>
</compile_context>

<pallas_src>
import functools

import jax
import jax.numpy as jnp
from jax.experimental import pallas as pl
from jax.experimental.pallas import tpu as pltpu

EPS = 1e-5                      # nn.BatchNorm2d default eps
_VMEM_LIMIT = 32 * 1024 * 1024  # explicit scoped-VMEM budget (fits all gens)


def _cparams():
    return pltpu.CompilerParams(dimension_semantics=("parallel",),
                                vmem_limit_bytes=_VMEM_LIMIT)


def _pick_tile(m):
    for t in (256, 128, 64, 32, 16, 8):
        if m % t == 0:
            return t
    return m


# ----------------------------- Pallas kernels -----------------------------

def _conv1x1_stats_kernel(x_ref, w_ref, y_ref, st_ref):
    """y = x @ w (bf16 on MXU, f32 accumulate); emit per-tile sum / sum-sq."""
    x = x_ref[...].astype(jnp.bfloat16)
    y = jnp.dot(x, w_ref[...], preferred_element_type=jnp.float32)
    y_ref[...] = y
    s = jnp.sum(y, axis=0, keepdims=True)
    ss = jnp.sum(y * y, axis=0, keepdims=True)
    st_ref[...] = jnp.concatenate([s, ss], axis=0).reshape(1, 2, y.shape[1])


def _bn_relu_conv1x1_stats_kernel(y_ref, w_ref, sc_ref, sh_ref, o_ref, st_ref):
    """a = relu(y*scale + shift); o = a @ w; emit per-tile stats of o."""
    a = jnp.maximum(y_ref[...] * sc_ref[...] + sh_ref[...], 0.0)
    o = jnp.dot(a.astype(jnp.bfloat16), w_ref[...],
                preferred_element_type=jnp.float32)
    o_ref[...] = o
    s = jnp.sum(o, axis=0, keepdims=True)
    ss = jnp.sum(o * o, axis=0, keepdims=True)
    st_ref[...] = jnp.concatenate([s, ss], axis=0).reshape(1, 2, o.shape[1])


def _bn_relu_conv3x3_stats_kernel(y_ref, w_ref, sc_ref, sh_ref,
                                  o_ref, st_ref, pad_ref):
    """Per image: a = relu(y*scale+shift); o = conv3x3(a) via 9 shifted matmuls."""
    _, H, W, C1 = y_ref.shape
    C2 = w_ref.shape[2]

    a = jnp.maximum(y_ref[0] * sc_ref[...] + sh_ref[...], 0.0)   # (H, W, C1) f32

    # Zero-padded plane kept in VMEM scratch (re-zeroed every grid step: the
    # grid is "parallel" and scratch is per-core, so no cross-step init).
    pad_ref[...] = jnp.zeros(pad_ref.shape, pad_ref.dtype)
    pad_ref[1:H + 1, 1:W + 1, :] = a

    acc = jnp.zeros((H * W, C2), jnp.float32)
    for kh in range(3):
        for kw in range(3):
            patch = pad_ref[kh:kh + H, kw:kw + W, :].reshape(H * W, C1)
            acc = acc + jnp.dot(patch.astype(jnp.bfloat16),
                                w_ref[kh * 3 + kw],
                                preferred_element_type=jnp.float32)

    o_ref[...] = acc.reshape(1, H, W, C2)
    s = jnp.sum(acc, axis=0, keepdims=True)
    ss = jnp.sum(acc * acc, axis=0, keepdims=True)
    st_ref[...] = jnp.concatenate([s, ss], axis=0).reshape(1, 2, C2)


def _bn_add_relu_kernel(y_ref, r_ref, sc_ref, sh_ref, o_ref):
    o_ref[...] = jnp.maximum(
        y_ref[...] * sc_ref[...] + sh_ref[...] + r_ref[...], 0.0)


# ------------------------------ stage wrappers ------------------------------

def _conv1x1_stats(x_flat, w_bf16, tm):
    M, Cin = x_flat.shape
    Cout = w_bf16.shape[1]
    nt = M // tm
    return pl.pallas_call(
        _conv1x1_stats_kernel,
        out_shape=(jax.ShapeDtypeStruct((M, Cout), jnp.float32),
                   jax.ShapeDtypeStruct((nt, 2, Cout), jnp.float32)),
        grid=(nt,),
        in_specs=[pl.BlockSpec((tm, Cin), lambda i: (i, 0)),
                  pl.BlockSpec((Cin, Cout), lambda i: (0, 0))],
        out_specs=(pl.BlockSpec((tm, Cout), lambda i: (i, 0)),
                   pl.BlockSpec((1, 2, Cout), lambda i: (i, 0, 0))),
        compiler_params=_cparams(),
    )(x_flat, w_bf16)


def _bn_relu_conv1x1_stats(y_flat, w_bf16, scale, shift, tm):
    M, Cin = y_flat.shape
    Cout = w_bf16.shape[1]
    nt = M // tm
    return pl.pallas_call(
        _bn_relu_conv1x1_stats_kernel,
        out_shape=(jax.ShapeDtypeStruct((M, Cout), jnp.float32),
                   jax.ShapeDtypeStruct((nt, 2, Cout), jnp.float32)),
        grid=(nt,),
        in_specs=[pl.BlockSpec((tm, Cin), lambda i: (i, 0)),
                  pl.BlockSpec((Cin, Cout), lambda i: (0, 0)),
                  pl.BlockSpec((1, Cin), lambda i: (0, 0)),
                  pl.BlockSpec((1, Cin), lambda i: (0, 0))],
        out_specs=(pl.BlockSpec((tm, Cout), lambda i: (i, 0)),
                   pl.BlockSpec((1, 2, Cout), lambda i: (i, 0, 0))),
        compiler_params=_cparams(),
    )(y_flat, w_bf16, scale.reshape(1, Cin), shift.reshape(1, Cin))


def _bn_relu_conv3x3_stats(y1_4d, w_taps, scale, shift):
    N, H, W, C1 = y1_4d.shape
    C2 = w_taps.shape[2]
    return pl.pallas_call(
        _bn_relu_conv3x3_stats_kernel,
        out_shape=(jax.ShapeDtypeStruct((N, H, W, C2), jnp.float32),
                   jax.ShapeDtypeStruct((N, 2, C2), jnp.float32)),
        grid=(N,),
        in_specs=[pl.BlockSpec((1, H, W, C1), lambda n: (n, 0, 0, 0)),
                  pl.BlockSpec((9, C1, C2), lambda n: (0, 0, 0)),
                  pl.BlockSpec((1, 1, C1), lambda n: (0, 0, 0)),
                  pl.BlockSpec((1, 1, C1), lambda n: (0, 0, 0))],
        out_specs=(pl.BlockSpec((1, H, W, C2), lambda n: (n, 0, 0, 0)),
                   pl.BlockSpec((1, 2, C2), lambda n: (n, 0, 0))),
        scratch_shapes=[pltpu.VMEM((H + 2, W + 2, C1), jnp.float32)],
        compiler_params=_cparams(),
    )(y1_4d, w_taps, scale.reshape(1, 1, C1), shift.reshape(1, 1, C1))


def _bn_add_relu(y, res, scale, shift, tm):
    M, C = y.shape
    nt = M // tm
    return pl.pallas_call(
        _bn_add_relu_kernel,
        out_shape=jax.ShapeDtypeStruct((M, C), jnp.float32),
        grid=(nt,),
        in_specs=[pl.BlockSpec((tm, C), lambda i: (i, 0)),
                  pl.BlockSpec((tm, C), lambda i: (i, 0)),
                  pl.BlockSpec((1, C), lambda i: (0, 0)),
                  pl.BlockSpec((1, C), lambda i: (0, 0))],
        out_specs=pl.BlockSpec((tm, C), lambda i: (i, 0)),
        input_output_aliases={0: 0},      # write result in place of y3
        compiler_params=_cparams(),
    )(y, res, scale.reshape(1, C), shift.reshape(1, C))


def _finalize_bn(partial_stats, count, gamma, beta):
    """(T, 2, C) per-tile [sum, sum_sq] -> per-channel (scale, shift) in f32."""
    tot = jnp.sum(partial_stats, axis=0)                 # (2, C)
    mu = tot[0] / count
    var = jnp.maximum(tot[1] / count - mu * mu, 0.0)     # biased batch variance
    scale = gamma * jax.lax.rsqrt(var + EPS)
    shift = beta - mu * scale
    return scale.astype(jnp.float32), shift.astype(jnp.float32)


# ------------------------------- glue (JAX) --------------------------------

def init_bottleneck_params(key, inplanes, planes):
    """Deterministic synthetic parameters matching Bottleneck.__init__ shapes."""
    ks = jax.random.split(key, 9)
    expansion = 4
    return {
        # PyTorch conv weight layout: (Cout, Cin, kH, kW)
        "conv1_w": 0.1 * jax.random.normal(ks[0], (planes, inplanes, 1, 1), jnp.float32),
        "conv2_w": 0.1 * jax.random.normal(ks[1], (planes, planes, 3, 3), jnp.float32),
        "conv3_w": 0.1 * jax.random.normal(ks[2], (planes * expansion, planes, 1, 1), jnp.float32),
        "bn1_g": 1.0 + 0.1 * jax.random.normal(ks[3], (planes,), jnp.float32),
        "bn1_b": 0.1 * jax.random.normal(ks[4], (planes,), jnp.float32),
        "bn2_g": 1.0 + 0.1 * jax.random.normal(ks[5], (planes,), jnp.float32),
        "bn2_b": 0.1 * jax.random.normal(ks[6], (planes,), jnp.float32),
        "bn3_g": 1.0 + 0.1 * jax.random.normal(ks[7], (planes * expansion,), jnp.float32),
        "bn3_b": 0.1 * jax.random.normal(ks[8], (planes * expansion,), jnp.float32),
    }


@functools.partial(jax.jit, static_argnames=("planes",))
def bottleneck_forward(x_nchw, params, *, planes):
    """Bottleneck forward (stride=1, downsample=None). Input/output NCHW."""
    expansion = 4
    N, Cin, H, W = x_nchw.shape
    C1, C2, C3 = planes, planes, planes * expansion
    assert Cin == C3, "downsample=None requires inplanes == planes*4"

    # Module interface is NCHW; kernels run channels-last.
    x = jnp.transpose(x_nchw, (0, 2, 3, 1)).astype(jnp.float32)
    M = N * H * W
    x_flat = x.reshape(M, Cin)
    tm = _pick_tile(M)

    # weights in matmul layout, bf16 for the MXU
    w1 = params["conv1_w"][:, :, 0, 0].T.astype(jnp.bfloat16)              # (Cin, C1)
    w2 = jnp.transpose(params["conv2_w"], (2, 3, 1, 0)).reshape(9, C1, C2).astype(jnp.bfloat16)
    w3 = params["conv3_w"][:, :, 0, 0].T.astype(jnp.bfloat16)              # (C2, C3)

    # stage 1: conv1 (1x1) + partial batch stats
    y1, st1 = _conv1x1_stats(x_flat, w1, tm)
    sc1, sh1 = _finalize_bn(st1, M, params["bn1_g"], params["bn1_b"])

    # stage 2: bn1+relu fused into 3x3 conv2 (9 shifted in-kernel matmuls) + stats
    y2, st2 = _bn_relu_conv3x3_stats(y1.reshape(N, H, W, C1), w2, sc1, sh1)
    sc2, sh2 = _finalize_bn(st2, M, params["bn2_g"], params["bn2_b"])

    # stage 3: bn2+relu fused into 1x1 conv3 + stats
    y3, st3 = _bn_relu_conv1x1_stats(y2.reshape(M, C2), w3, sc2, sh2, tm)
    sc3, sh3 = _finalize_bn(st3, M, params["bn3_g"], params["bn3_b"])

    # stage 4: bn3 + residual + relu (output aliases y3's buffer)
    out = _bn_add_relu(y3, x_flat, sc3, sh3, tm)

    return jnp.transpose(out.reshape(N, H, W, C3), (0, 3, 1, 2))


# ----------------------------- pure-JAX reference ---------------------------

def _reference(x_nchw, params, planes):
    x = jnp.transpose(x_nchw, (0, 2, 3, 1)).astype(jnp.float32)

    def conv(x, w_pt, pad):
        w = jnp.transpose(w_pt, (2, 3, 1, 0))  # HWIO
        return jax.lax.conv_general_dilated(
            x, w, window_strides=(1, 1), padding=pad,
            dimension_numbers=("NHWC", "HWIO", "NHWC"))

    def bn(y, g, b):
        mu = jnp.mean(y, axis=(0, 1, 2), keepdims=True)
        var = jnp.mean(jnp.square(y - mu), axis=(0, 1, 2), keepdims=True)
        return (y - mu) * jax.lax.rsqrt(var + EPS) * g + b

    o = jax.nn.relu(bn(conv(x, params["conv1_w"], "VALID"), params["bn1_g"], params["bn1_b"]))
    o = jax.nn.relu(bn(conv(o, params["conv2_w"], "SAME"), params["bn2_g"], params["bn2_b"]))
    o = bn(conv(o, params["conv3_w"], "VALID"), params["bn3_g"], params["bn3_b"])
    o = jax.nn.relu(o + x)
    return jnp.transpose(o, (0, 3, 1, 2))


# ----------------------------------- main -----------------------------------

if __name__ == "__main__":
    key = jax.random.PRNGKey(0)
    k_x, k_p = jax.random.split(key)

    N, planes = 2, 4
    inplanes = planes * 4        # 16, so the residual add works with downsample=None
    H = W = 16

    x = jax.random.normal(k_x, (N, inplanes, H, W), jnp.float32)   # NCHW input
    params = init_bottleneck_params(k_p, inplanes, planes)

    out = bottleneck_forward(x, params, planes=planes)
    out = jax.block_until_ready(out)

    ref = _reference(x, params, planes)
    assert out.shape == (N, inplanes, H, W)
    assert bool(jnp.allclose(out, ref, atol=2e-2, rtol=2e-2)), "mismatch vs reference"

    print("KERNEL_OK")
</pallas_src>

<mosaic_0001>
module attributes {stable_mosaic.version = 11 : i64} {
  func.func @_conv1x1_stats_kernel(%arg0: i32, %arg1: memref<256x16xf32, #tpu.memory_space<vmem>>, %arg2: memref<16x4xbf16, #tpu.memory_space<vmem>>, %arg3: memref<256x4xf32, #tpu.memory_space<vmem>>, %arg4: memref<1x2x4xf32, #tpu.memory_space<vmem>>) attributes {dimension_semantics = [#tpu.dimension_semantics<parallel>], iteration_bounds = array<i64: 2>, scalar_prefetch = 0 : i64, scratch_operands = 0 : i64, tpu.core_type = #tpu.core_type<tc>, window_params = [{transform_indices = @transform_0, window_bounds = array<i64: 256, 16>}, {pipeline_mode = #tpu.pipeline_mode<synchronous>, transform_indices = @transform_1, window_bounds = array<i64: 16, 4>}, {transform_indices = @transform_2, window_bounds = array<i64: 256, 4>}, {transform_indices = @transform_3, window_bounds = array<i64: 1, 2, 4>}]} {
    %c0 = arith.constant 0 : index
    %c0_0 = arith.constant 0 : index
    %0 = vector.load %arg1[%c0, %c0_0] : memref<256x16xf32, #tpu.memory_space<vmem>>, vector<256x16xf32>
    %1 = arith.truncf %0 : vector<256x16xf32> to vector<256x16xbf16>
    %c0_1 = arith.constant 0 : index
    %c0_2 = arith.constant 0 : index
    %2 = vector.load %arg2[%c0_1, %c0_2] : memref<16x4xbf16, #tpu.memory_space<vmem>>, vector<16x4xbf16>
    %cst = arith.constant dense<0.000000e+00> : vector<256x4xf32>
    %3 = tpu.matmul %1, %2, %cst {dimension_numbers = #tpu.dot_dimension_numbers<[1], [0], [0], [1], [0, 0, 1, 1], [], []>} : vector<256x16xbf16>, vector<16x4xbf16>, vector<256x4xf32> -> vector<256x4xf32>
    %c0_3 = arith.constant 0 : index
    %c0_4 = arith.constant 0 : index
    %4 = vector.load %arg3[%c0_3, %c0_4] : memref<256x4xf32, #tpu.memory_space<vmem>>, vector<256x4xf32>
    tpu.vector_store %arg3[%c0_3, %c0_4], %3 {strides = array<i32>} : memref<256x4xf32, #tpu.memory_space<vmem>>, vector<256x4xf32>,
    %cst_5 = arith.constant dense<0.000000e+00> : vector<4xf32>
    %5 = vector.multi_reduction <add>, %3, %cst_5 [0] : vector<256x4xf32> to vector<4xf32>
    %6 = vector.shape_cast %5 : vector<4xf32> to vector<1x4xf32>
    %7 = arith.mulf %3, %3 : vector<256x4xf32>
    %cst_6 = arith.constant dense<0.000000e+00> : vector<4xf32>
    %8 = vector.multi_reduction <add>, %7, %cst_6 [0] : vector<256x4xf32> to vector<4xf32>
    %9 = vector.shape_cast %8 : vector<4xf32> to vector<1x4xf32>
    %10 = tpu.concatenate %6, %9 in 0 : vector<1x4xf32>, vector<1x4xf32> -> vector<2x4xf32>
    %11 = vector.shape_cast %10 : vector<2x4xf32> to vector<1x2x4xf32>
    %c0_7 = arith.constant 0 : index
    %c0_8 = arith.constant 0 : index
    %c0_9 = arith.constant 0 : index
    %12 = vector.load %arg4[%c0_7, %c0_8, %c0_9] : memref<1x2x4xf32, #tpu.memory_space<vmem>>, vector<1x2x4xf32>
    tpu.vector_store %arg4[%c0_7, %c0_8, %c0_9], %11 {strides = array<i32>} : memref<1x2x4xf32, #tpu.memory_space<vmem>>, vector<1x2x4xf32>,
    return
  }
  func.func @transform_0(%arg0: i32) -> (i32, i32) {
    %c0_i32 = arith.constant 0 : i32
    %c0_i32_0 = arith.constant 0 : i32
    return %arg0, %c0_i32 : i32, i32
  }
  func.func @transform_1(%arg0: i32) -> (i32, i32) {
    %c0_i32 = arith.constant 0 : i32
    %c0_i32_0 = arith.constant 0 : i32
    %c0_i32_1 = arith.constant 0 : i32
    return %c0_i32, %c0_i32_0 : i32, i32
  }
  func.func @transform_2(%arg0: i32) -> (i32, i32) {
    %c0_i32 = arith.constant 0 : i32
    %c0_i32_0 = arith.constant 0 : i32
    return %arg0, %c0_i32 : i32, i32
  }
  func.func @transform_3(%arg0: i32) -> (i32, i32, i32) {
    %c0_i32 = arith.constant 0 : i32
    %c0_i32_0 = arith.constant 0 : i32
    %c0_i32_1 = arith.constant 0 : i32
    return %arg0, %c0_i32, %c0_i32_0 : i32, i32, i32
  }
}

module attributes {stable_mosaic.version = 11 : i64} {
  func.func @_bn_relu_conv3x3_stats_kernel(%arg0: i32, %arg1: memref<1x16x16x4xf32, #tpu.memory_space<vmem>>, %arg2: memref<9x4x4xbf16, #tpu.memory_space<vmem>>, %arg3: memref<1x1x4xf32, #tpu.memory_space<vmem>>, %arg4: memref<1x1x4xf32, #tpu.memory_space<vmem>>, %arg5: memref<1x16x16x4xf32, #tpu.memory_space<vmem>>, %arg6: memref<1x2x4xf32, #tpu.memory_space<vmem>>, %arg7: memref<18x18x4xf32, #tpu.memory_space<vmem>>) attributes {dimension_semantics = [#tpu.dimension_semantics<parallel>], iteration_bounds = array<i64: 2>, scalar_prefetch = 0 : i64, scratch_operands = 1 : i64, tpu.core_type = #tpu.core_type<tc>, window_params = [{transform_indices = @transform_0, window_bounds = array<i64: 1, 16, 16, 4>}, {pipeline_mode = #tpu.pipeline_mode<synchronous>, transform_indices = @transform_1, window_bounds = array<i64: 9, 4, 4>}, {pipeline_mode = #tpu.pipeline_mode<synchronous>, transform_indices = @transform_2, window_bounds = array<i64: 1, 1, 4>}, {pipeline_mode = #tpu.pipeline_mode<synchronous>, transform_indices = @transform_3, window_bounds = array<i64: 1, 1, 4>}, {transform_indices = @transform_4, window_bounds = array<i64: 1, 16, 16, 4>}, {transform_indices = @transform_5, window_bounds = array<i64: 1, 2, 4>}]} {
    %c0 = arith.constant 0 : index
    %c0_0 = arith.constant 0 : index
    %c0_1 = arith.constant 0 : index
    %c0_2 = arith.constant 0 : index
    %0 = vector.load %arg1[%c0, %c0_0, %c0_1, %c0_2] : memref<1x16x16x4xf32, #tpu.memory_space<vmem>>, vector<1x16x16x4xf32>
    %1 = vector.shape_cast %0 : vector<1x16x16x4xf32> to vector<16x16x4xf32>
    %c0_3 = arith.constant 0 : index
    %c0_4 = arith.constant 0 : index
    %c0_5 = arith.constant 0 : index
    %2 = vector.load %arg3[%c0_3, %c0_4, %c0_5] : memref<1x1x4xf32, #tpu.memory_space<vmem>>, vector<1x1x4xf32>
    %3 = vector.broadcast %2 : vector<1x1x4xf32> to vector<16x16x4xf32>
    %4 = arith.mulf %1, %3 : vector<16x16x4xf32>
    %c0_6 = arith.constant 0 : index
    %c0_7 = arith.constant 0 : index
    %c0_8 = arith.constant 0 : index
    %5 = vector.load %arg4[%c0_6, %c0_7, %c0_8] : memref<1x1x4xf32, #tpu.memory_space<vmem>>, vector<1x1x4xf32>
    %6 = vector.broadcast %5 : vector<1x1x4xf32> to vector<16x16x4xf32>
    %7 = arith.addf %4, %6 : vector<16x16x4xf32>
    %cst = arith.constant 0.000000e+00 : f32
    %8 = vector.broadcast %cst : f32 to vector<16x16x4xf32>
    %9 = arith.maximumf %7, %8 : vector<16x16x4xf32>
    %cst_9 = arith.constant 0.000000e+00 : f32
    %10 = vector.broadcast %cst_9 : f32 to vector<18x18x4xf32>
    %c0_10 = arith.constant 0 : index
    %c0_11 = arith.constant 0 : index
    %c0_12 = arith.constant 0 : index
    %11 = vector.load %arg7[%c0_10, %c0_11, %c0_12] : memref<18x18x4xf32, #tpu.memory_space<vmem>>, vector<18x18x4xf32>
    tpu.vector_store %arg7[%c0_10, %c0_11, %c0_12], %10 {strides = array<i32>} : memref<18x18x4xf32, #tpu.memory_space<vmem>>, vector<18x18x4xf32>,
    %c1 = arith.constant 1 : index
    %c1_13 = arith.constant 1 : index
    %c0_14 = arith.constant 0 : index
    %12 = vector.load %arg7[%c1, %c1_13, %c0_14] : memref<18x18x4xf32, #tpu.memory_space<vmem>>, vector<16x16x4xf32>
    tpu.vector_store %arg7[%c1, %c1_13, %c0_14], %9 {strides = array<i32>} : memref<18x18x4xf32, #tpu.memory_space<vmem>>, vector<16x16x4xf32>,
    %cst_15 = arith.constant 0.000000e+00 : f32
    %13 = vector.broadcast %cst_15 : f32 to vector<256x4xf32>
    %c0_16 = arith.constant 0 : index
    %c0_17 = arith.constant 0 : index
    %c0_18 = arith.constant 0 : index
    %14 = vector.load %arg7[%c0_16, %c0_17, %c0_18] : memref<18x18x4xf32, #tpu.memory_space<vmem>>, vector<16x16x4xf32>
    %15 = vector.shape_cast %14 : vector<16x16x4xf32> to vector<256x4xf32>
    %16 = arith.truncf %15 : vector<256x4xf32> to vector<256x4xbf16>
    %c0_19 = arith.constant 0 : index
    %c0_20 = arith.constant 0 : index
    %c0_21 = arith.constant 0 : index
    %17 = vector.load %arg2[%c0_19, %c0_20, %c0_21] : memref<9x4x4xbf16, #tpu.memory_space<vmem>>, vector<1x4x4xbf16>
    %18 = vector.shape_cast %17 : vector<1x4x4xbf16> to vector<4x4xbf16>
    %cst_22 = arith.constant dense<0.000000e+00> : vector<256x4xf32>
    %19 = tpu.matmul %16, %18, %cst_22 {dimension_numbers = #tpu.dot_dimension_numbers<[1], [0], [0], [1], [0, 0, 1, 1], [], []>} : vector<256x4xbf16>, vector<4x4xbf16>, vector<256x4xf32> -> vector<256x4xf32>
    %20 = arith.addf %13, %19 : vector<256x4xf32>
    %c0_23 = arith.constant 0 : index
    %c1_24 = arith.constant 1 : index
    %c0_25 = arith.constant 0 : index
    %21 = vector.load %arg7[%c0_23, %c1_24, %c0_25] : memref<18x18x4xf32, #tpu.memory_space<vmem>>, vector<16x16x4xf32>
    %22 = vector.shape_cast %21 : vector<16x16x4xf32> to vector<256x4xf32>
    %23 = arith.truncf %22 : vector<256x4xf32> to vector<256x4xbf16>
    %c1_26 = arith.constant 1 : index
    %c0_27 = arith.constant 0 : index
    %c0_28 = arith.constant 0 : index
    %24 = vector.load %arg2[%c1_26, %c0_27, %c0_28] : memref<9x4x4xbf16, #tpu.memory_space<vmem>>, vector<1x4x4xbf16>
    %25 = vector.shape_cast %24 : vector<1x4x4xbf16> to vector<4x4xbf16>
    %cst_29 = arith.constant dense<0.000000e+00> : vector<256x4xf32>
    %26 = tpu.matmul %23, %25, %cst_29 {dimension_numbers = #tpu.dot_dimension_numbers<[1], [0], [0], [1], [0, 0, 1, 1], [], []>} : vector<256x4xbf16>, vector<4x4xbf16>, vector<256x4xf32> -> vector<256x4xf32>
    %27 = arith.addf %20, %26 : vector<256x4xf32>
    %c0_30 = arith.constant 0 : index
    %c2 = arith.constant 2 : index
    %c0_31 = arith.constant 0 : index
    %28 = vector.load %arg7[%c0_30, %c2, %c0_31] : memref<18x18x4xf32, #tpu.memory_space<vmem>>, vector<16x16x4xf32>
    %29 = vector.shape_cast %28 : vector<16x16x4xf32> to vector<256x4xf32>
    %30 = arith.truncf %29 : vector<256x4xf32> to vector<256x4xbf16>
    %c2_32 = arith.constant 2 : index
    %c0_33 = arith.constant 0 : index
    %c0_34 = arith.constant 0 : index
    %31 = vector.load %arg2[%c2_32, %c0_33, %c0_34] : memref<9x4x4xbf16, #tpu.memory_space<vmem>>, vector<1x4x4xbf16>
    %32 = vector.shape_cast %31 : vector<1x4x4xbf16> to vector<4x4xbf16>
    %cst_35 = arith.constant dense<0.000000e+00> : vector<256x4xf32>
    %33 = tpu.matmul %30, %32, %cst_35 {dimension_numbers = #tpu.dot_dimension_numbers<[1], [0], [0], [1], [0, 0, 1, 1], [], []>} : vector<256x4xbf16>, vector<4x4xbf16>, vector<256x4xf32> -> vector<256x4xf32>
    %34 = arith.addf %27, %33 : vector<256x4xf32>
    %c1_36 = arith.constant 1 : index
    %c0_37 = arith.constant 0 : index
    %c0_38 = arith.constant 0 : index
    %35 = vector.load %arg7[%c1_36, %c0_37, %c0_38] : memref<18x18x4xf32, #tpu.memory_space<vmem>>, vector<16x16x4xf32>
    %36 = vector.shape_cast %35 : vector<16x16x4xf32> to vector<256x4xf32>
    %37 = arith.truncf %36 : vector<256x4xf32> to vector<256x4xbf16>
    %c3 = arith.constant 3 : index
    %c0_39 = arith.constant 0 : index
    %c0_40 = arith.constant 0 : index
    %38 = vector.load %arg2[%c3, %c0_39, %c0_40] : memref<9x4x4xbf16, #tpu.memory_space<vmem>>, vector<1x4x4xbf16>
    %39 = vector.shape_cast %38 : vector<1x4x4xbf16> to vector<4x4xbf16>
    %cst_41 = arith.constant dense<0.000000e+00> : vector<256x4xf32>
    %40 = tpu.matmul %37, %39, %cst_41 {dimension_numbers = #tpu.dot_dimension_numbers<[1], [0], [0], [1], [0, 0, 1, 1], [], []>} : vector<256x4xbf16>, vector<4x4xbf16>, vector<256x4xf32> -> vector<256x4xf32>
    %41 = arith.addf %34, %40 : vector<256x4xf32>
    %c1_42 = arith.constant 1 : index
    %c1_43 = arith.constant 1 : index
    %c0_44 = arith.constant 0 : index
    %42 = vector.load %arg7[%c1_42, %c1_43, %c0_44] : memref<18x18x4xf32, #tpu.memory_space<vmem>>, vector<16x16x4xf32>
    %43 = vector.shape_cast %42 : vector<16x16x4xf32> to vector<256x4xf32>
    %44 = arith.truncf %43 : vector<256x4xf32> to vector<256x4xbf16>
    %c4 = arith.constant 4 : index
    %c0_45 = arith.constant 0 : index
    %c0_46 = arith.constant 0 : index
    %45 = vector.load %arg2[%c4, %c0_45, %c0_46] : memref<9x4x4xbf16, #tpu.memory_space<vmem>>, vector<1x4x4xbf16>
    %46 = vector.shape_cast %45 : vector<1x4x4xbf16> to vector<4x4xbf16>
    %cst_47 = arith.constant dense<0.000000e+00> : vector<256x4xf32>
    %47 = tpu.matmul %44, %46, %cst_47 {dimension_numbers = #tpu.dot_dimension_numbers<[1], [0], [0], [1], [0, 0, 1, 1], [], []>} : vector<256x4xbf16>, vector<4x4xbf16>, vector<256x4xf32> -> vector<256x4xf32>
    %48 = arith.addf %41, %47 : vector<256x4xf32>
    %c1_48 = arith.constant 1 : index
    %c2_49 = arith.constant 2 : index
    %c0_50 = arith.constant 0 : index
    %49 = vector.load %arg7[%c1_48, %c2_49, %c0_50] : memref<18x18x4xf32, #tpu.memory_space<vmem>>, vector<16x16x4xf32>
    %50 = vector.shape_cast %49 : vector<16x16x4xf32> to vector<256x4xf32>
    %51 = arith.truncf %50 : vector<256x4xf32> to vector<256x4xbf16>
    %c5 = arith.constant 5 : index
    %c0_51 = arith.constant 0 : index
    %c0_52 = arith.constant 0 : index
    %52 = vector.load %arg2[%c5, %c0_51, %c0_52] : memref<9x4x4xbf16, #tpu.memory_space<vmem>>, vector<1x4x4xbf16>
    %53 = vector.shape_cast %52 : vector<1x4x4xbf16> to vector<4x4xbf16>
    %cst_53 = arith.constant dense<0.000000e+00> : vector<256x4xf32>
    %54 = tpu.matmul %51, %53, %cst_53 {dimension_numbers = #tpu.dot_dimension_numbers<[1], [0], [0], [1], [0, 0, 1, 1], [], []>} : vector<256x4xbf16>, vector<4x4xbf16>, vector<256x4xf32> -> vector<256x4xf32>
    %55 = arith.addf %48, %54 : vector<256x4xf32>
    %c2_54 = arith.constant 2 : index
    %c0_55 = arith.constant 0 : index
    %c0_56 = arith.constant 0 : index
    %56 = vector.load %arg7[%c2_54, %c0_55, %c0_56] : memref<18x18x4xf32, #tpu.memory_space<vmem>>, vector<16x16x4xf32>
    %57 = vector.shape_cast %56 : vector<16x16x4xf32> to vector<256x4xf32>
    %58 = arith.truncf %57 : vector<256x4xf32> to vector<256x4xbf16>
    %c6 = arith.constant 6 : index
    %c0_57 = arith.constant 0 : index
    %c0_58 = arith.constant 0 : index
    %59 = vector.load %arg2[%c6, %c0_57, %c0_58] : memref<9x4x4xbf16, #tpu.memory_space<vmem>>, vector<1x4x4xbf16>
    %60 = vector.shape_cast %59 : vector<1x4x4xbf16> to vector<4x4xbf16>
    %cst_59 = arith.constant dense<0.000000e+00> : vector<256x4xf32>
    %61 = tpu.matmul %58, %60, %cst_59 {dimension_numbers = #tpu.dot_dimension_numbers<[1], [0], [0], [1], [0, 0, 1, 1], [], []>} : vector<256x4xbf16>, vector<4x4xbf16>, vector<256x4xf32> -> vector<256x4xf32>
    %62 = arith.addf %55, %61 : vector<256x4xf32>
    %c2_60 = arith.constant 2 : index
    %c1_61 = arith.constant 1 : index
    %c0_62 = arith.constant 0 : index
    %63 = vector.load %arg7[%c2_60, %c1_61, %c0_62] : memref<18x18x4xf32, #tpu.memory_space<vmem>>, vector<16x16x4xf32>
    %64 = vector.shape_cast %63 : vector<16x16x4xf32> to vector<256x4xf32>
    %65 = arith.truncf %64 : vector<256x4xf32> to vector<256x4xbf16>
    %c7 = arith.constant 7 : index
    %c0_63 = arith.constant 0 : index
    %c0_64 = arith.constant 0 : index
    %66 = vector.load %arg2[%c7, %c0_63, %c0_64] : memref<9x4x4xbf16, #tpu.memory_space<vmem>>, vector<1x4x4xbf16>
    %67 = vector.shape_cast %66 : vector<1x4x4xbf16> to vector<4x4xbf16>
    %cst_65 = arith.constant dense<0.000000e+00> : vector<256x4xf32>
    %68 = tpu.matmul %65, %67, %cst_65 {dimension_numbers = #tpu.dot_dimension_numbers<[1], [0], [0], [1], [0, 0, 1, 1], [], []>} : vector<256x4xbf16>, vector<4x4xbf16>, vector<256x4xf32> -> vector<256x4xf32>
    %69 = arith.addf %62, %68 : vector<256x4xf32>
    %c2_66 = arith.constant 2 : index
    %c2_67 = arith.constant 2 : index
    %c0_68 = arith.constant 0 : index
    %70 = vector.load %arg7[%c2_66, %c2_67, %c0_68] : memref<18x18x4xf32, #tpu.memory_space<vmem>>, vector<16x16x4xf32>
    %71 = vector.shape_cast %70 : vector<16x16x4xf32> to vector<256x4xf32>
    %72 = arith.truncf %71 : vector<256x4xf32> to vector<256x4xbf16>
    %c8 = arith.constant 8 : index
    %c0_69 = arith.constant 0 : index
    %c0_70 = arith.constant 0 : index
    %73 = vector.load %arg2[%c8, %c0_69, %c0_70] : memref<9x4x4xbf16, #tpu.memory_space<vmem>>, vector<1x4x4xbf16>
    %74 = vector.shape_cast %73 : vector<1x4x4xbf16> to vector<4x4xbf16>
    %cst_71 = arith.constant dense<0.000000e+00> : vector<256x4xf32>
    %75 = tpu.matmul %72, %74, %cst_71 {dimension_numbers = #tpu.dot_dimension_numbers<[1], [0], [0], [1], [0, 0, 1, 1], [], []>} : vector<256x4xbf16>, vector<4x4xbf16>, vector<256x4xf32> -> vector<256x4xf32>
    %76 = arith.addf %69, %75 : vector<256x4xf32>
    %77 = vector.shape_cast %76 : vector<256x4xf32> to vector<1x16x16x4xf32>
    %c0_72 = arith.constant 0 : index
    %c0_73 = arith.constant 0 : index
    %c0_74 = arith.constant 0 : index
    %c0_75 = arith.constant 0 : index
    %78 = vector.load %arg5[%c0_72, %c0_73, %c0_74, %c0_75] : memref<1x16x16x4xf32, #tpu.memory_space<vmem>>, vector<1x16x16x4xf32>
    tpu.vector_store %arg5[%c0_72, %c0_73, %c0_74, %c0_75], %77 {strides = array<i32>} : memref<1x16x16x4xf32, #tpu.memory_space<vmem>>, vector<1x16x16x4xf32>,
    %cst_76 = arith.constant dense<0.000000e+00> : vector<4xf32>
    %79 = vector.multi_reduction <add>, %76, %cst_76 [0] : vector<256x4xf32> to vector<4xf32>
    %80 = vector.shape_cast %79 : vector<4xf32> to vector<1x4xf32>
    %81 = arith.mulf %76, %76 : vector<256x4xf32>
    %cst_77 = arith.constant dense<0.000000e+00> : vector<4xf32>
    %82 = vector.multi_reduction <add>, %81, %cst_77 [0] : vector<256x4xf32> to vector<4xf32>
    %83 = vector.shape_cast %82 : vector<4xf32> to vector<1x4xf32>
    %84 = tpu.concatenate %80, %83 in 0 : vector<1x4xf32>, vector<1x4xf32> -> vector<2x4xf32>
    %85 = vector.shape_cast %84 : vector<2x4xf32> to vector<1x2x4xf32>
    %c0_78 = arith.constant 0 : index
    %c0_79 = arith.constant 0 : index
    %c0_80 = arith.constant 0 : index
    %86 = vector.load %arg6[%c0_78, %c0_79, %c0_80] : memref<1x2x4xf32, #tpu.memory_space<vmem>>, vector<1x2x4xf32>
    tpu.vector_store %arg6[%c0_78, %c0_79, %c0_80], %85 {strides = array<i32>} : memref<1x2x4xf32, #tpu.memory_space<vmem>>, vector<1x2x4xf32>,
    return
  }
  func.func @transform_0(%arg0: i32) -> (i32, i32, i32, i32) {
    %c0_i32 = arith.constant 0 : i32
    %c0_i32_0 = arith.constant 0 : i32
    %c0_i32_1 = arith.constant 0 : i32
    %c0_i32_2 = arith.constant 0 : i32
    return %arg0, %c0_i32, %c0_i32_0, %c0_i32_1 : i32, i32, i32, i32
  }
  func.func @transform_1(%arg0: i32) -> (i32, i32, i32) {
    %c0_i32 = arith.constant 0 : i32
    %c0_i32_0 = arith.constant 0 : i32
    %c0_i32_1 = arith.constant 0 : i32
    %c0_i32_2 = arith.constant 0 : i32
    return %c0_i32, %c0_i32_0, %c0_i32_1 : i32, i32, i32
  }
  func.func @transform_2(%arg0: i32) -> (i32, i32, i32) {
    %c0_i32 = arith.constant 0 : i32
    %c0_i32_0 = arith.constant 0 : i32
    %c0_i32_1 = arith.constant 0 : i32
    %c0_i32_2 = arith.constant 0 : i32
    return %c0_i32, %c0_i32_0, %c0_i32_1 : i32, i32, i32
  }
  func.func @transform_3(%arg0: i32) -> (i32, i32, i32) {
    %c0_i32 = arith.constant 0 : i32
    %c0_i32_0 = arith.constant 0 : i32
    %c0_i32_1 = arith.constant 0 : i32
    %c0_i32_2 = arith.constant 0 : i32
    return %c0_i32, %c0_i32_0, %c0_i32_1 : i32, i32, i32
  }
  func.func @transform_4(%arg0: i32) -> (i32, i32, i32, i32) {
    %c0_i32 = arith.constant 0 : i32
    %c0_i32_0 = arith.constant 0 : i32
    %c0_i32_1 = arith.constant 0 : i32
    %c0_i32_2 = arith.constant 0 : i32
    return %arg0, %c0_i32, %c0_i32_0, %c0_i32_1 : i32, i32, i32, i32
  }
  func.func @transform_5(%arg0: i32) -> (i32, i32, i32) {
    %c0_i32 = arith.constant 0 : i32
    %c0_i32_0 = arith.constant 0 : i32
    %c0_i32_1 = arith.constant 0 : i32
    return %arg0, %c0_i32, %c0_i32_0 : i32, i32, i32
  }
}

module attributes {stable_mosaic.version = 11 : i64} {
  func.func @_bn_relu_conv1x1_stats_kernel(%arg0: i32, %arg1: memref<256x4xf32, #tpu.memory_space<vmem>>, %arg2: memref<4x16xbf16, #tpu.memory_space<vmem>>, %arg3: memref<1x4xf32, #tpu.memory_space<vmem>>, %arg4: memref<1x4xf32, #tpu.memory_space<vmem>>, %arg5: memref<256x16xf32, #tpu.memory_space<vmem>>, %arg6: memref<1x2x16xf32, #tpu.memory_space<vmem>>) attributes {dimension_semantics = [#tpu.dimension_semantics<parallel>], iteration_bounds = array<i64: 2>, scalar_prefetch = 0 : i64, scratch_operands = 0 : i64, tpu.core_type = #tpu.core_type<tc>, window_params = [{transform_indices = @transform_0, window_bounds = array<i64: 256, 4>}, {pipeline_mode = #tpu.pipeline_mode<synchronous>, transform_indices = @transform_1, window_bounds = array<i64: 4, 16>}, {pipeline_mode = #tpu.pipeline_mode<synchronous>, transform_indices = @transform_2, window_bounds = array<i64: 1, 4>}, {pipeline_mode = #tpu.pipeline_mode<synchronous>, transform_indices = @transform_3, window_bounds = array<i64: 1, 4>}, {transform_indices = @transform_4, window_bounds = array<i64: 256, 16>}, {transform_indices = @transform_5, window_bounds = array<i64: 1, 2, 16>}]} {
    %c0 = arith.constant 0 : index
    %c0_0 = arith.constant 0 : index
    %0 = vector.load %arg1[%c0, %c0_0] : memref<256x4xf32, #tpu.memory_space<vmem>>, vector<256x4xf32>
    %c0_1 = arith.constant 0 : index
    %c0_2 = arith.constant 0 : index
    %1 = vector.load %arg3[%c0_1, %c0_2] : memref<1x4xf32, #tpu.memory_space<vmem>>, vector<1x4xf32>
    %2 = vector.broadcast %1 : vector<1x4xf32> to vector<256x4xf32>
    %3 = arith.mulf %0, %2 : vector<256x4xf32>
    %c0_3 = arith.constant 0 : index
    %c0_4 = arith.constant 0 : index
    %4 = vector.load %arg4[%c0_3, %c0_4] : memref<1x4xf32, #tpu.memory_space<vmem>>, vector<1x4xf32>
    %5 = vector.broadcast %4 : vector<1x4xf32> to vector<256x4xf32>
    %6 = arith.addf %3, %5 : vector<256x4xf32>
    %cst = arith.constant 0.000000e+00 : f32
    %7 = vector.broadcast %cst : f32 to vector<256x4xf32>
    %8 = arith.maximumf %6, %7 : vector<256x4xf32>
    %9 = arith.truncf %8 : vector<256x4xf32> to vector<256x4xbf16>
    %c0_5 = arith.constant 0 : index
    %c0_6 = arith.constant 0 : index
    %10 = vector.load %arg2[%c0_5, %c0_6] : memref<4x16xbf16, #tpu.memory_space<vmem>>, vector<4x16xbf16>
    %cst_7 = arith.constant dense<0.000000e+00> : vector<256x16xf32>
    %11 = tpu.matmul %9, %10, %cst_7 {dimension_numbers = #tpu.dot_dimension_numbers<[1], [0], [0], [1], [0, 0, 1, 1], [], []>} : vector<256x4xbf16>, vector<4x16xbf16>, vector<256x16xf32> -> vector<256x16xf32>
    %c0_8 = arith.constant 0 : index
    %c0_9 = arith.constant 0 : index
    %12 = vector.load %arg5[%c0_8, %c0_9] : memref<256x16xf32, #tpu.memory_space<vmem>>, vector<256x16xf32>
    tpu.vector_store %arg5[%c0_8, %c0_9], %11 {strides = array<i32>} : memref<256x16xf32, #tpu.memory_space<vmem>>, vector<256x16xf32>,
    %cst_10 = arith.constant dense<0.000000e+00> : vector<16xf32>
    %13 = vector.multi_reduction <add>, %11, %cst_10 [0] : vector<256x16xf32> to vector<16xf32>
    %14 = vector.shape_cast %13 : vector<16xf32> to vector<1x16xf32>
    %15 = arith.mulf %11, %11 : vector<256x16xf32>
    %cst_11 = arith.constant dense<0.000000e+00> : vector<16xf32>
    %16 = vector.multi_reduction <add>, %15, %cst_11 [0] : vector<256x16xf32> to vector<16xf32>
    %17 = vector.shape_cast %16 : vector<16xf32> to vector<1x16xf32>
    %18 = tpu.concatenate %14, %17 in 0 : vector<1x16xf32>, vector<1x16xf32> -> vector<2x16xf32>
    %19 = vector.shape_cast %18 : vector<2x16xf32> to vector<1x2x16xf32>
    %c0_12 = arith.constant 0 : index
    %c0_13 = arith.constant 0 : index
    %c0_14 = arith.constant 0 : index
    %20 = vector.load %arg6[%c0_12, %c0_13, %c0_14] : memref<1x2x16xf32, #tpu.memory_space<vmem>>, vector<1x2x16xf32>
    tpu.vector_store %arg6[%c0_12, %c0_13, %c0_14], %19 {strides = array<i32>} : memref<1x2x16xf32, #tpu.memory_space<vmem>>, vector<1x2x16xf32>,
    return
  }
  func.func @transform_0(%arg0: i32) -> (i32, i32) {
    %c0_i32 = arith.constant 0 : i32
    %c0_i32_0 = arith.constant 0 : i32
    return %arg0, %c0_i32 : i32, i32
  }
  func.func @transform_1(%arg0: i32) -> (i32, i32) {
    %c0_i32 = arith.constant 0 : i32
    %c0_i32_0 = arith.constant 0 : i32
    %c0_i32_1 = arith.constant 0 : i32
    return %c0_i32, %c0_i32_0 : i32, i32
  }
  func.func @transform_2(%arg0: i32) -> (i32, i32) {
    %c0_i32 = arith.constant 0 : i32
    %c0_i32_0 = arith.constant 0 : i32
    %c0_i32_1 = arith.constant 0 : i32
    return %c0_i32, %c0_i32_0 : i32, i32
  }
  func.func @transform_3(%arg0: i32) -> (i32, i32) {
    %c0_i32 = arith.constant 0 : i32
    %c0_i32_0 = arith.constant 0 : i32
    %c0_i32_1 = arith.constant 0 : i32
    return %c0_i32, %c0_i32_0 : i32, i32
  }
  func.func @transform_4(%arg0: i32) -> (i32, i32) {
    %c0_i32 = arith.constant 0 : i32
    %c0_i32_0 = arith.constant 0 : i32
    return %arg0, %c0_i32 : i32, i32
  }
  func.func @transform_5(%arg0: i32) -> (i32, i32, i32) {
    %c0_i32 = arith.constant 0 : i32
    %c0_i32_0 = arith.constant 0 : i32
    %c0_i32_1 = arith.constant 0 : i32
    return %arg0, %c0_i32, %c0_i32_0 : i32, i32, i32
  }
}

module attributes {stable_mosaic.version = 11 : i64} {
  func.func @_bn_add_relu_kernel(%arg0: i32, %arg1: memref<256x16xf32, #tpu.memory_space<vmem>>, %arg2: memref<256x16xf32, #tpu.memory_space<vmem>>, %arg3: memref<1x16xf32, #tpu.memory_space<vmem>>, %arg4: memref<1x16xf32, #tpu.memory_space<vmem>>, %arg5: memref<256x16xf32, #tpu.memory_space<vmem>>) attributes {dimension_semantics = [#tpu.dimension_semantics<parallel>], iteration_bounds = array<i64: 2>, scalar_prefetch = 0 : i64, scratch_operands = 0 : i64, tpu.core_type = #tpu.core_type<tc>, window_params = [{transform_indices = @transform_0, window_bounds = array<i64: 256, 16>}, {transform_indices = @transform_1, window_bounds = array<i64: 256, 16>}, {pipeline_mode = #tpu.pipeline_mode<synchronous>, transform_indices = @transform_2, window_bounds = array<i64: 1, 16>}, {pipeline_mode = #tpu.pipeline_mode<synchronous>, transform_indices = @transform_3, window_bounds = array<i64: 1, 16>}, {transform_indices = @transform_4, window_bounds = array<i64: 256, 16>}]} {
    %c0 = arith.constant 0 : index
    %c0_0 = arith.constant 0 : index
    %0 = vector.load %arg1[%c0, %c0_0] : memref<256x16xf32, #tpu.memory_space<vmem>>, vector<256x16xf32>
    %c0_1 = arith.constant 0 : index
    %c0_2 = arith.constant 0 : index
    %1 = vector.load %arg3[%c0_1, %c0_2] : memref<1x16xf32, #tpu.memory_space<vmem>>, vector<1x16xf32>
    %2 = vector.broadcast %1 : vector<1x16xf32> to vector<256x16xf32>
    %3 = arith.mulf %0, %2 : vector<256x16xf32>
    %c0_3 = arith.constant 0 : index
    %c0_4 = arith.constant 0 : index
    %4 = vector.load %arg4[%c0_3, %c0_4] : memref<1x16xf32, #tpu.memory_space<vmem>>, vector<1x16xf32>
    %5 = vector.broadcast %4 : vector<1x16xf32> to vector<256x16xf32>
    %6 = arith.addf %3, %5 : vector<256x16xf32>
    %c0_5 = arith.constant 0 : index
    %c0_6 = arith.constant 0 : index
    %7 = vector.load %arg2[%c0_5, %c0_6] : memref<256x16xf32, #tpu.memory_space<vmem>>, vector<256x16xf32>
    %8 = arith.addf %6, %7 : vector<256x16xf32>
    %cst = arith.constant 0.000000e+00 : f32
    %9 = vector.broadcast %cst : f32 to vector<256x16xf32>
    %10 = arith.maximumf %8, %9 : vector<256x16xf32>
    %c0_7 = arith.constant 0 : index
    %c0_8 = arith.constant 0 : index
    %11 = vector.load %arg5[%c0_7, %c0_8] : memref<256x16xf32, #tpu.memory_space<vmem>>, vector<256x16xf32>
    tpu.vector_store %arg5[%c0_7, %c0_8], %10 {strides = array<i32>} : memref<256x16xf32, #tpu.memory_space<vmem>>, vector<256x16xf32>,
    return
  }
  func.func @transform_0(%arg0: i32) -> (i32, i32) {
    %c0_i32 = arith.constant 0 : i32
    %c0_i32_0 = arith.constant 0 : i32
    return %arg0, %c0_i32 : i32, i32
  }
  func.func @transform_1(%arg0: i32) -> (i32, i32) {
    %c0_i32 = arith.constant 0 : i32
    %c0_i32_0 = arith.constant 0 : i32
    return %arg0, %c0_i32 : i32, i32
  }
  func.func @transform_2(%arg0: i32) -> (i32, i32) {
    %c0_i32 = arith.constant 0 : i32
    %c0_i32_0 = arith.constant 0 : i32
    %c0_i32_1 = arith.constant 0 : i32
    return %c0_i32, %c0_i32_0 : i32, i32
  }
  func.func @transform_3(%arg0: i32) -> (i32, i32) {
    %c0_i32 = arith.constant 0 : i32
    %c0_i32_0 = arith.constant 0 : i32
    %c0_i32_1 = arith.constant 0 : i32
    return %c0_i32, %c0_i32_0 : i32, i32
  }
  func.func @transform_4(%arg0: i32) -> (i32, i32) {
    %c0_i32 = arith.constant 0 : i32
    %c0_i32_0 = arith.constant 0 : i32
    return %arg0, %c0_i32 : i32, i32
  }
}

</mosaic_0001>

<bundles_post_ra>
// kernel: bottleneck_forward.4
= control target key start
LH: loop header
LB: loop body
LE: loop exit
PB: predicated region body
PF: predicated region fallthrough
CT: control target
= control target key end

     0   :  { %s746_s12 = smov 0   ;;  %s1099_s0 = inlined_call_operand.vmem [shape: f32[512,16], index: 0, kind: input, shape index: {}]   ;;  %s1100_s1 = inlined_call_operand.vmem [shape: bf16[16,4], index: 1, kind: input, shape index: {}]   ;;  %s1101_s2 = inlined_call_operand.vmem [shape: f32[512,4], index: 2, kind: output, shape index: {0}]   ;;  %s1102_s3 = inlined_call_operand.vmem [shape: f32[2,2,4], index: 3, kind: output, shape index: {1}]  }
   0x1 LB: > { %s752_s13 = sadd.s32 4294967295, %s724_s12   ;;  %p678_p0 = scmp.ge.s32.totalorder %s724_s12, 1  ;;  %s724_s12 = sphi %s746_s12, %s14_s12  }
   0x2   : > { %p141_p1 = scmp.lt.s32.totalorder %s724_s12, 3 }
   0x4   : > { %p142_p2 = pnand %p678_p0, %p141_p1 }
   0x5   : > { %s679_s16 = sshll.u32 (!%p142_p2), %s752_s13, 5  ;;  %p181_p4 = scmp.lt.s32.totalorder (!%p142_p2), %s752_s13, 1 }
   0x6   : > { %145 = sbr.rel (%p142_p2) target bundleno = 266 (0x10a), region = 28  ;;  %p170_p3 = scmp.lt.s32.totalorder (!%p142_p2), %s679_s16, 63 }
   0xb   : > { %v706_v0 = vld [vmem:[%s1100_s1] sm:$0xff]  ;;  %s1104_s16 = smov (!%p170_p3, %s679_s16), 63  ;;  %vm242_vm0 = vcmask 130048   ;;  %vm380_vm1 = vcmask 31744   ;;  %s1106_s13 = smov (!%p181_p4, %s752_s13), 1  ;;  %vm583_vm2 = vcmask 1040384  }
   0xc   : > { %298 = vmatpush.bf16.msra.mxu0 %v706_v0  ;;  %707 = vmatpush.bf16.msra.mxu1 %v706_v0  ;;  %s680_s17 = sshll.u32 %s1104_s16, 3  ;;  %s683_s24 = sshll.u32 %s1106_s13, 1  ;;  %vm585_vm3 = vcmask 25600  }
   0xd   : > { %708 = vmatpush.bf16.msra.mxu2 %v706_v0  ;;  %709 = vmatpush.bf16.msra.mxu3 %v706_v0  ;;  %s768_s20 = scalar_lea.vmem %s1099_s0, %s680_s17  ;;  %s823_s23 = scalar_lea.vmem %s1101_s2, %s680_s17 }
   0xe   : > { %v186_v1 = vld [vmem:[%s768_s20] sm:$0xff]  ;;  %v187_v2 = vld [vmem:[%s768_s20 + $0x8] sm:$0xff]  ;;  %v188_v13 = vld [vmem:[%s768_s20 + $0x10] sm:$0xff]  ;;  %s184_s27 = scalar_lea.vmem %s1102_s3, %s683_s24 }
   0xf   : > { %v194_v3 = vld [vmem:[%s768_s20 + $0x40] sm:$0xff]  ;;  %v218_v4 = vpack.c.bf16 %v187_v2, %v186_v1  ;;  %v195_v5 = vld [vmem:[%s768_s20 + $0x48] sm:$0xff]  ;;  %v189_v14 = vld [vmem:[%s768_s20 + $0x18] sm:$0xff] }
  0x10   : > { %v222_v6 = vpack.c.bf16 %v195_v5, %v194_v3  ;;  %v202_v7 = vld [vmem:[%s768_s20 + $0x80] sm:$0xff]  ;;  %v203_v8 = vld [vmem:[%s768_s20 + $0x88] sm:$0xff]  ;;  %v196_v15 = vld [vmem:[%s768_s20 + $0x50] sm:$0xff]  ;;  %v219_v19 = vpack.c.bf16 %v189_v14, %v188_v13 }
  0x11   : > { %688 = vmatmul.msk.bf16.vlgmr.msra.gmra.mxu0 %vm242_vm0, %v218_v4  ;;  %v226_v9 = vpack.c.bf16 %v203_v8, %v202_v7  ;;  %v210_v10 = vld [vmem:[%s768_s20 + $0xc0] sm:$0xff]  ;;  %v211_v11 = vld [vmem:[%s768_s20 + $0xc8] sm:$0xff]  ;;  %v197_v16 = vld [vmem:[%s768_s20 + $0x58] sm:$0xff] }
  0x12   : > { %692 = vmatmul.msk.bf16.vlgmr.msra.gmra.mxu1 %vm242_vm0, %v222_v6  ;;  %v230_v12 = vpack.c.bf16 %v211_v11, %v210_v10  ;;  %v204_v17 = vld [vmem:[%s768_s20 + $0x90] sm:$0xff]  ;;  %v205_v18 = vld [vmem:[%s768_s20 + $0x98] sm:$0xff]  ;;  %v223_v20 = vpack.c.bf16 %v197_v16, %v196_v15  ;;  %v190_v25 = vld [vmem:[%s768_s20 + $0x20] sm:$0xff] }
  0x13   : > { %696 = vmatmul.msk.bf16.vlgmr.msra.gmra.mxu2 %vm242_vm0, %v226_v9  ;;  %v227_v21 = vpack.c.bf16 %v205_v18, %v204_v17  ;;  %v212_v22 = vld [vmem:[%s768_s20 + $0xd0] sm:$0xff]  ;;  %v213_v23 = vld [vmem:[%s768_s20 + $0xd8] sm:$0xff]  ;;  %v191_v26 = vld [vmem:[%s768_s20 + $0x28] sm:$0xff] }
  0x14   : > { %700 = vmatmul.msk.bf16.vlgmr.msra.gmra.mxu3 %vm242_vm0, %v230_v12  ;;  %v231_v24 = vpack.c.bf16 %v213_v23, %v212_v22  ;;  %v198_v27 = vld [vmem:[%s768_s20 + $0x60] sm:$0xff]  ;;  %v199_v28 = vld [vmem:[%s768_s20 + $0x68] sm:$0xff]  ;;  %v220_v31 = vpack.c.bf16 %v191_v26, %v190_v25  ;;  %v192_v37 = vld [vmem:[%s768_s20 + $0x30] sm:$0xff] }
  0x15   : > { %v206_v29 = vld [vmem:[%s768_s20 + $0xa0] sm:$0xff]  ;;  %v207_v30 = vld [vmem:[%s768_s20 + $0xa8] sm:$0xff]  ;;  %v224_v32 = vpack.c.bf16 %v199_v28, %v198_v27  ;;  %v193_v38 = vld [vmem:[%s768_s20 + $0x38] sm:$0xff] }
  0x16   : > { %v228_v33 = vpack.c.bf16 %v207_v30, %v206_v29  ;;  %v214_v34 = vld [vmem:[%s768_s20 + $0xe0] sm:$0xff]  ;;  %v215_v35 = vld [vmem:[%s768_s20 + $0xe8] sm:$0xff]  ;;  %v200_v39 = vld [vmem:[%s768_s20 + $0x70] sm:$0xff]  ;;  %v221_v43 = vpack.c.bf16 %v193_v38, %v192_v37 }
  0x17   : > { %v232_v36 = vpack.c.bf16 %v215_v35, %v214_v34  ;;  %v201_v40 = vld [vmem:[%s768_s20 + $0x78] sm:$0xff]  ;;  %v208_v41 = vld [vmem:[%s768_s20 + $0xb0] sm:$0xff] }
  0x18   : > { %v209_v42 = vld [vmem:[%s768_s20 + $0xb8] sm:$0xff]  ;;  %v225_v44 = vpack.c.bf16 %v201_v40, %v200_v39  ;;  %v216_v46 = vld [vmem:[%s768_s20 + $0xf0] sm:$0xff] }
  0x19   : > { %v229_v45 = vpack.c.bf16 %v209_v42, %v208_v41  ;;  %v217_v47 = vld [vmem:[%s768_s20 + $0xf8] sm:$0xff] }
  0x1a   : > { %v233_v48 = vpack.c.bf16 %v217_v47, %v216_v46 }
  0x21   : > { %689 = vmatmul.msk.bf16.gmra.mxu0 %vm242_vm0, %v219_v19 }
  0x22   : > { %693 = vmatmul.msk.bf16.gmra.mxu1 %vm242_vm0, %v223_v20 }
  0x23   : > { %697 = vmatmul.msk.bf16.gmra.mxu2 %vm242_vm0, %v227_v21 }
  0x24   : > { %701 = vmatmul.msk.bf16.gmra.mxu3 %vm242_vm0, %v231_v24 }
  0x31   : > { %690 = vmatmul.msk.bf16.gmra.mxu0 %vm242_vm0, %v220_v31 }
  0x32   : > { %694 = vmatmul.msk.bf16.gmra.mxu1 %vm242_vm0, %v224_v32 }
  0x33   : > { %698 = vmatmul.msk.bf16.gmra.mxu2 %vm242_vm0, %v228_v33 }
  0x34   : > { %702 = vmatmul.msk.bf16.gmra.mxu3 %vm242_vm0, %v232_v36 }
  0x41   : > { %691 = vmatmul.msk.bf16.gmra.mxu0 %vm242_vm0, %v221_v43 }
  0x42   : > { %695 = vmatmul.msk.bf16.gmra.mxu1 %vm242_vm0, %v225_v44 }
  0x43   : > { %699 = vmatmul.msk.bf16.gmra.mxu2 %vm242_vm0, %v229_v45 }
  0x44   : > { %703 = vmatmul.msk.bf16.gmra.mxu3 %vm242_vm0, %v233_v48 }
  0x8e   : > { %v300_v49 = vpop.f32.mrf.mxu0 }
  0x8f   : > { %381 = vst.msk [vmem:[%s823_s23] sm:$0xff] %vm380_vm1, %v300_v49  ;;  %v827_v50 = vpop.f32.mrf.mxu1  ;;  %v482_v7 = vmul.f32 %v300_v49, %v300_v49  ;;  %v413_v11 = vsel %vm380_vm1, %v300_v49, 0.0 }
  0x90   : > { %389 = vst.msk [vmem:[%s823_s23 + $0x40] sm:$0xff] %vm380_vm1, %v827_v50  ;;  %v490_v45 = vmul.f32 %v827_v50, %v827_v50 }
  0x91   : > { %v514_v16 = vsel %vm380_vm1, %v482_v7, 0.0 }
  0x96   : > { %v302_v51 = vpop.f32.mrf.mxu0  ;;  %v832_v52 = vpop.f32.mrf.mxu2 }
  0x97   : > { %382 = vst.msk [vmem:[%s823_s23 + $0x8] sm:$0xff] %vm380_vm1, %v302_v51  ;;  %v836_v53 = vpop.f32.mrf.mxu1  ;;  %v844_v54 = vpop.f32.mrf.mxu3  ;;  %v483_v5 = vmul.f32 %v302_v51, %v302_v51  ;;  %v414_v8 = vsel %vm380_vm1, %v302_v51, 0.0 }
  0x98   : > { %390 = vst.msk [vmem:[%s823_s23 + $0x48] sm:$0xff] %vm380_vm1, %v836_v53  ;;  %v415_v15 = vadd.f32 %v414_v8, %v413_v11  ;;  %v529_v8 = vsel %vm380_vm1, %v490_v45, 0.0 }
  0x99   : > { %397 = vst.msk [vmem:[%s823_s23 + $0x80] sm:$0xff] %vm380_vm1, %v832_v52  ;;  %v515_v12 = vsel %vm380_vm1, %v483_v5, 0.0 }
  0x9a   : > { %405 = vst.msk [vmem:[%s823_s23 + $0xc0] sm:$0xff] %vm380_vm1, %v844_v54  ;;  %v516_v20 = vadd.f32 %v515_v12, %v514_v16 }
  0x9e   : > { %v305_v55 = vpop.f32.mrf.mxu0  ;;  %v849_v56 = vpop.f32.mrf.mxu2 }
  0x9f   : > { %383 = vst.msk [vmem:[%s823_s23 + $0x10] sm:$0xff] %vm380_vm1, %v305_v55  ;;  %v853_v57 = vpop.f32.mrf.mxu1  ;;  %v861_v58 = vpop.f32.mrf.mxu3  ;;  %v484_v9 = vmul.f32 %v305_v55, %v305_v55  ;;  %v416_v13 = vsel %vm380_vm1, %v305_v55, 0.0  ;;  %v428_v55 = vsel %vm380_vm1, %v827_v50, 0.0  ;;  %v430_v50 = vsel %vm380_vm1, %v836_v53, 0.0 }
  0xa0   : > { %391 = vst.msk [vmem:[%s823_s23 + $0x50] sm:$0xff] %vm380_vm1, %v853_v57  ;;  %v417_v21 = vadd.f32 %v416_v13, %v415_v15  ;;  %v499_v45 = vmul.f32 %v849_v56, %v849_v56 }
  0xa1   : > { %398 = vst.msk [vmem:[%s823_s23 + $0x88] sm:$0xff] %vm380_vm1, %v849_v56  ;;  %v517_v17 = vsel %vm380_vm1, %v484_v9, 0.0  ;;  %v492_v9 = vmul.f32 %v853_v57, %v853_v57 }
  0xa2   : > { %406 = vst.msk [vmem:[%s823_s23 + $0xc8] sm:$0xff] %vm380_vm1, %v861_v58  ;;  %v518_v28 = vadd.f32 %v517_v17, %v516_v20 }
  0xa6   : > { %v307_v59 = vpop.f32.mrf.mxu0  ;;  %v866_v60 = vpop.f32.mrf.mxu2 }
  0xa7   : > { %384 = vst.msk [vmem:[%s823_s23 + $0x18] sm:$0xff] %vm380_vm1, %v307_v59  ;;  %v870_v61 = vpop.f32.mrf.mxu1  ;;  %v878_v62 = vpop.f32.mrf.mxu3  ;;  %v485_v14 = vmul.f32 %v307_v59, %v307_v59  ;;  %v418_v18 = vsel %vm380_vm1, %v307_v59, 0.0  ;;  %v491_v59 = vmul.f32 %v836_v53, %v836_v53  ;;  %v533_v53 = vsel %vm380_vm1, %v492_v9, 0.0 }
  0xa8   : > { %392 = vst.msk [vmem:[%s823_s23 + $0x58] sm:$0xff] %vm380_vm1, %v870_v61  ;;  %v419_v29 = vadd.f32 %v418_v18, %v417_v21  ;;  %v493_v15 = vmul.f32 %v870_v61, %v870_v61 }
  0xa9   : > { %399 = vst.msk [vmem:[%s823_s23 + $0x90] sm:$0xff] %vm380_vm1, %v866_v60  ;;  %v519_v24 = vsel %vm380_vm1, %v485_v14, 0.0  ;;  %v531_v13 = vsel %vm380_vm1, %v491_v59, 0.0  ;;  %v432_v14 = vsel %vm380_vm1, %v853_v57, 0.0 }
  0xaa   : > { %407 = vst.msk [vmem:[%s823_s23 + $0xd0] sm:$0xff] %vm380_vm1, %v878_v62  ;;  %v520_v34 = vadd.f32 %v519_v24, %v518_v28 }
  0xae   : > { %v310_v63 = vpop.f32.mrf.mxu0  ;;  %v883_v0 = vpop.f32.mrf.mxu2 }
  0xaf   : > { %385 = vst.msk [vmem:[%s823_s23 + $0x20] sm:$0xff] %vm380_vm1, %v310_v63  ;;  %v887_v1 = vpop.f32.mrf.mxu1  ;;  %v895_v2 = vpop.f32.mrf.mxu3  ;;  %v486_v19 = vmul.f32 %v310_v63, %v310_v63  ;;  %v420_v25 = vsel %vm380_vm1, %v310_v63, 0.0 }
  0xb0   : > { %393 = vst.msk [vmem:[%s823_s23 + $0x60] sm:$0xff] %vm380_vm1, %v887_v1  ;;  %v421_v35 = vadd.f32 %v420_v25, %v419_v29  ;;  %v494_v20 = vmul.f32 %v887_v1, %v887_v1  ;;  %v436_v24 = vsel %vm380_vm1, %v887_v1, 0.0 }
  0xb1   : > { %400 = vst.msk [vmem:[%s823_s23 + $0x98] sm:$0xff] %vm380_vm1, %v883_v0  ;;  %v521_v30 = vsel %vm380_vm1, %v486_v19, 0.0  ;;  %v434_v19 = vsel %vm380_vm1, %v870_v61, 0.0 }
  0xb2   : > { %408 = vst.msk [vmem:[%s823_s23 + $0xd8] sm:$0xff] %vm380_vm1, %v895_v2  ;;  %v522_v38 = vadd.f32 %v521_v30, %v520_v34  ;;  %v537_v29 = vsel %vm380_vm1, %v494_v20, 0.0 }
  0xb6   : > { %v312_v3 = vpop.f32.mrf.mxu0  ;;  %v900_v4 = vpop.f32.mrf.mxu2 }
  0xb7   : > { %386 = vst.msk [vmem:[%s823_s23 + $0x28] sm:$0xff] %vm380_vm1, %v312_v3  ;;  %v904_v6 = vpop.f32.mrf.mxu1  ;;  %v913_v10 = vpop.f32.mrf.mxu3  ;;  %v487_v26 = vmul.f32 %v312_v3, %v312_v3  ;;  %v422_v31 = vsel %vm380_vm1, %v312_v3, 0.0  ;;  %v502_v9 = vmul.f32 %v900_v4, %v900_v4 }
  0xb8   : > { %394 = vst.msk [vmem:[%s823_s23 + $0x68] sm:$0xff] %vm380_vm1, %v904_v6  ;;  %v423_v39 = vadd.f32 %v422_v31, %v421_v35  ;;  %v495_v25 = vmul.f32 %v904_v6, %v904_v6  ;;  %v438_v30 = vsel %vm380_vm1, %v904_v6, 0.0 }
  0xb9   : > { %401 = vst.msk [vmem:[%s823_s23 + $0xa0] sm:$0xff] %vm380_vm1, %v900_v4  ;;  %v523_v36 = vsel %vm380_vm1, %v487_v26, 0.0 }
  0xba   : > { %409 = vst.msk [vmem:[%s823_s23 + $0xe0] sm:$0xff] %vm380_vm1, %v913_v10  ;;  %v524_v41 = vadd.f32 %v523_v36, %v522_v38  ;;  %v539_v34 = vsel %vm380_vm1, %v495_v25, 0.0  ;;  %v506_v25 = vmul.f32 %v844_v54, %v844_v54 }
  0xbe   : > { %v315_v22 = vpop.f32.mrf.mxu0  ;;  %v924_v23 = vpop.f32.mrf.mxu2 }
  0xbf   : > { %387 = vst.msk [vmem:[%s823_s23 + $0x30] sm:$0xff] %vm380_vm1, %v315_v22  ;;  %v930_v27 = vpop.f32.mrf.mxu1  ;;  %v488_v32 = vmul.f32 %v315_v22, %v315_v22  ;;  %v940_v33 = vpop.f32.mrf.mxu3  ;;  %v424_v37 = vsel %vm380_vm1, %v315_v22, 0.0  ;;  %v535_v22 = vsel %vm380_vm1, %v493_v15, 0.0 }
  0xc0   : > { %395 = vst.msk [vmem:[%s823_s23 + $0x70] sm:$0xff] %vm380_vm1, %v930_v27  ;;  %v425_v42 = vadd.f32 %v424_v37, %v423_v39  ;;  %v496_v31 = vmul.f32 %v930_v27, %v930_v27  ;;  %v440_v35 = vsel %vm380_vm1, %v930_v27, 0.0  ;;  %v498_v39 = vmul.f32 %v832_v52, %v832_v52 }
  0xc1   : > { %402 = vst.msk [vmem:[%s823_s23 + $0xa8] sm:$0xff] %vm380_vm1, %v924_v23  ;;  %v525_v40 = vsel %vm380_vm1, %v488_v32, 0.0 }
  0xc2   : > { %410 = vst.msk [vmem:[%s823_s23 + $0xe8] sm:$0xff] %vm380_vm1, %v940_v33  ;;  %v526_v49 = vadd.f32 %v525_v40, %v524_v41  ;;  %v541_v40 = vsel %vm380_vm1, %v496_v31, 0.0 }
  0xc6   : > { %v317_v43 = vpop.f32.mrf.mxu0  ;;  %v948_v44 = vpop.f32.mrf.mxu2 }
  0xc7   : > { %388 = vst.msk [vmem:[%s823_s23 + $0x38] sm:$0xff] %vm380_vm1, %v317_v43  ;;  %v426_v46 = vsel %vm380_vm1, %v317_v43, 0.0  ;;  %v489_v47 = vmul.f32 %v317_v43, %v317_v43  ;;  %v337_v48 = vpop.f32.mrf.mxu1  ;;  %v965_v3 = vpop.f32.mrf.mxu3  ;;  %v444_v43 = vsel %vm380_vm1, %v832_v52, 0.0  ;;  %v448_v52 = vsel %vm380_vm1, %v866_v60, 0.0 }
  0xc8   : > { %v427_v51 = vadd.f32 %v426_v46, %v425_v42  ;;  %396 = vst.msk [vmem:[%s823_s23 + $0x78] sm:$0xff] %vm380_vm1, %v337_v48  ;;  %v497_v36 = vmul.f32 %v337_v48, %v337_v48  ;;  %v442_v6 = vsel %vm380_vm1, %v337_v48, 0.0  ;;  %v500_v48 = vmul.f32 %v866_v60, %v866_v60 }
  0xc9   : > { %v527_v63 = vsel %vm380_vm1, %v489_v47, 0.0  ;;  %403 = vst.msk [vmem:[%s823_s23 + $0xb0] sm:$0xff] %vm380_vm1, %v948_v44  ;;  %v452_v60 = vsel %vm380_vm1, %v900_v4, 0.0  ;;  %v456_v4 = vsel %vm380_vm1, %v948_v44, 0.0 }
  0xca   : > { %v429_v5 = vadd.f32 %v428_v55, %v427_v51  ;;  %v528_v7 = vadd.f32 %v527_v63, %v526_v49  ;;  %411 = vst.msk [vmem:[%s823_s23 + $0xf0] sm:$0xff] %vm380_vm1, %v965_v3  ;;  %v543_v27 = vsel %vm380_vm1, %v497_v36, 0.0  ;;  %v545_v49 = vsel %vm380_vm1, %v498_v39, 0.0 }
  0xcb   : > { %v446_v51 = vsel %vm380_vm1, %v849_v56, 0.0  ;;  %v547_v63 = vsel %vm380_vm1, %v499_v45, 0.0  ;;  %v450_v56 = vsel %vm380_vm1, %v883_v0, 0.0  ;;  %v509_v39 = vmul.f32 %v895_v2, %v895_v2 }
  0xcc   : > { %v431_v11 = vadd.f32 %v430_v50, %v429_v5  ;;  %v530_v12 = vadd.f32 %v529_v8, %v528_v7  ;;  %v501_v5 = vmul.f32 %v883_v0, %v883_v0  ;;  %v549_v50 = vsel %vm380_vm1, %v500_v48, 0.0 }
  0xcd   : > { %v454_v0 = vsel %vm380_vm1, %v924_v23, 0.0  ;;  %v512_v48 = vmul.f32 %v965_v3, %v965_v3 }
  0xce   : > { %v433_v16 = vadd.f32 %v432_v14, %v431_v11  ;;  %v532_v17 = vadd.f32 %v531_v13, %v530_v12  ;;  %v980_v18 = vpop.f32.mrf.mxu2  ;;  %v551_v13 = vsel %vm380_vm1, %v501_v5, 0.0  ;;  %v503_v14 = vmul.f32 %v924_v23, %v924_v23 }
  0xcf   : > { %404 = vst.msk [vmem:[%s823_s23 + $0xb8] sm:$0xff] %vm380_vm1, %v980_v18  ;;  %v995_v26 = vpop.f32.mrf.mxu3 }
  0xd0   : > { %v534_v57 = vadd.f32 %v533_v53, %v532_v17  ;;  %v435_v21 = vadd.f32 %v434_v19, %v433_v16  ;;  %412 = vst.msk [vmem:[%s823_s23 + $0xf8] sm:$0xff] %vm380_vm1, %v995_v26  ;;  %v553_v17 = vsel %vm380_vm1, %v502_v9, 0.0  ;;  %v504_v53 = vmul.f32 %v948_v44, %v948_v44 }
  0xd1   : > { %v507_v44 = vmul.f32 %v861_v58, %v861_v58 }
  0xd2   : > { %v437_v28 = vadd.f32 %v436_v24, %v435_v21  ;;  %v536_v61 = vadd.f32 %v535_v22, %v534_v57  ;;  %v555_v57 = vsel %vm380_vm1, %v503_v14, 0.0  ;;  %v505_v21 = vmul.f32 %v980_v18, %v980_v18 }
  0xd3   : > { %v557_v23 = vsel %vm380_vm1, %v504_v53, 0.0 }
  0xd4   : > { %v439_v32 = vadd.f32 %v438_v30, %v437_v28  ;;  %v538_v1 = vadd.f32 %v537_v29, %v536_v61  ;;  %v458_v28 = vsel %vm380_vm1, %v980_v18, 0.0  ;;  %v460_v30 = vsel %vm380_vm1, %v844_v54, 0.0 }
  0xd5   : > { %v559_v31 = vsel %vm380_vm1, %v505_v21, 0.0  ;;  %v508_v18 = vmul.f32 %v878_v62, %v878_v62  ;;  %v464_v54 = vsel %vm380_vm1, %v878_v62, 0.0  ;;  %v468_v62 = vsel %vm380_vm1, %v913_v10, 0.0 }
  0xd6   : > { %v441_v37 = vadd.f32 %v440_v35, %v439_v32  ;;  %v540_v38 = vadd.f32 %v539_v34, %v538_v1  ;;  %v561_v34 = vsel %vm380_vm1, %v506_v25, 0.0  ;;  %v462_v35 = vsel %vm380_vm1, %v861_v58, 0.0 }
  0xd7   : > { %v466_v58 = vsel %vm380_vm1, %v895_v2, 0.0  ;;  %v470_v2 = vsel %vm380_vm1, %v940_v33, 0.0 }
  0xd8   : > { %v542_v41 = vadd.f32 %v541_v40, %v540_v38  ;;  %v443_v42 = vadd.f32 %v442_v6, %v441_v37  ;;  %v563_v38 = vsel %vm380_vm1, %v507_v44, 0.0 }
  0xda   : > { %v445_v46 = vadd.f32 %v444_v43, %v443_v42  ;;  %v544_v47 = vadd.f32 %v543_v27, %v542_v41  ;;  %v565_v41 = vsel %vm380_vm1, %v508_v18, 0.0  ;;  %v510_v42 = vmul.f32 %v913_v10, %v913_v10 }
  0xdb   : > { %v567_v27 = vsel %vm380_vm1, %v509_v39, 0.0  ;;  %v472_v10 = vsel %vm380_vm1, %v965_v3, 0.0 }
  0xdc   : > { %v447_v55 = vadd.f32 %v446_v51, %v445_v46  ;;  %v546_v59 = vadd.f32 %v545_v49, %v544_v47  ;;  %v511_v46 = vmul.f32 %v940_v33, %v940_v33  ;;  %v569_v51 = vsel %vm380_vm1, %v510_v42, 0.0 }
  0xdd   : > { %v474_v33 = vsel %vm380_vm1, %v995_v26, 0.0 }
  0xde   : > { %v449_v7 = vadd.f32 %v448_v52, %v447_v55  ;;  %v548_v8 = vadd.f32 %v547_v63, %v546_v59  ;;  %v571_v63 = vsel %vm380_vm1, %v511_v46, 0.0  ;;  %v513_v52 = vmul.f32 %v995_v26, %v995_v26 }
  0xe0   : > { %v550_v11 = vadd.f32 %v549_v50, %v548_v8  ;;  %v451_v12 = vadd.f32 %v450_v56, %v449_v7  ;;  %v573_v8 = vsel %vm380_vm1, %v512_v48, 0.0  ;;  %v575_v9 = vsel %vm380_vm1, %v513_v52, 0.0 }
  0xe2   : > { %v453_v15 = vadd.f32 %v452_v60, %v451_v12  ;;  %v552_v16 = vadd.f32 %v551_v13, %v550_v11 }
  0xe4   : > { %v455_v19 = vadd.f32 %v454_v0, %v453_v15  ;;  %v554_v20 = vadd.f32 %v553_v17, %v552_v16 }
  0xe6   : > { %v556_v22 = vadd.f32 %v555_v57, %v554_v20  ;;  %v457_v24 = vadd.f32 %v456_v4, %v455_v19 }
  0xe8   : > { %v558_v61 = vadd.f32 %v557_v23, %v556_v22  ;;  %v459_v29 = vadd.f32 %v458_v28, %v457_v24 }
  0xea   : > { %v461_v32 = vadd.f32 %v460_v30, %v459_v29  ;;  %v560_v1 = vadd.f32 %v559_v31, %v558_v61 }
  0xec   : > { %v463_v36 = vadd.f32 %v462_v35, %v461_v32  ;;  %v562_v37 = vadd.f32 %v561_v34, %v560_v1 }
  0xee   : > { %v465_v40 = vadd.f32 %v464_v54, %v463_v36  ;;  %v564_v6 = vadd.f32 %v563_v38, %v562_v37 }
  0xf0   : > { %v566_v43 = vadd.f32 %v565_v41, %v564_v6  ;;  %v467_v45 = vadd.f32 %v466_v58, %v465_v40 }
  0xf2   : > { %v469_v47 = vadd.f32 %v468_v62, %v467_v45  ;;  %v568_v49 = vadd.f32 %v567_v27, %v566_v43 }
  0xf4   : > { %v471_v55 = vadd.f32 %v470_v2, %v469_v47  ;;  %v570_v59 = vadd.f32 %v569_v51, %v568_v49 }
  0xf6   : > { %v572_v5 = vadd.f32 %v571_v63, %v570_v59  ;;  %v473_v7 = vadd.f32 %v472_v10, %v471_v55 }
  0xf8   : > { %v574_v50 = vadd.f32 %v573_v8, %v572_v5  ;;  %v475_v56 = vadd.f32 %v474_v33, %v473_v7 }
  0xfa   : > { %v476_v11 = vrot.slane %v475_v56, 4  ;;  %v576_v12 = vadd.f32 %v575_v9, %v574_v50 }
  0xfc   : > { %v477_v13 = vadd.f32 %v476_v11, %v475_v56  ;;  %v577_v3 = vrot.slane %v576_v12, 4 }
  0xfe   : > { %v478_v60 = vrot.slane %v477_v13, 2  ;;  %v578_v14 = vadd.f32 %v577_v3, %v576_v12 }
 0x100   : > { %v479_v15 = vadd.f32 %v478_v60, %v477_v13  ;;  %v579_v16 = vrot.slane %v578_v14, 2 }
 0x102   : > { %v480_v17 = vrot.slane %v479_v15, 1  ;;  %v580_v0 = vadd.f32 %v579_v16, %v578_v14 }
 0x104   : > { %v581_v53 = vrot.slane %v580_v0, 1  ;;  %v481_v26 = vadd.f32 %v480_v17, %v479_v15 }
 0x106   : > { %v582_v19 = vadd.f32 %v581_v53, %v580_v0 }
 0x108   : > { %v584_v20 = vsel %vm583_vm2, %v481_v26, %v582_v19 }
 0x109   : > { %586 = vst.msk [vmem:[%s184_s27] sm:$0x3] %vm585_vm3, %v584_v20 }
 0x10a PF: > { %s14_s12 = sadd.s32 1, %s724_s12  }
 0x10b   : > { %p11_p5 = scmp.ge.s32.totalorder %s14_s12, 4  }
 0x10d   :  { %13 = sbr.rel (!%p11_p5) target bundleno = 1 (0x1), region = 70 }

// kernel: bottleneck_forward.7
= control target key start
LH: loop header
LB: loop body
LE: loop exit
PB: predicated region body
PF: predicated region fallthrough
CT: control target
= control target key end

     0   :  { %s580_s15 = smov 0   ;;  %s846_s0 = inlined_call_operand.vmem [shape: f32[512,16], index: 0, kind: input, shape index: {}, may-alias: {0,4}]   ;;  %s847_s1 = inlined_call_operand.vmem [shape: f32[512,16], index: 1, kind: input, shape index: {}]   ;;  %s848_s2 = inlined_call_operand.vmem [shape: f32[1,16], index: 2, kind: input, shape index: {}]   ;;  %s849_s3 = inlined_call_operand.vmem [shape: f32[1,16], index: 3, kind: input, shape index: {}]   ;;  %s850_s4 = inlined_call_operand.vmem [shape: f32[512,16], index: 4, kind: output, shape index: {}, may-alias: {0,4}]  }
   0x1 LB: > { %s524_s16 = sadd.s32 4294967295, %s553_s15   ;;  %p528_p0 = scmp.ge.s32.totalorder %s553_s15, 1  ;;  %s553_s15 = sphi %s580_s15, %s14_s15  }
   0x2   : > { %p174_p1 = scmp.lt.s32.totalorder %s553_s15, 3 }
   0x4   : > { %p175_p2 = pnand %p528_p0, %p174_p1 }
   0x5   : > { %s529_s17 = sshll.u32 (!%p175_p2), %s524_s16, 5 }
   0x6   : > { %178 = sbr.rel (%p175_p2) target bundleno = 60 (0x3c), region = 36  ;;  %p206_p3 = scmp.lt.s32.totalorder (!%p175_p2), %s529_s17, 63 }
   0xb   : > { %s852_s17 = smov (!%p206_p3, %s529_s17), 63  ;;  %v599_v0 = vld [vmem:[%s848_s2] ss:$0 sm:$0xff]  ;;  %vm423_vm0 = vcmask 130048  }
   0xc   : > { %s588_s18 = sshll.u32 %s852_s17, 3  ;;  %v615_v12 = vld [vmem:[%s849_s3] ss:$0 sm:$0xff] }
   0xd   : > { %s594_s21 = scalar_lea.vmem %s846_s0, %s588_s18  ;;  %s632_s28 = scalar_lea.vmem %s847_s1, %s588_s18 }
   0xe   : > { %v223_v1 = vld [vmem:[%s594_s21] sm:$0xff]  ;;  %v224_v2 = vld [vmem:[%s594_s21 + $0x8] sm:$0xff]  ;;  %v225_v3 = vld [vmem:[%s594_s21 + $0x10] sm:$0xff]  ;;  %s665_s5 = scalar_lea.vmem %s850_s4, %s588_s18 }
   0xf   : > { %v226_v4 = vld [vmem:[%s594_s21 + $0x18] sm:$0xff]  ;;  %v227_v5 = vld [vmem:[%s594_s21 + $0x20] sm:$0xff]  ;;  %v228_v6 = vld [vmem:[%s594_s21 + $0x28] sm:$0xff]  ;;  %v259_v11 = vmul.f32 %v599_v0, %v223_v1  ;;  %v260_v15 = vmul.f32 %v599_v0, %v224_v2  ;;  %v261_v16 = vmul.f32 %v599_v0, %v225_v3 }
  0x10   : > { %v229_v7 = vld [vmem:[%s594_s21 + $0x30] sm:$0xff]  ;;  %v230_v8 = vld [vmem:[%s594_s21 + $0x38] sm:$0xff]  ;;  %v231_v9 = vld [vmem:[%s594_s21 + $0x40] sm:$0xff]  ;;  %v262_v17 = vmul.f32 %v599_v0, %v226_v4  ;;  %v263_v18 = vmul.f32 %v599_v0, %v227_v5  ;;  %v264_v19 = vmul.f32 %v599_v0, %v228_v6 }
  0x11   : > { %v232_v10 = vld [vmem:[%s594_s21 + $0x48] sm:$0xff]  ;;  %v233_v13 = vld [vmem:[%s594_s21 + $0x50] sm:$0xff]  ;;  %v234_v14 = vld [vmem:[%s594_s21 + $0x58] sm:$0xff]  ;;  %v265_v20 = vmul.f32 %v599_v0, %v229_v7  ;;  %v266_v21 = vmul.f32 %v599_v0, %v230_v8  ;;  %v267_v22 = vmul.f32 %v599_v0, %v231_v9  ;;  %v295_v26 = vadd.f32 %v615_v12, %v259_v11 }
  0x12   : > { %v268_v23 = vmul.f32 %v599_v0, %v232_v10  ;;  %v235_v24 = vld [vmem:[%s594_s21 + $0x60] sm:$0xff]  ;;  %v236_v25 = vld [vmem:[%s594_s21 + $0x68] sm:$0xff]  ;;  %v269_v27 = vmul.f32 %v599_v0, %v233_v13  ;;  %v270_v28 = vmul.f32 %v599_v0, %v234_v14  ;;  %v237_v29 = vld [vmem:[%s594_s21 + $0x70] sm:$0xff]  ;;  %v296_v30 = vadd.f32 %v615_v12, %v260_v15 }
  0x13   : > { %v297_v31 = vadd.f32 %v615_v12, %v261_v16  ;;  %v298_v32 = vadd.f32 %v615_v12, %v262_v17  ;;  %v238_v33 = vld [vmem:[%s594_s21 + $0x78] sm:$0xff]  ;;  %v299_v34 = vadd.f32 %v615_v12, %v263_v18  ;;  %v300_v35 = vadd.f32 %v615_v12, %v264_v19  ;;  %v239_v38 = vld [vmem:[%s594_s21 + $0x80] sm:$0xff]  ;;  %v240_v44 = vld [vmem:[%s594_s21 + $0x88] sm:$0xff] }
  0x14   : > { %v301_v36 = vadd.f32 %v615_v12, %v265_v20  ;;  %v302_v37 = vadd.f32 %v615_v12, %v266_v21  ;;  %v327_v39 = vld [vmem:[%s632_s28] sm:$0xff]  ;;  %v303_v40 = vadd.f32 %v615_v12, %v267_v22  ;;  %v304_v41 = vadd.f32 %v615_v12, %v268_v23  ;;  %v328_v46 = vld [vmem:[%s632_s28 + $0x8] sm:$0xff]  ;;  %v329_v47 = vld [vmem:[%s632_s28 + $0x10] sm:$0xff] }
  0x15   : > { %v271_v42 = vmul.f32 %v599_v0, %v235_v24  ;;  %v272_v43 = vmul.f32 %v599_v0, %v236_v25  ;;  %v359_v45 = vadd.f32 %v327_v39, %v295_v26  ;;  %v330_v48 = vld [vmem:[%s632_s28 + $0x18] sm:$0xff]  ;;  %v305_v49 = vadd.f32 %v615_v12, %v269_v27  ;;  %v241_v52 = vld [vmem:[%s594_s21 + $0x90] sm:$0xff]  ;;  %v243_v54 = vld [vmem:[%s594_s21 + $0xa0] sm:$0xff] }
  0x16   : > { %v306_v50 = vadd.f32 %v615_v12, %v270_v28  ;;  %v273_v51 = vmul.f32 %v599_v0, %v237_v29  ;;  %v242_v53 = vld [vmem:[%s594_s21 + $0x98] sm:$0xff]  ;;  %v671_v55 = vld [vmem:[%s594_s21 + $0xa8] sm:$0xff]  ;;  %v674_v56 = vld [vmem:[%s594_s21 + $0xb0] sm:$0xff]  ;;  %v360_v1 = vadd.f32 %v328_v46, %v296_v30  ;;  %v361_v2 = vadd.f32 %v329_v47, %v297_v31 }
  0x17   : > { %v677_v57 = vld [vmem:[%s594_s21 + $0xb8] sm:$0xff]  ;;  %v680_v58 = vld [vmem:[%s594_s21 + $0xc0] sm:$0xff]  ;;  %v683_v59 = vld [vmem:[%s594_s21 + $0xc8] sm:$0xff]  ;;  %v362_v3 = vadd.f32 %v330_v48, %v298_v32  ;;  %v274_v7 = vmul.f32 %v599_v0, %v238_v33  ;;  %v391_v8 = vmax.f32 %v359_v45, 0.0  ;;  %v307_v26 = vadd.f32 %v615_v12, %v271_v42 }
  0x18   : > { %v686_v60 = vld [vmem:[%s594_s21 + $0xd0] sm:$0xff]  ;;  %v689_v61 = vld [vmem:[%s594_s21 + $0xd8] sm:$0xff]  ;;  %v692_v62 = vld [vmem:[%s594_s21 + $0xe0] sm:$0xff]  ;;  %v392_v18 = vmax.f32 %v360_v1, 0.0  ;;  %v393_v19 = vmax.f32 %v361_v2, 0.0  ;;  %v275_v27 = vmul.f32 %v599_v0, %v239_v38  ;;  %v308_v31 = vadd.f32 %v615_v12, %v272_v43 }
  0x19   : > { %v695_v63 = vld [vmem:[%s594_s21 + $0xe8] sm:$0xff]  ;;  %v331_v4 = vld [vmem:[%s632_s28 + $0x20] sm:$0xff]  ;;  %v333_v6 = vld [vmem:[%s632_s28 + $0x30] sm:$0xff]  ;;  %v394_v20 = vmax.f32 %v362_v3, 0.0  ;;  %v276_v32 = vmul.f32 %v599_v0, %v240_v44  ;;  %v278_v42 = vmul.f32 %v599_v0, %v242_v53  ;;  %v279_v47 = vmul.f32 %v599_v0, %v243_v54 }
  0x1a   : > { %v332_v5 = vld [vmem:[%s632_s28 + $0x28] sm:$0xff]  ;;  %v363_v9 = vadd.f32 %v331_v4, %v299_v34  ;;  %v365_v11 = vadd.f32 %v333_v6, %v301_v36  ;;  %v334_v13 = vld [vmem:[%s632_s28 + $0x38] sm:$0xff]  ;;  %v335_v14 = vld [vmem:[%s632_s28 + $0x40] sm:$0xff]  ;;  %v309_v36 = vadd.f32 %v615_v12, %v273_v51  ;;  %v311_v46 = vadd.f32 %v615_v12, %v275_v27 }
  0x1b   : > { %v364_v10 = vadd.f32 %v332_v5, %v300_v35  ;;  %v336_v15 = vld [vmem:[%s632_s28 + $0x48] sm:$0xff]  ;;  %v705_v16 = vld [vmem:[%s594_s21 + $0xf0] sm:$0xff]  ;;  %v708_v17 = vld [vmem:[%s594_s21 + $0xf8] sm:$0xff]  ;;  %v366_v21 = vadd.f32 %v334_v13, %v302_v37  ;;  %v367_v24 = vadd.f32 %v335_v14, %v303_v40  ;;  %v277_v37 = vmul.f32 %v599_v0, %v241_v52 }
  0x1c   : > { %v337_v22 = vld [vmem:[%s632_s28 + $0x50] sm:$0xff]  ;;  %424 = vst.msk [vmem:[%s665_s5] sm:$0xff] %vm423_vm0, %v391_v8  ;;  %v395_v23 = vmax.f32 %v363_v9, 0.0  ;;  %v338_v25 = vld [vmem:[%s632_s28 + $0x58] sm:$0xff]  ;;  %v368_v29 = vadd.f32 %v336_v15, %v304_v41  ;;  %v339_v30 = vld [vmem:[%s632_s28 + $0x60] sm:$0xff]  ;;  %v397_v33 = vmax.f32 %v365_v11, 0.0  ;;  %v310_v41 = vadd.f32 %v615_v12, %v274_v7 }
  0x1d   : > { %425 = vst.msk [vmem:[%s665_s5 + $0x8] sm:$0xff] %vm423_vm0, %v392_v18  ;;  %v396_v28 = vmax.f32 %v364_v10, 0.0  ;;  %v369_v34 = vadd.f32 %v337_v22, %v305_v49  ;;  %v340_v35 = vld [vmem:[%s632_s28 + $0x68] sm:$0xff]  ;;  %v398_v38 = vmax.f32 %v366_v21, 0.0  ;;  %v370_v39 = vadd.f32 %v338_v25, %v306_v50  ;;  %v341_v40 = vld [vmem:[%s632_s28 + $0x70] sm:$0xff]  ;;  %v342_v45 = vld [vmem:[%s632_s28 + $0x78] sm:$0xff] }
  0x1e   : > { %426 = vst.msk [vmem:[%s665_s5 + $0x10] sm:$0xff] %vm423_vm0, %v393_v19  ;;  %v399_v43 = vmax.f32 %v367_v24, 0.0  ;;  %v371_v44 = vadd.f32 %v339_v30, %v307_v26  ;;  %v400_v48 = vmax.f32 %v368_v29, 0.0  ;;  %v372_v49 = vadd.f32 %v340_v35, %v308_v31  ;;  %v343_v50 = vld [vmem:[%s632_s28 + $0x80] sm:$0xff]  ;;  %v344_v2 = vld [vmem:[%s632_s28 + $0x88] sm:$0xff]  ;;  %v345_v6 = vld [vmem:[%s632_s28 + $0x90] sm:$0xff] }
  0x1f   : > { %427 = vst.msk [vmem:[%s665_s5 + $0x18] sm:$0xff] %vm423_vm0, %v394_v20  ;;  %v312_v51 = vadd.f32 %v615_v12, %v276_v32  ;;  %v280_v52 = vmul.f32 %v599_v0, %v671_v55  ;;  %v401_v53 = vmax.f32 %v369_v34, 0.0  ;;  %v373_v1 = vadd.f32 %v341_v40, %v309_v36  ;;  %v346_v10 = vld [vmem:[%s632_s28 + $0x98] sm:$0xff]  ;;  %v347_v15 = vld [vmem:[%s632_s28 + $0xa0] sm:$0xff]  ;;  %v348_v21 = vld [vmem:[%s632_s28 + $0xa8] sm:$0xff] }
  0x20   : > { %428 = vst.msk [vmem:[%s665_s5 + $0x20] sm:$0xff] %vm423_vm0, %v395_v23  ;;  %v313_v54 = vadd.f32 %v615_v12, %v277_v37  ;;  %v281_v3 = vmul.f32 %v599_v0, %v674_v56  ;;  %v402_v4 = vmax.f32 %v370_v39, 0.0  ;;  %v374_v5 = vadd.f32 %v342_v45, %v310_v41  ;;  %v349_v25 = vld [vmem:[%s632_s28 + $0xb0] sm:$0xff]  ;;  %v350_v29 = vld [vmem:[%s632_s28 + $0xb8] sm:$0xff]  ;;  %v352_v37 = vld [vmem:[%s632_s28 + $0xc8] sm:$0xff] }
  0x21   : > { %429 = vst.msk [vmem:[%s665_s5 + $0x28] sm:$0xff] %vm423_vm0, %v396_v28  ;;  %v314_v55 = vadd.f32 %v615_v12, %v278_v42  ;;  %v282_v7 = vmul.f32 %v599_v0, %v677_v57  ;;  %v403_v8 = vmax.f32 %v371_v44, 0.0  ;;  %v375_v9 = vadd.f32 %v343_v50, %v311_v46  ;;  %v353_v41 = vld [vmem:[%s632_s28 + $0xd0] sm:$0xff]  ;;  %v354_v45 = vld [vmem:[%s632_s28 + $0xd8] sm:$0xff]  ;;  %v356_v50 = vld [vmem:[%s632_s28 + $0xe8] sm:$0xff] }
  0x22   : > { %430 = vst.msk [vmem:[%s665_s5 + $0x30] sm:$0xff] %vm423_vm0, %v397_v33  ;;  %v315_v56 = vadd.f32 %v615_v12, %v279_v47  ;;  %v283_v11 = vmul.f32 %v599_v0, %v680_v58  ;;  %v404_v13 = vmax.f32 %v372_v49, 0.0  ;;  %v376_v14 = vadd.f32 %v344_v2, %v312_v51  ;;  %v351_v33 = vld [vmem:[%s632_s28 + $0xc0] sm:$0xff] }
  0x23   : > { %431 = vst.msk [vmem:[%s665_s5 + $0x38] sm:$0xff] %vm423_vm0, %v398_v38  ;;  %v316_v57 = vadd.f32 %v615_v12, %v280_v52  ;;  %v284_v18 = vmul.f32 %v599_v0, %v683_v59  ;;  %v405_v19 = vmax.f32 %v373_v1, 0.0  ;;  %v377_v20 = vadd.f32 %v345_v6, %v313_v54  ;;  %v357_v1 = vld [vmem:[%s632_s28 + $0xf0] sm:$0xff] }
  0x24   : > { %432 = vst.msk [vmem:[%s665_s5 + $0x40] sm:$0xff] %vm423_vm0, %v399_v43  ;;  %v317_v58 = vadd.f32 %v615_v12, %v281_v3  ;;  %v285_v22 = vmul.f32 %v599_v0, %v686_v60  ;;  %v406_v23 = vmax.f32 %v374_v5, 0.0  ;;  %v378_v24 = vadd.f32 %v346_v10, %v314_v55 }
  0x25   : > { %433 = vst.msk [vmem:[%s665_s5 + $0x48] sm:$0xff] %vm423_vm0, %v400_v48  ;;  %v318_v59 = vadd.f32 %v615_v12, %v282_v7  ;;  %v286_v26 = vmul.f32 %v599_v0, %v689_v61  ;;  %v407_v27 = vmax.f32 %v375_v9, 0.0  ;;  %v379_v28 = vadd.f32 %v347_v15, %v315_v56  ;;  %v355_v48 = vld [vmem:[%s632_s28 + $0xe0] sm:$0xff] }
  0x26   : > { %434 = vst.msk [vmem:[%s665_s5 + $0x50] sm:$0xff] %vm423_vm0, %v401_v53  ;;  %v319_v60 = vadd.f32 %v615_v12, %v283_v11  ;;  %v287_v30 = vmul.f32 %v599_v0, %v692_v62  ;;  %v408_v31 = vmax.f32 %v376_v14, 0.0  ;;  %v380_v32 = vadd.f32 %v348_v21, %v316_v57 }
  0x27   : > { %435 = vst.msk [vmem:[%s665_s5 + $0x58] sm:$0xff] %vm423_vm0, %v402_v4  ;;  %v320_v61 = vadd.f32 %v615_v12, %v284_v18  ;;  %v288_v34 = vmul.f32 %v599_v0, %v695_v63  ;;  %v409_v35 = vmax.f32 %v377_v20, 0.0  ;;  %v381_v36 = vadd.f32 %v349_v25, %v317_v58  ;;  %v358_v4 = vld [vmem:[%s632_s28 + $0xf8] sm:$0xff] }
  0x28   : > { %436 = vst.msk [vmem:[%s665_s5 + $0x60] sm:$0xff] %vm423_vm0, %v403_v8  ;;  %v321_v62 = vadd.f32 %v615_v12, %v285_v22  ;;  %v289_v38 = vmul.f32 %v599_v0, %v705_v16  ;;  %v410_v39 = vmax.f32 %v378_v24, 0.0  ;;  %v382_v40 = vadd.f32 %v350_v29, %v318_v59 }
  0x29   : > { %437 = vst.msk [vmem:[%s665_s5 + $0x68] sm:$0xff] %vm423_vm0, %v404_v13  ;;  %v322_v63 = vadd.f32 %v615_v12, %v286_v26  ;;  %v290_v42 = vmul.f32 %v599_v0, %v708_v17  ;;  %v411_v43 = vmax.f32 %v379_v28, 0.0  ;;  %v383_v44 = vadd.f32 %v351_v33, %v319_v60 }
  0x2a   : > { %438 = vst.msk [vmem:[%s665_s5 + $0x70] sm:$0xff] %vm423_vm0, %v405_v19  ;;  %v323_v16 = vadd.f32 %v615_v12, %v287_v30  ;;  %v412_v46 = vmax.f32 %v380_v32, 0.0  ;;  %v384_v47 = vadd.f32 %v352_v37, %v320_v61  ;;  %v324_v49 = vadd.f32 %v615_v12, %v288_v34 }
  0x2b   : > { %439 = vst.msk [vmem:[%s665_s5 + $0x78] sm:$0xff] %vm423_vm0, %v406_v23  ;;  %v413_v0 = vmax.f32 %v381_v36, 0.0  ;;  %v385_v17 = vadd.f32 %v353_v41, %v321_v62  ;;  %v325_v51 = vadd.f32 %v615_v12, %v289_v38  ;;  %v414_v52 = vmax.f32 %v382_v40, 0.0 }
  0x2c   : > { %440 = vst.msk [vmem:[%s665_s5 + $0x80] sm:$0xff] %vm423_vm0, %v407_v27  ;;  %v386_v53 = vadd.f32 %v354_v45, %v322_v63  ;;  %v326_v2 = vadd.f32 %v615_v12, %v290_v42  ;;  %v415_v54 = vmax.f32 %v383_v44, 0.0  ;;  %v387_v3 = vadd.f32 %v355_v48, %v323_v16 }
  0x2d   : > { %441 = vst.msk [vmem:[%s665_s5 + $0x88] sm:$0xff] %vm423_vm0, %v408_v31  ;;  %v416_v5 = vmax.f32 %v384_v47, 0.0  ;;  %v388_v6 = vadd.f32 %v356_v50, %v324_v49  ;;  %v417_v55 = vmax.f32 %v385_v17, 0.0  ;;  %v389_v12 = vadd.f32 %v357_v1, %v325_v51 }
  0x2e   : > { %442 = vst.msk [vmem:[%s665_s5 + $0x90] sm:$0xff] %vm423_vm0, %v409_v35  ;;  %v418_v7 = vmax.f32 %v386_v53, 0.0  ;;  %v390_v8 = vadd.f32 %v358_v4, %v326_v2  ;;  %v419_v9 = vmax.f32 %v387_v3, 0.0 }
  0x2f   : > { %443 = vst.msk [vmem:[%s665_s5 + $0x98] sm:$0xff] %vm423_vm0, %v410_v39  ;;  %v420_v10 = vmax.f32 %v388_v6, 0.0  ;;  %v421_v56 = vmax.f32 %v389_v12, 0.0 }
  0x30   : > { %444 = vst.msk [vmem:[%s665_s5 + $0xa0] sm:$0xff] %vm423_vm0, %v411_v43  ;;  %v422_v11 = vmax.f32 %v390_v8, 0.0 }
  0x31   : > { %445 = vst.msk [vmem:[%s665_s5 + $0xa8] sm:$0xff] %vm423_vm0, %v412_v46 }
  0x32   : > { %446 = vst.msk [vmem:[%s665_s5 + $0xb0] sm:$0xff] %vm423_vm0, %v413_v0 }
  0x33   : > { %447 = vst.msk [vmem:[%s665_s5 + $0xb8] sm:$0xff] %vm423_vm0, %v414_v52 }
  0x34   : > { %448 = vst.msk [vmem:[%s665_s5 + $0xc0] sm:$0xff] %vm423_vm0, %v415_v54 }
  0x35   : > { %449 = vst.msk [vmem:[%s665_s5 + $0xc8] sm:$0xff] %vm423_vm0, %v416_v5 }
  0x36   : > { %450 = vst.msk [vmem:[%s665_s5 + $0xd0] sm:$0xff] %vm423_vm0, %v417_v55 }
  0x37   : > { %451 = vst.msk [vmem:[%s665_s5 + $0xd8] sm:$0xff] %vm423_vm0, %v418_v7 }
  0x38   : > { %452 = vst.msk [vmem:[%s665_s5 + $0xe0] sm:$0xff] %vm423_vm0, %v419_v9 }
  0x39   : > { %453 = vst.msk [vmem:[%s665_s5 + $0xe8] sm:$0xff] %vm423_vm0, %v420_v10 }
  0x3a   : > { %454 = vst.msk [vmem:[%s665_s5 + $0xf0] sm:$0xff] %vm423_vm0, %v421_v56 }
  0x3b   : > { %455 = vst.msk [vmem:[%s665_s5 + $0xf8] sm:$0xff] %vm423_vm0, %v422_v11 }
  0x3c PF: > { %s14_s15 = sadd.s32 1, %s553_s15  }
  0x3d   : > { %p11_p4 = scmp.ge.s32.totalorder %s14_s15, 4  }
  0x3f   :  { %13 = sbr.rel (!%p11_p4) target bundleno = 1 (0x1), region = 69 }

// kernel: bottleneck_forward.6
= control target key start
LH: loop header
LB: loop body
LE: loop exit
PB: predicated region body
PF: predicated region fallthrough
CT: control target
= control target key end

     0   :  { %s908_s18 = smov 0   ;;  %s1335_s0 = inlined_call_operand.vmem [shape: f32[512,4], index: 0, kind: input, shape index: {}]   ;;  %s1336_s1 = inlined_call_operand.vmem [shape: bf16[4,16], index: 1, kind: input, shape index: {}]   ;;  %s1337_s2 = inlined_call_operand.vmem [shape: f32[1,4], index: 2, kind: input, shape index: {}]   ;;  %s1338_s3 = inlined_call_operand.vmem [shape: f32[1,4], index: 3, kind: input, shape index: {}]   ;;  %s1339_s4 = inlined_call_operand.vmem [shape: f32[512,16], index: 4, kind: output, shape index: {0}]   ;;  %s1340_s5 = inlined_call_operand.vmem [shape: f32[2,2,16], index: 5, kind: output, shape index: {1}]  }
   0x1 LB: > { %s914_s19 = sadd.s32 4294967295, %s876_s18   ;;  %p833_p0 = scmp.ge.s32.totalorder %s876_s18, 1  ;;  %s876_s18 = sphi %s908_s18, %s16_s18  }
   0x2   : > { %p191_p1 = scmp.lt.s32.totalorder %s876_s18, 3 }
   0x4   : > { %p192_p2 = pnand %p833_p0, %p191_p1 }
   0x5   : > { %s834_s22 = sshll.u32 (!%p192_p2), %s914_s19, 5  ;;  %p235_p4 = scmp.lt.s32.totalorder (!%p192_p2), %s914_s19, 1 }
   0x6   : > { %195 = sbr.rel (%p192_p2) target bundleno = 272 (0x110), region = 36  ;;  %p224_p3 = scmp.lt.s32.totalorder (!%p192_p2), %s834_s22, 63 }
   0xb   : > { %v392_v0 = vld [vmem:[%s1336_s1] sm:$0x3]  ;;  %vm442_vm0 = vcmask 1041408   ;;  %s1342_s22 = smov (!%p224_p3, %s834_s22), 63  ;;  %vm393_vm1 = vcmask 31744   ;;  %vm535_vm2 = vcmask 130048  }
   0xc   : > { %v444_v1 = vsel %vm442_vm0, %v392_v0, 0  ;;  %v927_v2 = vld [vmem:[%s1337_s2] ss:$0 sm:$0xff]  ;;  %s835_s25 = sshll.u32 %s1342_s22, 3  ;;  %s1344_s19 = smov (!%p235_p4, %s914_s19), 1  ;;  %vm738_vm3 = vcmask 1040384  }
   0xd   : > { %453 = vmatpush.bf16.msra.mxu0 %v444_v1  ;;  %857 = vmatpush.bf16.msra.mxu1 %v444_v1  ;;  %s935_s28 = scalar_lea.vmem %s1335_s0, %s835_s25  ;;  %v940_v3 = vld [vmem:[%s1338_s3] ss:$0 sm:$0xff]  ;;  %s1059_s8 = scalar_lea.vmem %s1339_s4, %s835_s25  ;;  %vm740_vm4 = vcmask 123904  }
   0xe   : > { %858 = vmatpush.bf16.msra.mxu2 %v444_v1  ;;  %859 = vmatpush.bf16.msra.mxu3 %v444_v1  ;;  %v240_v4 = vld [vmem:[%s935_s28] sm:$0xff]  ;;  %v241_v5 = vld [vmem:[%s935_s28 + $0x8] sm:$0xff]  ;;  %v242_v25 = vld [vmem:[%s935_s28 + $0x10] sm:$0xff]  ;;  %s838_s9 = sshll.u32 %s1344_s19, 1 }
   0xf   : > { %v248_v6 = vld [vmem:[%s935_s28 + $0x40] sm:$0xff]  ;;  %v276_v7 = vmul.f32 %v927_v2, %v240_v4  ;;  %v277_v8 = vmul.f32 %v927_v2, %v241_v5  ;;  %v249_v9 = vld [vmem:[%s935_s28 + $0x48] sm:$0xff]  ;;  %v243_v26 = vld [vmem:[%s935_s28 + $0x18] sm:$0xff]  ;;  %v278_v35 = vmul.f32 %v927_v2, %v242_v25  ;;  %s238_s12 = scalar_lea.vmem %s1340_s5, %s838_s9 }
  0x10   : > { %v284_v10 = vmul.f32 %v927_v2, %v248_v6  ;;  %v285_v11 = vmul.f32 %v927_v2, %v249_v9  ;;  %v256_v12 = vld [vmem:[%s935_s28 + $0x80] sm:$0xff]  ;;  %v257_v13 = vld [vmem:[%s935_s28 + $0x88] sm:$0xff]  ;;  %v250_v30 = vld [vmem:[%s935_s28 + $0x50] sm:$0xff]  ;;  %v279_v36 = vmul.f32 %v927_v2, %v243_v26 }
  0x11   : > { %v312_v14 = vadd.f32 %v940_v3, %v276_v7  ;;  %v313_v15 = vadd.f32 %v940_v3, %v277_v8  ;;  %v292_v17 = vmul.f32 %v927_v2, %v256_v12  ;;  %v293_v19 = vmul.f32 %v927_v2, %v257_v13  ;;  %v251_v31 = vld [vmem:[%s935_s28 + $0x58] sm:$0xff]  ;;  %v264_v32 = vld [vmem:[%s935_s28 + $0xc0] sm:$0xff]  ;;  %v258_v37 = vld [vmem:[%s935_s28 + $0x90] sm:$0xff] }
  0x12   : > { %v320_v16 = vadd.f32 %v940_v3, %v284_v10  ;;  %v321_v18 = vadd.f32 %v940_v3, %v285_v11  ;;  %v259_v38 = vld [vmem:[%s935_s28 + $0x98] sm:$0xff]  ;;  %v265_v39 = vld [vmem:[%s935_s28 + $0xc8] sm:$0xff]  ;;  %v286_v41 = vmul.f32 %v927_v2, %v250_v30  ;;  %v287_v42 = vmul.f32 %v927_v2, %v251_v31  ;;  %v266_v62 = vld [vmem:[%s935_s28 + $0xd0] sm:$0xff] }
  0x13   : > { %v344_v20 = vmax.f32 %v312_v14, 0.0  ;;  %v345_v21 = vmax.f32 %v313_v15, 0.0  ;;  %v328_v23 = vadd.f32 %v940_v3, %v292_v17  ;;  %v329_v27 = vadd.f32 %v940_v3, %v293_v19  ;;  %v267_v63 = vld [vmem:[%s935_s28 + $0xd8] sm:$0xff]  ;;  %v244_v8 = vld [vmem:[%s935_s28 + $0x20] sm:$0xff]  ;;  %v245_v9 = vld [vmem:[%s935_s28 + $0x28] sm:$0xff] }
  0x14   : > { %v352_v22 = vmax.f32 %v320_v16, 0.0  ;;  %v353_v24 = vmax.f32 %v321_v18, 0.0  ;;  %v300_v43 = vmul.f32 %v927_v2, %v264_v32  ;;  %v294_v44 = vmul.f32 %v927_v2, %v258_v37  ;;  %v252_v10 = vld [vmem:[%s935_s28 + $0x60] sm:$0xff]  ;;  %v253_v11 = vld [vmem:[%s935_s28 + $0x68] sm:$0xff] }
  0x15   : > { %v376_v28 = vpack.c.bf16 %v345_v21, %v344_v20  ;;  %v360_v29 = vmax.f32 %v328_v23, 0.0  ;;  %v361_v34 = vmax.f32 %v329_v27, 0.0  ;;  %v295_v45 = vmul.f32 %v927_v2, %v259_v38  ;;  %v260_v17 = vld [vmem:[%s935_s28 + $0xa0] sm:$0xff]  ;;  %v261_v18 = vld [vmem:[%s935_s28 + $0xa8] sm:$0xff] }
  0x16   : > { %v380_v33 = vpack.c.bf16 %v353_v24, %v352_v22  ;;  %v301_v46 = vmul.f32 %v927_v2, %v265_v39  ;;  %v336_v47 = vadd.f32 %v940_v3, %v300_v43  ;;  %v314_v48 = vadd.f32 %v940_v3, %v278_v35  ;;  %v269_v35 = vld [vmem:[%s935_s28 + $0xe8] sm:$0xff] }
  0x17   : > { %839 = vmatmul.msk.bf16.vlgmr.msra.gmra.mxu0 %vm393_vm1, %v376_v28  ;;  %v384_v40 = vpack.c.bf16 %v361_v34, %v360_v29  ;;  %v315_v49 = vadd.f32 %v940_v3, %v279_v36  ;;  %v322_v50 = vadd.f32 %v940_v3, %v286_v41  ;;  %v323_v51 = vadd.f32 %v940_v3, %v287_v42  ;;  %v268_v34 = vld [vmem:[%s935_s28 + $0xe0] sm:$0xff] }
  0x18   : > { %843 = vmatmul.msk.bf16.vlgmr.msra.gmra.mxu1 %vm393_vm1, %v380_v33  ;;  %v337_v52 = vadd.f32 %v940_v3, %v301_v46  ;;  %v368_v53 = vmax.f32 %v336_v47, 0.0  ;;  %v330_v54 = vadd.f32 %v940_v3, %v294_v44  ;;  %v331_v55 = vadd.f32 %v940_v3, %v295_v45  ;;  %v246_v44 = vld [vmem:[%s935_s28 + $0x30] sm:$0xff]  ;;  %v247_v45 = vld [vmem:[%s935_s28 + $0x38] sm:$0xff] }
  0x19   : > { %847 = vmatmul.msk.bf16.vlgmr.msra.gmra.mxu2 %vm393_vm1, %v384_v40  ;;  %v346_v57 = vmax.f32 %v314_v48, 0.0  ;;  %v347_v58 = vmax.f32 %v315_v49, 0.0  ;;  %v354_v59 = vmax.f32 %v322_v50, 0.0  ;;  %v355_v60 = vmax.f32 %v323_v51, 0.0  ;;  %v254_v46 = vld [vmem:[%s935_s28 + $0x70] sm:$0xff]  ;;  %v255_v47 = vld [vmem:[%s935_s28 + $0x78] sm:$0xff] }
  0x1a   : > { %v369_v56 = vmax.f32 %v337_v52, 0.0  ;;  %v362_v0 = vmax.f32 %v330_v54, 0.0  ;;  %v363_v1 = vmax.f32 %v331_v55, 0.0  ;;  %v302_v4 = vmul.f32 %v927_v2, %v266_v62  ;;  %v263_v54 = vld [vmem:[%s935_s28 + $0xb8] sm:$0xff] }
  0x1b   : > { %v303_v5 = vmul.f32 %v927_v2, %v267_v63  ;;  %v377_v6 = vpack.c.bf16 %v347_v58, %v346_v57  ;;  %v381_v7 = vpack.c.bf16 %v355_v60, %v354_v59  ;;  %v280_v15 = vmul.f32 %v927_v2, %v244_v8  ;;  %v270_v8 = vld [vmem:[%s935_s28 + $0xf0] sm:$0xff] }
  0x1c   : > { %v388_v61 = vpack.c.bf16 %v369_v56, %v368_v53  ;;  %v385_v12 = vpack.c.bf16 %v363_v1, %v362_v0  ;;  %v338_v13 = vadd.f32 %v940_v3, %v302_v4  ;;  %v281_v16 = vmul.f32 %v927_v2, %v245_v9  ;;  %v262_v53 = vld [vmem:[%s935_s28 + $0xb0] sm:$0xff]  ;;  %v271_v9 = vld [vmem:[%s935_s28 + $0xf8] sm:$0xff] }
  0x1d   : > { %v339_v14 = vadd.f32 %v940_v3, %v303_v5  ;;  %v288_v19 = vmul.f32 %v927_v2, %v252_v10  ;;  %v289_v20 = vmul.f32 %v927_v2, %v253_v11  ;;  %v296_v21 = vmul.f32 %v927_v2, %v260_v17 }
  0x1e   : > { %851 = vmatmul.msk.bf16.vlgmr.msra.gmra.mxu3 %vm393_vm1, %v388_v61  ;;  %v297_v22 = vmul.f32 %v927_v2, %v261_v18  ;;  %v370_v23 = vmax.f32 %v338_v13, 0.0  ;;  %v316_v25 = vadd.f32 %v940_v3, %v280_v15  ;;  %v317_v26 = vadd.f32 %v940_v3, %v281_v16 }
  0x1f   : > { %v371_v24 = vmax.f32 %v339_v14, 0.0  ;;  %v324_v27 = vadd.f32 %v940_v3, %v288_v19  ;;  %v325_v28 = vadd.f32 %v940_v3, %v289_v20  ;;  %v332_v29 = vadd.f32 %v940_v3, %v296_v21 }
  0x20   : > { %v333_v30 = vadd.f32 %v940_v3, %v297_v22  ;;  %v348_v32 = vmax.f32 %v316_v25, 0.0  ;;  %v349_v33 = vmax.f32 %v317_v26, 0.0  ;;  %v304_v40 = vmul.f32 %v927_v2, %v268_v34 }
  0x21   : > { %v389_v31 = vpack.c.bf16 %v371_v24, %v370_v23  ;;  %v356_v36 = vmax.f32 %v324_v27, 0.0  ;;  %v357_v37 = vmax.f32 %v325_v28, 0.0  ;;  %v364_v38 = vmax.f32 %v332_v29, 0.0 }
  0x22   : > { %v365_v39 = vmax.f32 %v333_v30, 0.0  ;;  %v305_v41 = vmul.f32 %v927_v2, %v269_v35  ;;  %v378_v42 = vpack.c.bf16 %v349_v33, %v348_v32  ;;  %v340_v49 = vadd.f32 %v940_v3, %v304_v40 }
  0x23   : > { %v382_v43 = vpack.c.bf16 %v357_v37, %v356_v36  ;;  %v282_v51 = vmul.f32 %v927_v2, %v246_v44  ;;  %v283_v52 = vmul.f32 %v927_v2, %v247_v45  ;;  %v290_v55 = vmul.f32 %v927_v2, %v254_v46 }
  0x24   : > { %v386_v48 = vpack.c.bf16 %v365_v39, %v364_v38  ;;  %v341_v50 = vadd.f32 %v940_v3, %v305_v41  ;;  %v291_v56 = vmul.f32 %v927_v2, %v255_v47  ;;  %v298_v57 = vmul.f32 %v927_v2, %v262_v53 }
  0x25   : > { %v299_v58 = vmul.f32 %v927_v2, %v263_v54  ;;  %v372_v59 = vmax.f32 %v340_v49, 0.0  ;;  %v318_v61 = vadd.f32 %v940_v3, %v282_v51  ;;  %v319_v62 = vadd.f32 %v940_v3, %v283_v52 }
  0x26   : > { %v373_v60 = vmax.f32 %v341_v50, 0.0  ;;  %v326_v63 = vadd.f32 %v940_v3, %v290_v55  ;;  %v327_v0 = vadd.f32 %v940_v3, %v291_v56  ;;  %v334_v1 = vadd.f32 %v940_v3, %v298_v57 }
  0x27   : > { %840 = vmatmul.msk.bf16.gmra.mxu0 %vm393_vm1, %v377_v6  ;;  %v335_v4 = vadd.f32 %v940_v3, %v299_v58  ;;  %v350_v6 = vmax.f32 %v318_v61, 0.0  ;;  %v306_v14 = vmul.f32 %v927_v2, %v270_v8  ;;  %v307_v15 = vmul.f32 %v927_v2, %v271_v9 }
  0x28   : > { %844 = vmatmul.msk.bf16.gmra.mxu1 %vm393_vm1, %v381_v7  ;;  %v390_v5 = vpack.c.bf16 %v373_v60, %v372_v59  ;;  %v351_v7 = vmax.f32 %v319_v62, 0.0  ;;  %v358_v10 = vmax.f32 %v326_v63, 0.0  ;;  %v359_v11 = vmax.f32 %v327_v0, 0.0 }
  0x29   : > { %848 = vmatmul.msk.bf16.gmra.mxu2 %vm393_vm1, %v385_v12  ;;  %v366_v12 = vmax.f32 %v334_v1, 0.0  ;;  %v367_v13 = vmax.f32 %v335_v4, 0.0  ;;  %v342_v19 = vadd.f32 %v940_v3, %v306_v14  ;;  %v343_v20 = vadd.f32 %v940_v3, %v307_v15 }
  0x2a   : > { %v379_v16 = vpack.c.bf16 %v351_v7, %v350_v6  ;;  %v383_v17 = vpack.c.bf16 %v359_v11, %v358_v10 }
  0x2b   : > { %v387_v18 = vpack.c.bf16 %v367_v13, %v366_v12  ;;  %v374_v21 = vmax.f32 %v342_v19, 0.0  ;;  %v375_v22 = vmax.f32 %v343_v20, 0.0 }
  0x2d   : > { %v391_v23 = vpack.c.bf16 %v375_v22, %v374_v21 }
  0x2e   : > { %852 = vmatmul.msk.bf16.gmra.mxu3 %vm393_vm1, %v389_v31 }
  0x37   : > { %841 = vmatmul.msk.bf16.gmra.mxu0 %vm393_vm1, %v378_v42 }
  0x38   : > { %845 = vmatmul.msk.bf16.gmra.mxu1 %vm393_vm1, %v382_v43 }
  0x39   : > { %849 = vmatmul.msk.bf16.gmra.mxu2 %vm393_vm1, %v386_v48 }
  0x3e   : > { %853 = vmatmul.msk.bf16.gmra.mxu3 %vm393_vm1, %v390_v5 }
  0x47   : > { %842 = vmatmul.msk.bf16.gmra.mxu0 %vm393_vm1, %v379_v16 }
  0x48   : > { %846 = vmatmul.msk.bf16.gmra.mxu1 %vm393_vm1, %v383_v17 }
  0x49   : > { %850 = vmatmul.msk.bf16.gmra.mxu2 %vm393_vm1, %v387_v18 }
  0x4e   : > { %854 = vmatmul.msk.bf16.gmra.mxu3 %vm393_vm1, %v391_v23 }
  0x94   : > { %v455_v2 = vpop.f32.mrf.mxu0 }
  0x95   : > { %536 = vst.msk [vmem:[%s1059_s8] sm:$0xff] %vm535_vm2, %v455_v2  ;;  %v1063_v3 = vpop.f32.mrf.mxu1  ;;  %v637_v44 = vmul.f32 %v455_v2, %v455_v2  ;;  %v568_v47 = vsel %vm535_vm2, %v455_v2, 0.0 }
  0x96   : > { %544 = vst.msk [vmem:[%s1059_s8 + $0x40] sm:$0xff] %vm535_vm2, %v1063_v3  ;;  %v645_v18 = vmul.f32 %v1063_v3, %v1063_v3 }
  0x97   : > { %v669_v52 = vsel %vm535_vm2, %v637_v44, 0.0 }
  0x98   : > { %v684_v44 = vsel %vm535_vm2, %v645_v18, 0.0 }
  0x9c   : > { %v457_v24 = vpop.f32.mrf.mxu0  ;;  %v1072_v26 = vpop.f32.mrf.mxu2 }
  0x9d   : > { %537 = vst.msk [vmem:[%s1059_s8 + $0x8] sm:$0xff] %vm535_vm2, %v457_v24  ;;  %v1070_v25 = vpop.f32.mrf.mxu1  ;;  %v638_v40 = vmul.f32 %v457_v24, %v457_v24  ;;  %v569_v45 = vsel %vm535_vm2, %v457_v24, 0.0 }
  0x9e   : > { %545 = vst.msk [vmem:[%s1059_s8 + $0x48] sm:$0xff] %vm535_vm2, %v1070_v25  ;;  %v570_v51 = vadd.f32 %v569_v45, %v568_v47  ;;  %v585_v45 = vsel %vm535_vm2, %v1070_v25, 0.0 }
  0x9f   : > { %552 = vst.msk [vmem:[%s1059_s8 + $0x80] sm:$0xff] %vm535_vm2, %v1072_v26  ;;  %v670_v48 = vsel %vm535_vm2, %v638_v40, 0.0 }
  0xa0   : > { %v671_v56 = vadd.f32 %v670_v48, %v669_v52 }
  0xa1   : > { %v1089_v30 = vpop.f32.mrf.mxu3 }
  0xa2   : > { %560 = vst.msk [vmem:[%s1059_s8 + $0xc0] sm:$0xff] %vm535_vm2, %v1089_v30 }
  0xa4   : > { %v460_v27 = vpop.f32.mrf.mxu0  ;;  %v1084_v29 = vpop.f32.mrf.mxu2 }
  0xa5   : > { %538 = vst.msk [vmem:[%s1059_s8 + $0x10] sm:$0xff] %vm535_vm2, %v460_v27  ;;  %v1082_v28 = vpop.f32.mrf.mxu1  ;;  %v639_v46 = vmul.f32 %v460_v27, %v460_v27  ;;  %v571_v49 = vsel %vm535_vm2, %v460_v27, 0.0  ;;  %v583_v27 = vsel %vm535_vm2, %v1063_v3, 0.0 }
  0xa6   : > { %546 = vst.msk [vmem:[%s1059_s8 + $0x50] sm:$0xff] %vm535_vm2, %v1082_v28  ;;  %v572_v57 = vadd.f32 %v571_v49, %v570_v51  ;;  %v647_v3 = vmul.f32 %v1082_v28, %v1082_v28  ;;  %v587_v49 = vsel %vm535_vm2, %v1082_v28, 0.0 }
  0xa7   : > { %553 = vst.msk [vmem:[%s1059_s8 + $0x88] sm:$0xff] %vm535_vm2, %v1084_v29  ;;  %v672_v53 = vsel %vm535_vm2, %v639_v46, 0.0 }
  0xa8   : > { %v673_v0 = vadd.f32 %v672_v53, %v671_v56  ;;  %v688_v53 = vsel %vm535_vm2, %v647_v3, 0.0 }
  0xa9   : > { %v1106_v34 = vpop.f32.mrf.mxu3 }
  0xaa   : > { %561 = vst.msk [vmem:[%s1059_s8 + $0xc8] sm:$0xff] %vm535_vm2, %v1106_v34 }
  0xac   : > { %v462_v31 = vpop.f32.mrf.mxu0  ;;  %v1101_v33 = vpop.f32.mrf.mxu2 }
  0xad   : > { %539 = vst.msk [vmem:[%s1059_s8 + $0x18] sm:$0xff] %vm535_vm2, %v462_v31  ;;  %v1099_v32 = vpop.f32.mrf.mxu1  ;;  %v640_v50 = vmul.f32 %v462_v31, %v462_v31  ;;  %v573_v54 = vsel %vm535_vm2, %v462_v31, 0.0  ;;  %v646_v31 = vmul.f32 %v1070_v25, %v1070_v25 }
  0xae   : > { %547 = vst.msk [vmem:[%s1059_s8 + $0x58] sm:$0xff] %vm535_vm2, %v1099_v32  ;;  %v574_v1 = vadd.f32 %v573_v54, %v572_v57  ;;  %v589_v25 = vsel %vm535_vm2, %v1099_v32, 0.0 }
  0xaf   : > { %554 = vst.msk [vmem:[%s1059_s8 + $0x90] sm:$0xff] %vm535_vm2, %v1101_v33  ;;  %v674_v59 = vsel %vm535_vm2, %v640_v50, 0.0  ;;  %v686_v48 = vsel %vm535_vm2, %v646_v31, 0.0  ;;  %v648_v50 = vmul.f32 %v1099_v32, %v1099_v32 }
  0xb0   : > { %v675_v8 = vadd.f32 %v674_v59, %v673_v0 }
  0xb1   : > { %v1123_v38 = vpop.f32.mrf.mxu3 }
  0xb2   : > { %562 = vst.msk [vmem:[%s1059_s8 + $0xd0] sm:$0xff] %vm535_vm2, %v1123_v38 }
  0xb4   : > { %v465_v35 = vpop.f32.mrf.mxu0  ;;  %v1118_v37 = vpop.f32.mrf.mxu2 }
  0xb5   : > { %540 = vst.msk [vmem:[%s1059_s8 + $0x20] sm:$0xff] %vm535_vm2, %v465_v35  ;;  %v1116_v36 = vpop.f32.mrf.mxu1  ;;  %v641_v55 = vmul.f32 %v465_v35, %v465_v35  ;;  %v575_v60 = vsel %vm535_vm2, %v465_v35, 0.0 }
  0xb6   : > { %548 = vst.msk [vmem:[%s1059_s8 + $0x60] sm:$0xff] %vm535_vm2, %v1116_v36  ;;  %v576_v9 = vadd.f32 %v575_v60, %v574_v1  ;;  %v649_v54 = vmul.f32 %v1116_v36, %v1116_v36  ;;  %v591_v59 = vsel %vm535_vm2, %v1116_v36, 0.0 }
  0xb7   : > { %555 = vst.msk [vmem:[%s1059_s8 + $0x98] sm:$0xff] %vm535_vm2, %v1118_v37  ;;  %v676_v5 = vsel %vm535_vm2, %v641_v55, 0.0 }
  0xb8   : > { %v677_v12 = vadd.f32 %v676_v5, %v675_v8  ;;  %v692_v0 = vsel %vm535_vm2, %v649_v54, 0.0 }
  0xb9   : > { %v1140_v43 = vpop.f32.mrf.mxu3 }
  0xba   : > { %563 = vst.msk [vmem:[%s1059_s8 + $0xd8] sm:$0xff] %vm535_vm2, %v1140_v43 }
  0xbc   : > { %v467_v39 = vpop.f32.mrf.mxu0  ;;  %v1135_v42 = vpop.f32.mrf.mxu2 }
  0xbd   : > { %541 = vst.msk [vmem:[%s1059_s8 + $0x28] sm:$0xff] %vm535_vm2, %v467_v39  ;;  %v1133_v41 = vpop.f32.mrf.mxu1  ;;  %v642_v61 = vmul.f32 %v467_v39, %v467_v39  ;;  %v577_v6 = vsel %vm535_vm2, %v467_v39, 0.0  ;;  %v657_v3 = vmul.f32 %v1135_v42, %v1135_v42 }
  0xbe   : > { %549 = vst.msk [vmem:[%s1059_s8 + $0x68] sm:$0xff] %vm535_vm2, %v1133_v41  ;;  %v578_v13 = vadd.f32 %v577_v6, %v576_v9  ;;  %v650_v32 = vmul.f32 %v1133_v41, %v1133_v41  ;;  %v593_v1 = vsel %vm535_vm2, %v1133_v41, 0.0 }
  0xbf   : > { %556 = vst.msk [vmem:[%s1059_s8 + $0xa0] sm:$0xff] %vm535_vm2, %v1135_v42  ;;  %v678_v10 = vsel %vm535_vm2, %v642_v61, 0.0 }
  0xc0   : > { %v679_v15 = vadd.f32 %v678_v10, %v677_v12  ;;  %v694_v36 = vsel %vm535_vm2, %v650_v32, 0.0  ;;  %v653_v12 = vmul.f32 %v1072_v26, %v1072_v26  ;;  %v661_v32 = vmul.f32 %v1089_v30, %v1089_v30 }
  0xc1   : > { %v1166_v4 = vpop.f32.mrf.mxu3 }
  0xc2   : > { %564 = vst.msk [vmem:[%s1059_s8 + $0xe0] sm:$0xff] %vm535_vm2, %v1166_v4 }
  0xc4   : > { %v470_v58 = vpop.f32.mrf.mxu0  ;;  %v1161_v63 = vpop.f32.mrf.mxu2 }
  0xc5   : > { %542 = vst.msk [vmem:[%s1059_s8 + $0x30] sm:$0xff] %vm535_vm2, %v470_v58  ;;  %v1159_v62 = vpop.f32.mrf.mxu1  ;;  %v643_v7 = vmul.f32 %v470_v58, %v470_v58  ;;  %v579_v11 = vsel %vm535_vm2, %v470_v58, 0.0  ;;  %v690_v58 = vsel %vm535_vm2, %v648_v50, 0.0 }
  0xc6   : > { %550 = vst.msk [vmem:[%s1059_s8 + $0x70] sm:$0xff] %vm535_vm2, %v1159_v62  ;;  %v580_v16 = vadd.f32 %v579_v11, %v578_v13  ;;  %v651_v5 = vmul.f32 %v1159_v62, %v1159_v62  ;;  %v595_v8 = vsel %vm535_vm2, %v1159_v62, 0.0  ;;  %v654_v62 = vmul.f32 %v1084_v29, %v1084_v29 }
  0xc7   : > { %557 = vst.msk [vmem:[%s1059_s8 + $0xa8] sm:$0xff] %vm535_vm2, %v1161_v63  ;;  %v680_v14 = vsel %vm535_vm2, %v643_v7, 0.0 }
  0xc8   : > { %v681_v23 = vadd.f32 %v680_v14, %v679_v15  ;;  %v696_v13 = vsel %vm535_vm2, %v651_v5, 0.0  ;;  %v702_v31 = vsel %vm535_vm2, %v654_v62, 0.0 }
  0xc9   : > { %v1188_v24 = vpop.f32.mrf.mxu3 }
  0xca   : > { %565 = vst.msk [vmem:[%s1059_s8 + $0xe8] sm:$0xff] %vm535_vm2, %v1188_v24 }
  0xcc   : > { %v472_v17 = vpop.f32.mrf.mxu0  ;;  %v1184_v22 = vpop.f32.mrf.mxu2 }
  0xcd   : > { %543 = vst.msk [vmem:[%s1059_s8 + $0x38] sm:$0xff] %vm535_vm2, %v472_v17  ;;  %v581_v19 = vsel %vm535_vm2, %v472_v17, 0.0  ;;  %v644_v20 = vmul.f32 %v472_v17, %v472_v17  ;;  %v492_v21 = vpop.f32.mrf.mxu1  ;;  %v599_v17 = vsel %vm535_vm2, %v1072_v26, 0.0 }
  0xce   : > { %v582_v2 = vadd.f32 %v581_v19, %v580_v16  ;;  %551 = vst.msk [vmem:[%s1059_s8 + $0x78] sm:$0xff] %vm535_vm2, %v492_v21  ;;  %v652_v9 = vmul.f32 %v492_v21, %v492_v21  ;;  %v597_v41 = vsel %vm535_vm2, %v492_v21, 0.0  ;;  %v601_v21 = vsel %vm535_vm2, %v1084_v29, 0.0 }
  0xcf   : > { %v682_v35 = vsel %vm535_vm2, %v644_v20, 0.0  ;;  %558 = vst.msk [vmem:[%s1059_s8 + $0xb0] sm:$0xff] %vm535_vm2, %v1184_v22  ;;  %v605_v29 = vsel %vm535_vm2, %v1118_v37, 0.0 }
  0xd0   : > { %v584_v39 = vadd.f32 %v583_v27, %v582_v2  ;;  %v683_v40 = vadd.f32 %v682_v35, %v681_v23  ;;  %v698_v18 = vsel %vm535_vm2, %v652_v9, 0.0  ;;  %v700_v23 = vsel %vm535_vm2, %v653_v12, 0.0 }
  0xd1   : > { %v1221_v28 = vpop.f32.mrf.mxu3  ;;  %v655_v2 = vmul.f32 %v1101_v33, %v1101_v33  ;;  %v603_v35 = vsel %vm535_vm2, %v1101_v33, 0.0  ;;  %v607_v33 = vsel %vm535_vm2, %v1135_v42, 0.0  ;;  %v611_v42 = vsel %vm535_vm2, %v1184_v22, 0.0 }
  0xd2   : > { %v586_v46 = vadd.f32 %v585_v45, %v584_v39  ;;  %v685_v47 = vadd.f32 %v684_v44, %v683_v40  ;;  %566 = vst.msk [vmem:[%s1059_s8 + $0xf0] sm:$0xff] %vm535_vm2, %v1221_v28  ;;  %v656_v39 = vmul.f32 %v1118_v37, %v1118_v37  ;;  %v609_v37 = vsel %vm535_vm2, %v1161_v63, 0.0 }
  0xd3   : > { %v704_v45 = vsel %vm535_vm2, %v655_v2, 0.0  ;;  %v664_v12 = vmul.f32 %v1140_v43, %v1140_v43  ;;  %v667_v2 = vmul.f32 %v1221_v28, %v1221_v28 }
  0xd4   : > { %v588_v51 = vadd.f32 %v587_v49, %v586_v46  ;;  %v687_v52 = vadd.f32 %v686_v48, %v685_v47  ;;  %v1216_v55 = vpop.f32.mrf.mxu2  ;;  %v706_v48 = vsel %vm535_vm2, %v656_v39, 0.0  ;;  %v658_v49 = vmul.f32 %v1161_v63, %v1161_v63 }
  0xd5   : > { %559 = vst.msk [vmem:[%s1059_s8 + $0xb8] sm:$0xff] %vm535_vm2, %v1216_v55 }
  0xd6   : > { %v689_v56 = vadd.f32 %v688_v53, %v687_v52  ;;  %v590_v57 = vadd.f32 %v589_v25, %v588_v51  ;;  %v708_v52 = vsel %vm535_vm2, %v657_v3, 0.0  ;;  %v659_v53 = vmul.f32 %v1184_v22, %v1184_v22 }
  0xd7   : > { %v662_v22 = vmul.f32 %v1106_v34, %v1106_v34 }
  0xd8   : > { %v592_v60 = vadd.f32 %v591_v59, %v590_v57  ;;  %v691_v61 = vadd.f32 %v690_v58, %v689_v56  ;;  %v710_v56 = vsel %vm535_vm2, %v658_v49, 0.0  ;;  %v660_v57 = vmul.f32 %v1216_v55, %v1216_v55 }
  0xd9   : > { %v1243_v16 = vpop.f32.mrf.mxu3  ;;  %v712_v63 = vsel %vm535_vm2, %v659_v53, 0.0 }
  0xda   : > { %v594_v6 = vadd.f32 %v593_v1, %v592_v60  ;;  %v693_v7 = vadd.f32 %v692_v0, %v691_v61  ;;  %567 = vst.msk [vmem:[%s1059_s8 + $0xf8] sm:$0xff] %vm535_vm2, %v1243_v16  ;;  %v613_v60 = vsel %vm535_vm2, %v1216_v55, 0.0  ;;  %v615_v1 = vsel %vm535_vm2, %v1089_v30, 0.0 }
  0xdb   : > { %v714_v5 = vsel %vm535_vm2, %v660_v57, 0.0  ;;  %v663_v55 = vmul.f32 %v1123_v38, %v1123_v38  ;;  %v619_v30 = vsel %vm535_vm2, %v1123_v38, 0.0  ;;  %v623_v38 = vsel %vm535_vm2, %v1166_v4, 0.0 }
  0xdc   : > { %v596_v10 = vadd.f32 %v595_v8, %v594_v6  ;;  %v695_v11 = vadd.f32 %v694_v36, %v693_v7  ;;  %v716_v36 = vsel %vm535_vm2, %v661_v32, 0.0  ;;  %v617_v8 = vsel %vm535_vm2, %v1106_v34, 0.0 }
  0xdd   : > { %v621_v34 = vsel %vm535_vm2, %v1140_v43, 0.0  ;;  %v625_v43 = vsel %vm535_vm2, %v1188_v24, 0.0 }
  0xde   : > { %v697_v14 = vadd.f32 %v696_v13, %v695_v11  ;;  %v598_v15 = vadd.f32 %v597_v41, %v596_v10  ;;  %v718_v11 = vsel %vm535_vm2, %v662_v22, 0.0 }
  0xe0   : > { %v600_v19 = vadd.f32 %v599_v17, %v598_v15  ;;  %v699_v20 = vadd.f32 %v698_v18, %v697_v14  ;;  %v720_v14 = vsel %vm535_vm2, %v663_v55, 0.0  ;;  %v665_v15 = vmul.f32 %v1166_v4, %v1166_v4 }
  0xe1   : > { %v722_v18 = vsel %vm535_vm2, %v664_v12, 0.0  ;;  %v627_v4 = vsel %vm535_vm2, %v1221_v28, 0.0 }
  0xe2   : > { %v602_v27 = vadd.f32 %v601_v21, %v600_v19  ;;  %v701_v26 = vadd.f32 %v700_v23, %v699_v20  ;;  %v666_v19 = vmul.f32 %v1188_v24, %v1188_v24  ;;  %v724_v21 = vsel %vm535_vm2, %v665_v15, 0.0 }
  0xe3   : > { %v629_v24 = vsel %vm535_vm2, %v1243_v16, 0.0 }
  0xe4   : > { %v604_v40 = vadd.f32 %v603_v35, %v602_v27  ;;  %v703_v44 = vadd.f32 %v702_v31, %v701_v26  ;;  %v726_v31 = vsel %vm535_vm2, %v666_v19, 0.0  ;;  %v668_v35 = vmul.f32 %v1243_v16, %v1243_v16 }
  0xe6   : > { %v705_v46 = vadd.f32 %v704_v45, %v703_v44  ;;  %v606_v47 = vadd.f32 %v605_v29, %v604_v40  ;;  %v728_v44 = vsel %vm535_vm2, %v667_v2, 0.0  ;;  %v730_v3 = vsel %vm535_vm2, %v668_v35, 0.0 }
  0xe8   : > { %v608_v50 = vadd.f32 %v607_v33, %v606_v47  ;;  %v707_v51 = vadd.f32 %v706_v48, %v705_v46 }
  0xea   : > { %v610_v25 = vadd.f32 %v609_v37, %v608_v50  ;;  %v709_v54 = vadd.f32 %v708_v52, %v707_v51 }
  0xec   : > { %v711_v58 = vadd.f32 %v710_v56, %v709_v54  ;;  %v612_v59 = vadd.f32 %v611_v42, %v610_v25 }
  0xee   : > { %v713_v61 = vadd.f32 %v712_v63, %v711_v58  ;;  %v614_v0 = vadd.f32 %v613_v60, %v612_v59 }
  0xf0   : > { %v616_v6 = vadd.f32 %v615_v1, %v614_v0  ;;  %v715_v7 = vadd.f32 %v714_v5, %v713_v61 }
  0xf2   : > { %v618_v9 = vadd.f32 %v617_v8, %v616_v6  ;;  %v717_v10 = vadd.f32 %v716_v36, %v715_v7 }
  0xf4   : > { %v620_v13 = vadd.f32 %v619_v30, %v618_v9  ;;  %v719_v41 = vadd.f32 %v718_v11, %v717_v10 }
  0xf6   : > { %v721_v17 = vadd.f32 %v720_v14, %v719_v41  ;;  %v622_v62 = vadd.f32 %v621_v34, %v620_v13 }
  0xf8   : > { %v624_v20 = vadd.f32 %v623_v38, %v622_v62  ;;  %v723_v23 = vadd.f32 %v722_v18, %v721_v17 }
  0xfa   : > { %v626_v27 = vadd.f32 %v625_v43, %v624_v20  ;;  %v725_v26 = vadd.f32 %v724_v21, %v723_v23 }
  0xfc   : > { %v727_v39 = vadd.f32 %v726_v31, %v725_v26  ;;  %v628_v40 = vadd.f32 %v627_v4, %v626_v27 }
  0xfe   : > { %v729_v45 = vadd.f32 %v728_v44, %v727_v39  ;;  %v630_v29 = vadd.f32 %v629_v24, %v628_v40 }
 0x100   : > { %v631_v46 = vrot.slane %v630_v29, 4  ;;  %v731_v47 = vadd.f32 %v730_v3, %v729_v45 }
 0x102   : > { %v632_v48 = vadd.f32 %v631_v46, %v630_v29  ;;  %v732_v28 = vrot.slane %v731_v47, 4 }
 0x104   : > { %v633_v33 = vrot.slane %v632_v48, 2  ;;  %v733_v49 = vadd.f32 %v732_v28, %v731_v47 }
 0x106   : > { %v634_v50 = vadd.f32 %v633_v33, %v632_v48  ;;  %v734_v51 = vrot.slane %v733_v49, 2 }
 0x108   : > { %v635_v52 = vrot.slane %v634_v50, 1  ;;  %v735_v37 = vadd.f32 %v734_v51, %v733_v49 }
 0x10a   : > { %v736_v53 = vrot.slane %v735_v37, 1  ;;  %v636_v16 = vadd.f32 %v635_v52, %v634_v50 }
 0x10c   : > { %v737_v25 = vadd.f32 %v736_v53, %v735_v37 }
 0x10e   : > { %v739_v54 = vsel %vm738_vm3, %v636_v16, %v737_v25 }
 0x10f   : > { %741 = vst.msk [vmem:[%s238_s12] sm:$0x3] %vm740_vm4, %v739_v54 }
 0x110 PF: > { %s16_s18 = sadd.s32 1, %s876_s18  }
 0x111   : > { %p13_p5 = scmp.ge.s32.totalorder %s16_s18, 4  }
 0x113   :  { %15 = sbr.rel (!%p13_p5) target bundleno = 1 (0x1), region = 78 }

// kernel: bottleneck_forward.5
= control target key start
LH: loop header
LB: loop body
LE: loop exit
PB: predicated region body
PF: predicated region fallthrough
CT: control target
= control target key end

     0   :  { %s2909_s18 = smov 0   ;;  %s3879_s0 = inlined_call_operand.vmem [shape: f32[2,16,16,4], index: 0, kind: input, shape index: {}]   ;;  %s3880_s1 = inlined_call_operand.vmem [shape: bf16[9,4,4], index: 1, kind: input, shape index: {}]   ;;  %s3881_s2 = inlined_call_operand.vmem [shape: f32[1,1,4], index: 2, kind: input, shape index: {}]   ;;  %s3882_s3 = inlined_call_operand.vmem [shape: f32[1,1,4], index: 3, kind: input, shape index: {}]   ;;  %s3883_s4 = inlined_call_operand.vmem [shape: f32[2,16,16,4], index: 4, kind: output, shape index: {0}]   ;;  %s3884_s5 = inlined_call_operand.vmem [shape: f32[2,2,4], index: 5, kind: output, shape index: {1}]  }
   0x1 LB: > { %s2688_s19 = sadd.s32 4294967295, %s2876_s18   ;;  %p2692_p0 = scmp.ge.s32.totalorder %s2876_s18, 1  ;;  %s2876_s18 = sphi %s2909_s18, %s16_s18  }
   0x2   : > { %p190_p1 = scmp.lt.s32.totalorder %s2876_s18, 3 }
   0x4   : > { %p191_p2 = pnand %p2692_p0, %p190_p1 }
   0x6   : > { %194 = sbr.rel (%p191_p2) target bundleno = 805 (0x325), region = 36 }
   0xb   : > { %v2698_v0 = vld [vmem:[%s3880_s1 + $0x2] sm:$0x3]  ;;  %vm609_vm0 = vcmask 1041408   ;;  %p222_p3 = scmp.lt.s32.totalorder %s2688_s19, 1  ;;  %vm373_vm1 = vcmask 31744   ;;  %vm376_vm2 = vcmask 25600  }
   0xc   : > { %v611_v1 = vsel %vm609_vm0, %v2698_v0, 0  ;;  %v2926_v2 = vld [vmem:[%s3881_s2] ss:$0 sm:$0xff]  ;;  %v2878_v3 = vmov 0.0   ;;  %v2731_v18 = vld [vmem:[%s3880_s1 + $0x4] sm:$0x3] }
   0xd   : > { %2854 = vmatpush.bf16.msra.mxu1 %v611_v1  ;;  %2855 = vmatpush.bf16.msra.mxu2 %v611_v1  ;;  %s3928_s19 = smov (!%p222_p3, %s2688_s19), 1  ;;  %387 = vst.msk [vmem:[#allocation2 + $0x60] sm:$0xff] %vm373_vm1, %v2878_v3  ;;  %v2943_v4 = vld [vmem:[%s3882_s3] ss:$0 sm:$0xff]  ;;  %v2748_v20 = vld [vmem:[%s3880_s1 + $0x6] sm:$0x3] }
   0xe   : > { %2856 = vmatpush.bf16.msra.mxu3 %v611_v1  ;;  %620 = vmatpush.bf16.msra.mxu0 %v611_v1  ;;  %s2852_s24 = sshll.u32 %s3928_s19, 8  ;;  %388 = vst.msk [vmem:[#allocation2 + $0x68] sm:$0xff] %vm373_vm1, %v2878_v3  ;;  %v941_v21 = vsel %vm609_vm0, %v2731_v18, 0  ;;  %v1163_v22 = vsel %vm609_vm0, %v2748_v20, 0  ;;  %v510_v23 = vld [vmem:[%s3880_s1] sm:$0x3] }
   0xf   : > { %s2938_s27 = scalar_lea.vmem %s3879_s0, %s2852_s24  ;;  %389 = vst.msk [vmem:[#allocation2 + $0x70] sm:$0x3] %vm376_vm2, %v2878_v3  ;;  %v751_v24 = vsel %vm609_vm0, %v510_v23, 0  ;;  %v2765_v25 = vld [vmem:[%s3880_s1 + $0x8] sm:$0x3]  ;;  %s3674_s30 = scalar_lea.vmem %s3883_s4, %s2852_s24  ;;  %vm2599_vm3 = vcmask 1040384  }
  0x10   : > { %v243_v5 = vld [vmem:[%s2938_s27 + $0x30] sm:$0xff]  ;;  %v244_v6 = vld [vmem:[%s2938_s27 + $0x38] sm:$0xff]  ;;  %374 = vst.msk [vmem:[#allocation2] sm:$0xff] %vm373_vm1, %v2878_v3  ;;  %v1385_v26 = vsel %vm609_vm0, %v2765_v25, 0  ;;  %v245_v33 = vld [vmem:[%s2938_s27 + $0x40] sm:$0xff]  ;;  %s2697_s24 = sshll.u32 %s3928_s19, 1 }
  0x11   : > { %v279_v7 = vmul.f32 %v2926_v2, %v243_v5  ;;  %v280_v8 = vmul.f32 %v2926_v2, %v244_v6  ;;  %375 = vst.msk [vmem:[#allocation2 + $0x8] sm:$0xff] %vm373_vm1, %v2878_v3  ;;  %950 = vmatpush.bf16.msrb.mxu2 %v941_v21  ;;  %760 = vmatpush.bf16.msrb.mxu1 %v751_v24  ;;  %v251_v27 = vld [vmem:[%s2938_s27 + $0x70] sm:$0xff]  ;;  %v252_v28 = vld [vmem:[%s2938_s27 + $0x78] sm:$0xff]  ;;  %v246_v35 = vld [vmem:[%s2938_s27 + $0x48] sm:$0xff]  ;;  %s235_s8 = scalar_lea.vmem %s3884_s5, %s2697_s24 }
  0x12   : > { %377 = vst.msk [vmem:[#allocation2 + $0x10] sm:$0x3] %vm376_vm2, %v2878_v3  ;;  %1172 = vmatpush.bf16.msrb.mxu3 %v1163_v22  ;;  %1394 = vmatpush.bf16.msrb.mxu0 %v1385_v26  ;;  %v259_v29 = vld [vmem:[%s2938_s27 + $0xb0] sm:$0xff]  ;;  %v287_v30 = vmul.f32 %v2926_v2, %v251_v27  ;;  %v260_v31 = vld [vmem:[%s2938_s27 + $0xb8] sm:$0xff]  ;;  %v288_v32 = vmul.f32 %v2926_v2, %v252_v28  ;;  %v253_v37 = vld [vmem:[%s2938_s27 + $0x80] sm:$0xff] }
  0x13   : > { %v315_v9 = vadd.f32 %v2943_v4, %v279_v7  ;;  %v316_v10 = vadd.f32 %v2943_v4, %v280_v8  ;;  %378 = vst.msk [vmem:[#allocation2 + $0x18] sm:$0xff] %vm373_vm1, %v2878_v3  ;;  %v295_v34 = vmul.f32 %v2926_v2, %v259_v29  ;;  %v296_v36 = vmul.f32 %v2926_v2, %v260_v31  ;;  %v254_v40 = vld [vmem:[%s2938_s27 + $0x88] sm:$0xff]  ;;  %v261_v43 = vld [vmem:[%s2938_s27 + $0xc0] sm:$0xff]  ;;  %v247_v57 = vld [vmem:[%s2938_s27 + $0x50] sm:$0xff] }
  0x14   : > { %379 = vst.msk [vmem:[#allocation2 + $0x20] sm:$0xff] %vm373_vm1, %v2878_v3  ;;  %v323_v38 = vadd.f32 %v2943_v4, %v287_v30  ;;  %v281_v39 = vmul.f32 %v2926_v2, %v245_v33  ;;  %v324_v41 = vadd.f32 %v2943_v4, %v288_v32  ;;  %v282_v42 = vmul.f32 %v2926_v2, %v246_v35  ;;  %v262_v46 = vld [vmem:[%s2938_s27 + $0xc8] sm:$0xff]  ;;  %v237_v49 = vld [vmem:[%s2938_s27] sm:$0xff]  ;;  %v248_v61 = vld [vmem:[%s2938_s27 + $0x58] sm:$0xff] }
  0x15   : > { %v347_v11 = vmax.f32 %v315_v9, 0.0  ;;  %v348_v12 = vmax.f32 %v316_v10, 0.0  ;;  %380 = vst.msk [vmem:[#allocation2 + $0x28] sm:$0x3] %vm376_vm2, %v2878_v3  ;;  %v331_v44 = vadd.f32 %v2943_v4, %v295_v34  ;;  %v289_v45 = vmul.f32 %v2926_v2, %v253_v37  ;;  %v238_v53 = vld [vmem:[%s2938_s27 + $0x8] sm:$0xff]  ;;  %v255_v1 = vld [vmem:[%s2938_s27 + $0x90] sm:$0xff] }
  0x16   : > { %381 = vst.msk [vmem:[#allocation2 + $0x30] sm:$0xff] %vm373_vm1, %v2878_v3  ;;  %v332_v47 = vadd.f32 %v2943_v4, %v296_v36  ;;  %v290_v48 = vmul.f32 %v2926_v2, %v254_v40  ;;  %v355_v50 = vmax.f32 %v323_v38, 0.0  ;;  %v317_v51 = vadd.f32 %v2943_v4, %v281_v39  ;;  %v256_v8 = vld [vmem:[%s2938_s27 + $0x98] sm:$0xff]  ;;  %v239_v20 = vld [vmem:[%s2938_s27 + $0x10] sm:$0xff] }
  0x17   : > { %436 = vst.msk [vmem:[#allocation2 + $0x61] sm:$0xff] %vm373_vm1, %v347_v11  ;;  %v297_v52 = vmul.f32 %v2926_v2, %v261_v43  ;;  %v356_v54 = vmax.f32 %v324_v41, 0.0  ;;  %v318_v55 = vadd.f32 %v2943_v4, %v282_v42  ;;  %v298_v56 = vmul.f32 %v2926_v2, %v262_v46  ;;  %v263_v11 = vld [vmem:[%s2938_s27 + $0xd0] sm:$0xff]  ;;  %v240_v24 = vld [vmem:[%s2938_s27 + $0x18] sm:$0xff] }
  0x18   : > { %437 = vst.msk [vmem:[#allocation2 + $0x69] sm:$0xff] %vm373_vm1, %v348_v12  ;;  %v511_v16 = vld [vmem:[#allocation2 + $0x1] sm:$0xff]  ;;  %v363_v58 = vmax.f32 %v331_v44, 0.0  ;;  %v325_v59 = vadd.f32 %v2943_v4, %v289_v45  ;;  %v273_v60 = vmul.f32 %v2926_v2, %v237_v49  ;;  %v364_v62 = vmax.f32 %v332_v47, 0.0 }
  0x19   : > { %382 = vst.msk [vmem:[#allocation2 + $0x38] sm:$0xff] %vm373_vm1, %v2878_v3  ;;  %v512_v17 = vld [vmem:[#allocation2 + $0x9] sm:$0xff]  ;;  %v326_v63 = vadd.f32 %v2943_v4, %v290_v48  ;;  %v274_v0 = vmul.f32 %v2926_v2, %v238_v53  ;;  %v349_v5 = vmax.f32 %v317_v51, 0.0  ;;  %v333_v6 = vadd.f32 %v2943_v4, %v297_v52  ;;  %v249_v51 = vld [vmem:[%s2938_s27 + $0x60] sm:$0xff] }
  0x1a   : > { %383 = vst.msk [vmem:[#allocation2 + $0x40] sm:$0x3] %vm376_vm2, %v2878_v3  ;;  %v543_v19 = vpack.c.bf16 %v512_v17, %v511_v16  ;;  %v283_v7 = vmul.f32 %v2926_v2, %v247_v57  ;;  %v350_v9 = vmax.f32 %v318_v55, 0.0  ;;  %v284_v10 = vmul.f32 %v2926_v2, %v248_v61  ;;  %v264_v16 = vld [vmem:[%s2938_s27 + $0xd8] sm:$0xff]  ;;  %v250_v52 = vld [vmem:[%s2938_s27 + $0x68] sm:$0xff]  ;;  %v257_v57 = vld [vmem:[%s2938_s27 + $0xa0] sm:$0xff] }
  0x1b   : > { %384 = vst.msk [vmem:[#allocation2 + $0x48] sm:$0xff] %vm373_vm1, %v2878_v3  ;;  %v357_v12 = vmax.f32 %v325_v59, 0.0  ;;  %v358_v17 = vmax.f32 %v326_v63, 0.0  ;;  %v310_v18 = vadd.f32 %v2943_v4, %v274_v0  ;;  %v365_v21 = vmax.f32 %v333_v6, 0.0  ;;  %v266_v63 = vld [vmem:[%s2938_s27 + $0xe8] sm:$0xff]  ;;  %v241_v6 = vld [vmem:[%s2938_s27 + $0x20] sm:$0xff] }
  0x1c   : > { %385 = vst.msk [vmem:[#allocation2 + $0x50] sm:$0xff] %vm373_vm1, %v2878_v3  ;;  %2699 = vmatmul.msk.bf16.vlgmr.msra.gmra.mxu0 %vm373_vm1, %v543_v19  ;;  %v292_v19 = vmul.f32 %v2926_v2, %v256_v8  ;;  %v319_v22 = vadd.f32 %v2943_v4, %v283_v7  ;;  %v299_v23 = vmul.f32 %v2926_v2, %v263_v11 }
  0x1d   : > { %386 = vst.msk [vmem:[#allocation2 + $0x58] sm:$0x3] %vm376_vm2, %v2878_v3  ;;  %v320_v26 = vadd.f32 %v2943_v4, %v284_v10  ;;  %v300_v27 = vmul.f32 %v2926_v2, %v264_v16  ;;  %v275_v30 = vmul.f32 %v2926_v2, %v239_v20  ;;  %v342_v32 = vmax.f32 %v310_v18, 0.0  ;;  %v242_v10 = vld [vmem:[%s2938_s27 + $0x28] sm:$0xff] }
  0x1e   : > { %v519_v13 = vld [vmem:[#allocation2 + $0x61] sm:$0xff]  ;;  %390 = vst.msk [vmem:[#allocation2 + $0x78] sm:$0xff] %vm373_vm1, %v2878_v3  ;;  %v328_v33 = vadd.f32 %v2943_v4, %v292_v19  ;;  %v276_v34 = vmul.f32 %v2926_v2, %v240_v24  ;;  %v351_v36 = vmax.f32 %v319_v22, 0.0  ;;  %v335_v37 = vadd.f32 %v2943_v4, %v299_v23 }
  0x1f   : > { %v520_v14 = vld [vmem:[#allocation2 + $0x69] sm:$0xff]  ;;  %391 = vst.msk [vmem:[#allocation2 + $0x80] sm:$0xff] %vm373_vm1, %v2878_v3  ;;  %v352_v40 = vmax.f32 %v320_v26, 0.0  ;;  %v336_v41 = vadd.f32 %v2943_v4, %v300_v27  ;;  %v311_v44 = vadd.f32 %v2943_v4, %v275_v30  ;;  %v285_v55 = vmul.f32 %v2926_v2, %v249_v51 }
  0x20   : > { %v2983_v15 = vpack.c.bf16 %v520_v14, %v519_v13  ;;  %392 = vst.msk [vmem:[#allocation2 + $0x88] sm:$0x3] %vm376_vm2, %v2878_v3  ;;  %v309_v13 = vadd.f32 %v2943_v4, %v273_v60  ;;  %v291_v14 = vmul.f32 %v2926_v2, %v255_v1  ;;  %v360_v47 = vmax.f32 %v328_v33, 0.0  ;;  %v2799_v51 = vld [vmem:[%s3880_s1 + $0xc] sm:$0x3] }
  0x21   : > { %393 = vst.msk [vmem:[#allocation2 + $0x90] sm:$0xff] %vm373_vm1, %v2878_v3  ;;  %v312_v48 = vadd.f32 %v2943_v4, %v276_v34  ;;  %v343_v59 = vmax.f32 %v311_v44, 0.0  ;;  %v293_v60 = vmul.f32 %v2926_v2, %v257_v57  ;;  %v321_v1 = vadd.f32 %v2943_v4, %v285_v55 }
  0x22   : > { %2703 = vmatmul.msk.bf16.vlgmr.msra.gmra.mxu1 %vm373_vm1, %v2983_v15  ;;  %394 = vst.msk [vmem:[#allocation2 + $0x98] sm:$0xff] %vm373_vm1, %v2878_v3  ;;  %v341_v28 = vmax.f32 %v309_v13, 0.0  ;;  %v327_v29 = vadd.f32 %v2943_v4, %v291_v14  ;;  %v277_v14 = vmul.f32 %v2926_v2, %v241_v6  ;;  %v278_v22 = vmul.f32 %v2926_v2, %v242_v10  ;;  %v462_v6 = vld [vmem:[#allocation2] sm:$0xff]  ;;  %v843_v10 = vld [vmem:[#allocation2 + $0xa] sm:$0xff] }
  0x23   : > { %395 = vst.msk [vmem:[#allocation2 + $0xa0] sm:$0x3] %vm376_vm2, %v2878_v3  ;;  %v344_v0 = vmax.f32 %v312_v48, 0.0  ;;  %v329_v7 = vadd.f32 %v2943_v4, %v293_v60 }
  0x24   : > { %396 = vst.msk [vmem:[#allocation2 + $0xa8] sm:$0xff] %vm373_vm1, %v2878_v3  ;;  %v359_v43 = vmax.f32 %v327_v29, 0.0  ;;  %v313_v23 = vadd.f32 %v2943_v4, %v277_v14 }
  0x25   : > { %397 = vst.msk [vmem:[#allocation2 + $0xb0] sm:$0xff] %vm373_vm1, %v2878_v3 }
  0x26   : > { %398 = vst.msk [vmem:[#allocation2 + $0xb8] sm:$0x3] %vm376_vm2, %v2878_v3 }
  0x27   : > { %399 = vst.msk [vmem:[#allocation2 + $0xc0] sm:$0xff] %vm373_vm1, %v2878_v3 }
  0x28   : > { %400 = vst.msk [vmem:[#allocation2 + $0xc8] sm:$0xff] %vm373_vm1, %v2878_v3 }
  0x29   : > { %401 = vst.msk [vmem:[#allocation2 + $0xd0] sm:$0x3] %vm376_vm2, %v2878_v3 }
  0x2a   : > { %402 = vst.msk [vmem:[#allocation2 + $0xd8] sm:$0xff] %vm373_vm1, %v2878_v3 }
  0x2b   : > { %403 = vst.msk [vmem:[#allocation2 + $0xe0] sm:$0xff] %vm373_vm1, %v2878_v3 }
  0x2c   : > { %404 = vst.msk [vmem:[#allocation2 + $0xe8] sm:$0x3] %vm376_vm2, %v2878_v3 }
  0x2d   : > { %405 = vst.msk [vmem:[#allocation2 + $0xf0] sm:$0xff] %vm373_vm1, %v2878_v3 }
  0x2e   : > { %406 = vst.msk [vmem:[#allocation2 + $0xf8] sm:$0xff] %vm373_vm1, %v2878_v3 }
  0x2f   : > { %407 = vst.msk [vmem:[#allocation2 + $0x100] sm:$0x3] %vm376_vm2, %v2878_v3 }
  0x30   : > { %408 = vst.msk [vmem:[#allocation2 + $0x108] sm:$0xff] %vm373_vm1, %v2878_v3 }
  0x31   : > { %409 = vst.msk [vmem:[#allocation2 + $0x110] sm:$0xff] %vm373_vm1, %v2878_v3 }
  0x32   : > { %410 = vst.msk [vmem:[#allocation2 + $0x118] sm:$0x3] %vm376_vm2, %v2878_v3 }
  0x33   : > { %411 = vst.msk [vmem:[#allocation2 + $0x120] sm:$0xff] %vm373_vm1, %v2878_v3 }
  0x34   : > { %412 = vst.msk [vmem:[#allocation2 + $0x128] sm:$0xff] %vm373_vm1, %v2878_v3 }
  0x35   : > { %413 = vst.msk [vmem:[#allocation2 + $0x130] sm:$0x3] %vm376_vm2, %v2878_v3 }
  0x36   : > { %414 = vst.msk [vmem:[#allocation2 + $0x138] sm:$0xff] %vm373_vm1, %v2878_v3 }
  0x37   : > { %415 = vst.msk [vmem:[#allocation2 + $0x140] sm:$0xff] %vm373_vm1, %v2878_v3 }
  0x38   : > { %416 = vst.msk [vmem:[#allocation2 + $0x148] sm:$0x3] %vm376_vm2, %v2878_v3 }
  0x39   : > { %417 = vst.msk [vmem:[#allocation2 + $0x150] sm:$0xff] %vm373_vm1, %v2878_v3 }
  0x3a   : > { %418 = vst.msk [vmem:[#allocation2 + $0x158] sm:$0xff] %vm373_vm1, %v2878_v3 }
  0x3b   : > { %419 = vst.msk [vmem:[#allocation2 + $0x160] sm:$0x3] %vm376_vm2, %v2878_v3 }
  0x3c   : > { %420 = vst.msk [vmem:[#allocation2 + $0x168] sm:$0xff] %vm373_vm1, %v2878_v3 }
  0x3d   : > { %421 = vst.msk [vmem:[#allocation2 + $0x170] sm:$0xff] %vm373_vm1, %v2878_v3 }
  0x3e   : > { %422 = vst.msk [vmem:[#allocation2 + $0x178] sm:$0x3] %vm376_vm2, %v2878_v3 }
  0x3f   : > { %423 = vst.msk [vmem:[#allocation2 + $0x180] sm:$0xff] %vm373_vm1, %v2878_v3 }
  0x40   : > { %424 = vst.msk [vmem:[#allocation2 + $0x188] sm:$0xff] %vm373_vm1, %v2878_v3 }
  0x41   : > { %425 = vst.msk [vmem:[#allocation2 + $0x190] sm:$0x3] %vm376_vm2, %v2878_v3 }
  0x42   : > { %426 = vst.msk [vmem:[#allocation2 + $0x198] sm:$0xff] %vm373_vm1, %v2878_v3 }
  0x43   : > { %427 = vst.msk [vmem:[#allocation2 + $0x1a0] sm:$0xff] %vm373_vm1, %v2878_v3 }
  0x44   : > { %428 = vst.msk [vmem:[#allocation2 + $0x1a8] sm:$0x3] %vm376_vm2, %v2878_v3  ;;  %v334_v3 = vadd.f32 %v2943_v4, %v298_v56  ;;  %v286_v56 = vmul.f32 %v2926_v2, %v250_v52  ;;  %v2816_v52 = vld [vmem:[%s3880_s1 + $0xe] sm:$0x3] }
  0x45   : > { %444 = vst.msk [vmem:[#allocation2 + $0xc1] sm:$0xff] %vm373_vm1, %v355_v50  ;;  %v367_v50 = vmax.f32 %v335_v37, 0.0  ;;  %v2052_v57 = vsel %vm609_vm0, %v2816_v52, 0 }
  0x46   : > { %445 = vst.msk [vmem:[#allocation2 + $0xc9] sm:$0xff] %vm373_vm1, %v356_v54  ;;  %v366_v25 = vmax.f32 %v334_v3, 0.0  ;;  %v368_v54 = vmax.f32 %v336_v41, 0.0  ;;  %v302_v3 = vmul.f32 %v2926_v2, %v266_v63 }
  0x47   : > { %452 = vst.msk [vmem:[#allocation2 + $0x121] sm:$0xff] %vm373_vm1, %v363_v58  ;;  %v258_v58 = vld [vmem:[%s2938_s27 + $0xa8] sm:$0xff] }
  0x48   : > { %453 = vst.msk [vmem:[#allocation2 + $0x129] sm:$0xff] %vm373_vm1, %v364_v62  ;;  %v294_v61 = vmul.f32 %v2926_v2, %v258_v58  ;;  %v265_v62 = vld [vmem:[%s2938_s27 + $0xe0] sm:$0xff]  ;;  %v338_v19 = vadd.f32 %v2943_v4, %v302_v3 }
  0x49   : > { %438 = vst.msk [vmem:[#allocation2 + $0x79] sm:$0xff] %vm373_vm1, %v349_v5  ;;  %v322_v5 = vadd.f32 %v2943_v4, %v286_v56  ;;  %v1830_v56 = vsel %vm609_vm0, %v2799_v51, 0  ;;  %v842_v3 = vld [vmem:[#allocation2 + $0x2] sm:$0xff] }
  0x4a   : > { %439 = vst.msk [vmem:[#allocation2 + $0x81] sm:$0xff] %vm373_vm1, %v350_v9  ;;  %v330_v8 = vadd.f32 %v2943_v4, %v294_v61  ;;  %v301_v9 = vmul.f32 %v2926_v2, %v265_v62  ;;  %v370_v27 = vmax.f32 %v338_v19, 0.0  ;;  %v345_v2 = vmax.f32 %v313_v23, 0.0 }
  0x4b   : > { %446 = vst.msk [vmem:[#allocation2 + $0xd9] sm:$0xff] %vm373_vm1, %v357_v12  ;;  %v353_v12 = vmax.f32 %v321_v1, 0.0  ;;  %v354_v13 = vmax.f32 %v322_v5, 0.0 }
  0x4c   : > { %v527_v31 = vld [vmem:[#allocation2 + $0xc1] sm:$0xff]  ;;  %447 = vst.msk [vmem:[#allocation2 + $0xe1] sm:$0xff] %vm373_vm1, %v358_v17  ;;  %v361_v17 = vmax.f32 %v329_v7, 0.0  ;;  %v337_v18 = vadd.f32 %v2943_v4, %v301_v9 }
  0x4d   : > { %v528_v35 = vld [vmem:[#allocation2 + $0xc9] sm:$0xff]  ;;  %454 = vst.msk [vmem:[#allocation2 + $0x139] sm:$0xff] %vm373_vm1, %v365_v21  ;;  %v362_v21 = vmax.f32 %v330_v8, 0.0 }
  0x4e   : > { %v3144_v38 = vpack.c.bf16 %v528_v35, %v527_v31  ;;  %v535_v39 = vld [vmem:[#allocation2 + $0x121] sm:$0xff]  ;;  %455 = vst.msk [vmem:[#allocation2 + $0x141] sm:$0xff] %vm373_vm1, %v366_v25  ;;  %v369_v26 = vmax.f32 %v337_v18, 0.0 }
  0x4f   : > { %v536_v42 = vld [vmem:[#allocation2 + $0x129] sm:$0xff]  ;;  %430 = vst.msk [vmem:[#allocation2 + $0x19] sm:$0xff] %vm373_vm1, %v341_v28  ;;  %v314_v28 = vadd.f32 %v2943_v4, %v278_v22 }
  0x50   : > { %2707 = vmatmul.msk.bf16.vlgmr.msra.gmra.mxu2 %vm373_vm1, %v3144_v38  ;;  %v3152_v45 = vpack.c.bf16 %v536_v42, %v535_v39  ;;  %v521_v46 = vld [vmem:[#allocation2 + $0x79] sm:$0xff]  ;;  %431 = vst.msk [vmem:[#allocation2 + $0x21] sm:$0xff] %vm373_vm1, %v342_v32  ;;  %v463_v7 = vld [vmem:[#allocation2 + $0x8] sm:$0xff] }
  0x51   : > { %v522_v49 = vld [vmem:[#allocation2 + $0x81] sm:$0xff]  ;;  %440 = vst.msk [vmem:[#allocation2 + $0x91] sm:$0xff] %vm373_vm1, %v351_v36  ;;  %v346_v32 = vmax.f32 %v314_v28, 0.0  ;;  %1839 = vmatpush.bf16.msra.mxu2 %v1830_v56  ;;  %v494_v9 = vpack.c.bf16 %v463_v7, %v462_v6 }
  0x52   : > { %2711 = vmatmul.msk.bf16.vlgmr.msra.gmra.mxu3 %vm373_vm1, %v3152_v45  ;;  %v3161_v53 = vpack.c.bf16 %v522_v49, %v521_v46  ;;  %441 = vst.msk [vmem:[#allocation2 + $0x99] sm:$0xff] %vm373_vm1, %v352_v40  ;;  %v529_v24 = vld [vmem:[#allocation2 + $0xd9] sm:$0xff] }
  0x53   : > { %448 = vst.msk [vmem:[#allocation2 + $0xf1] sm:$0xff] %vm373_vm1, %v359_v43  ;;  %v530_v25 = vld [vmem:[#allocation2 + $0xe1] sm:$0xff]  ;;  %2061 = vmatpush.bf16.msra.mxu3 %v2052_v57 }
  0x54   : > { %2704 = vmatmul.msk.bf16.gmra.mxu1 %vm373_vm1, %v3161_v53  ;;  %449 = vst.msk [vmem:[#allocation2 + $0xf9] sm:$0xff] %vm373_vm1, %v360_v47  ;;  %v537_v29 = vld [vmem:[#allocation2 + $0x139] sm:$0xff]  ;;  %v3201_v31 = vpack.c.bf16 %v530_v25, %v529_v24 }
  0x55   : > { %456 = vst.msk [vmem:[#allocation2 + $0x151] sm:$0xff] %vm373_vm1, %v367_v50  ;;  %v538_v30 = vld [vmem:[#allocation2 + $0x141] sm:$0xff] }
  0x56   : > { %v513_v11 = vld [vmem:[#allocation2 + $0x19] sm:$0xff]  ;;  %457 = vst.msk [vmem:[#allocation2 + $0x159] sm:$0xff] %vm373_vm1, %v368_v54  ;;  %v3205_v35 = vpack.c.bf16 %v538_v30, %v537_v29  ;;  %v2782_v54 = vld [vmem:[%s3880_s1 + $0xa] sm:$0x3] }
  0x57   : > { %v514_v16 = vld [vmem:[#allocation2 + $0x21] sm:$0xff]  ;;  %432 = vst.msk [vmem:[#allocation2 + $0x31] sm:$0xff] %vm373_vm1, %v343_v59  ;;  %v1607_v58 = vsel %vm609_vm0, %v2782_v54, 0  ;;  %v2833_v59 = vld [vmem:[%s3880_s1 + $0x10] sm:$0x3] }
  0x58   : > { %v3190_v20 = vpack.c.bf16 %v514_v16, %v513_v11  ;;  %433 = vst.msk [vmem:[#allocation2 + $0x39] sm:$0xff] %vm373_vm1, %v344_v0  ;;  %v523_v33 = vld [vmem:[#allocation2 + $0x91] sm:$0xff]  ;;  %v2274_v60 = vsel %vm609_vm0, %v2833_v59, 0  ;;  %1616 = vmatpush.bf16.msra.mxu1 %v1607_v58  ;;  %v844_v16 = vld [vmem:[#allocation2 + $0x1a] sm:$0xff] }
  0x59   : > { %442 = vst.msk [vmem:[#allocation2 + $0xa9] sm:$0xff] %vm373_vm1, %v353_v12  ;;  %v524_v34 = vld [vmem:[#allocation2 + $0x99] sm:$0xff]  ;;  %2283 = vmatpush.bf16.msra.mxu0 %v2274_v60  ;;  %v1074_v58 = vld [vmem:[#allocation2 + $0x90] sm:$0xff] }
  0x5a   : > { %2700 = vmatmul.msk.bf16.gmra.mxu0 %vm373_vm1, %v3190_v20  ;;  %443 = vst.msk [vmem:[#allocation2 + $0xb1] sm:$0xff] %vm373_vm1, %v354_v13  ;;  %v3211_v4 = vpack.c.bf16 %v524_v34, %v523_v33  ;;  %v531_v40 = vld [vmem:[#allocation2 + $0xf1] sm:$0xff]  ;;  %v1065_v12 = vld [vmem:[#allocation2 + $0x20] sm:$0xff]  ;;  %v874_v13 = vpack.c.bf16 %v843_v10, %v842_v3 }
  0x5b   : > { %450 = vst.msk [vmem:[#allocation2 + $0x109] sm:$0xff] %vm373_vm1, %v361_v17  ;;  %v532_v41 = vld [vmem:[#allocation2 + $0xf9] sm:$0xff]  ;;  %v845_v17 = vld [vmem:[#allocation2 + $0x22] sm:$0xff] }
  0x5c   : > { %451 = vst.msk [vmem:[#allocation2 + $0x111] sm:$0xff] %vm373_vm1, %v362_v21  ;;  %v539_v42 = vld [vmem:[#allocation2 + $0x151] sm:$0xff]  ;;  %v3222_v44 = vpack.c.bf16 %v532_v41, %v531_v40  ;;  %v3270_v21 = vpack.c.bf16 %v845_v17, %v844_v16  ;;  %v1070_v30 = vld [vmem:[#allocation2 + $0x60] sm:$0xff] }
  0x5d   : > { %458 = vst.msk [vmem:[#allocation2 + $0x169] sm:$0xff] %vm373_vm1, %v369_v26  ;;  %v540_v43 = vld [vmem:[#allocation2 + $0x159] sm:$0xff]  ;;  %v851_v40 = vld [vmem:[#allocation2 + $0x6a] sm:$0xff] }
  0x5e   : > { %459 = vst.msk [vmem:[#allocation2 + $0x171] sm:$0xff] %vm373_vm1, %v370_v27  ;;  %v515_v36 = vld [vmem:[#allocation2 + $0x31] sm:$0xff]  ;;  %v3224_v48 = vpack.c.bf16 %v540_v43, %v539_v42  ;;  %v1073_v42 = vld [vmem:[#allocation2 + $0x80] sm:$0xff] }
  0x5f   : > { %434 = vst.msk [vmem:[#allocation2 + $0x49] sm:$0xff] %vm373_vm1, %v345_v2  ;;  %v516_v37 = vld [vmem:[#allocation2 + $0x39] sm:$0xff]  ;;  %v1066_v18 = vld [vmem:[#allocation2 + $0x30] sm:$0xff]  ;;  %v1071_v2 = vld [vmem:[#allocation2 + $0x68] sm:$0xff] }
  0x60   : > { %2708 = vmatmul.msk.bf16.gmra.mxu2 %vm373_vm1, %v3201_v31  ;;  %435 = vst.msk [vmem:[#allocation2 + $0x51] sm:$0xff] %vm373_vm1, %v346_v32  ;;  %v3218_v39 = vpack.c.bf16 %v516_v37, %v515_v36  ;;  %v525_v46 = vld [vmem:[#allocation2 + $0xa9] sm:$0xff]  ;;  %v1064_v11 = vld [vmem:[#allocation2 + $0x18] sm:$0xff]  ;;  %v3298_v34 = vpack.c.bf16 %v1071_v2, %v1070_v30  ;;  %v1078_v30 = vld [vmem:[#allocation2 + $0xc0] sm:$0xff] }
  0x61   : > { %v526_v47 = vld [vmem:[#allocation2 + $0xb1] sm:$0xff]  ;;  %v1096_v14 = vpack.c.bf16 %v1065_v12, %v1064_v11  ;;  %v847_v23 = vld [vmem:[#allocation2 + $0x3a] sm:$0xff]  ;;  %v850_v37 = vld [vmem:[#allocation2 + $0x62] sm:$0xff] }
  0x62   : > { %2712 = vmatmul.msk.bf16.gmra.mxu3 %vm373_vm1, %v3205_v35  ;;  %v3228_v49 = vpack.c.bf16 %v526_v47, %v525_v46  ;;  %v533_v62 = vld [vmem:[#allocation2 + $0x109] sm:$0xff]  ;;  %v1067_v19 = vld [vmem:[#allocation2 + $0x38] sm:$0xff]  ;;  %v3312_v43 = vpack.c.bf16 %v851_v40, %v850_v37 }
  0x63   : > { %v534_v63 = vld [vmem:[#allocation2 + $0x111] sm:$0xff]  ;;  %v852_v54 = vld [vmem:[#allocation2 + $0x7a] sm:$0xff]  ;;  %v1076_v12 = vld [vmem:[#allocation2 + $0xa8] sm:$0xff] }
  0x64   : > { %2705 = vmatmul.msk.bf16.gmra.mxu1 %vm373_vm1, %v3211_v4  ;;  %v541_v0 = vld [vmem:[#allocation2 + $0x169] sm:$0xff]  ;;  %v3254_v5 = vpack.c.bf16 %v534_v63, %v533_v62  ;;  %v846_v22 = vld [vmem:[#allocation2 + $0x32] sm:$0xff]  ;;  %v855_v3 = vld [vmem:[#allocation2 + $0x9a] sm:$0xff] }
  0x65   : > { %v542_v1 = vld [vmem:[#allocation2 + $0x171] sm:$0xff]  ;;  %v3282_v26 = vpack.c.bf16 %v847_v23, %v846_v22  ;;  %v1079_v2 = vld [vmem:[#allocation2 + $0xc8] sm:$0xff] }
  0x66   : > { %v517_v50 = vld [vmem:[#allocation2 + $0x49] sm:$0xff]  ;;  %v3256_v8 = vpack.c.bf16 %v542_v1, %v541_v0  ;;  %v1072_v41 = vld [vmem:[#allocation2 + $0x78] sm:$0xff] }
  0x67   : > { %v518_v55 = vld [vmem:[#allocation2 + $0x51] sm:$0xff]  ;;  %v1068_v24 = vld [vmem:[#allocation2 + $0x48] sm:$0xff]  ;;  %v3316_v47 = vpack.c.bf16 %v1073_v42, %v1072_v41  ;;  %v3398_v41 = vpack.c.bf16 %v1079_v2, %v1078_v30 }
  0x68   : > { %v3250_v61 = vpack.c.bf16 %v518_v55, %v517_v50  ;;  %v1069_v25 = vld [vmem:[#allocation2 + $0x50] sm:$0xff]  ;;  %v853_v55 = vld [vmem:[#allocation2 + $0x82] sm:$0xff]  ;;  %v1075_v59 = vld [vmem:[#allocation2 + $0x98] sm:$0xff] }
  0x69   : > { %v3284_v27 = vpack.c.bf16 %v1069_v25, %v1068_v24  ;;  %v848_v28 = vld [vmem:[#allocation2 + $0x4a] sm:$0xff]  ;;  %v849_v29 = vld [vmem:[#allocation2 + $0x52] sm:$0xff]  ;;  %v3338_v60 = vpack.c.bf16 %v853_v55, %v852_v54  ;;  %v3342_v63 = vpack.c.bf16 %v1075_v59, %v1074_v58  ;;  %3893 = vst [vmem:[#allocation7_spill] sm:$0xff] %v3398_v41  ;;  %v858_v59 = vld [vmem:[#allocation2 + $0xc2] sm:$0xff] }
  0x6a   : > { %2701 = vmatmul.msk.bf16.gmra.mxu0 %vm373_vm1, %v3218_v39  ;;  %v3294_v32 = vpack.c.bf16 %v849_v29, %v848_v28  ;;  %v856_v24 = vld [vmem:[#allocation2 + $0xaa] sm:$0xff]  ;;  %v857_v25 = vld [vmem:[#allocation2 + $0xb2] sm:$0xff] }
  0x6b   : > { %v3394_v37 = vpack.c.bf16 %v857_v25, %v856_v24  ;;  %v1080_v24 = vld [vmem:[#allocation2 + $0xd8] sm:$0xff]  ;;  %v1081_v25 = vld [vmem:[#allocation2 + $0xe0] sm:$0xff] }
  0x70   : > { %2709 = vmatmul.msk.bf16.gmra.mxu2 %vm373_vm1, %v3222_v44 }
  0x72   : > { %2713 = vmatmul.msk.bf16.gmra.mxu3 %vm373_vm1, %v3224_v48 }
  0x74   : > { %2706 = vmatmul.msk.bf16.gmra.mxu1 %vm373_vm1, %v3228_v49 }
  0x7a   : > { %2702 = vmatmul.msk.bf16.gmra.mxu0 %vm373_vm1, %v3250_v61 }
  0x80   : > { %2710 = vmatmul.msk.bf16.gmra.mxu2 %vm373_vm1, %v3254_v5 }
  0x82   : > { %2714 = vmatmul.msk.bf16.gmra.mxu3 %vm373_vm1, %v3256_v8 }
  0x84   : > { %2715 = vmatmul.msk.bf16.vlgmr.msrb.gmra.mxu1 %vm373_vm1, %v494_v9  ;;  %v854_v9 = vld [vmem:[#allocation2 + $0x92] sm:$0xff] }
  0x8a   : > { %2766 = vmatmul.msk.bf16.vlgmr.msrb.gmra.mxu0 %vm373_vm1, %v3190_v20  ;;  %v3272_v20 = vpack.c.bf16 %v1067_v19, %v1066_v18 }
  0x90   : > { %2732 = vmatmul.msk.bf16.vlgmr.msrb.gmra.mxu2 %vm373_vm1, %v874_v13  ;;  %v1077_v13 = vld [vmem:[#allocation2 + $0xb0] sm:$0xff] }
  0x91   : > { %v3370_v17 = vpack.c.bf16 %v1077_v13, %v1076_v12 }
  0x92   : > { %2749 = vmatmul.msk.bf16.vlgmr.msrb.gmra.mxu3 %vm373_vm1, %v1096_v14 }
  0x94   : > { %2716 = vmatmul.msk.bf16.gmra.mxu1 %vm373_vm1, %v1096_v14  ;;  %v3366_v14 = vpack.c.bf16 %v855_v3, %v854_v9  ;;  %v859_v9 = vld [vmem:[#allocation2 + $0xca] sm:$0xff] }
  0x95   : > { %v3417_v30 = vpack.c.bf16 %v859_v9, %v858_v59 }
  0x97   : > { %3895 = vst [vmem:[#allocation9_spill] sm:$0xff] %v3417_v30 }
  0x99   : > { %v3304_v36 = vpop.f32.mrf.mxu0 }
  0x9a   : > { %2767 = vmatmul.msk.bf16.gmra.mxu0 %vm373_vm1, %v3218_v39 }
  0x9f   : > { %v3296_v33 = vpop.f32.mrf.mxu1 }
  0xa0   : > { %2733 = vmatmul.msk.bf16.gmra.mxu2 %vm373_vm1, %v3270_v21 }
  0xa1   : > { %v3314_v46 = vpop.f32.mrf.mxu0 }
  0xa2   : > { %2750 = vmatmul.msk.bf16.gmra.mxu3 %vm373_vm1, %v3272_v20 }
  0xa4   : > { %2717 = vmatmul.msk.bf16.gmra.mxu1 %vm373_vm1, %v3272_v20 }
  0xaa   : > { %2768 = vmatmul.msk.bf16.gmra.mxu0 %vm373_vm1, %v3250_v61 }
  0xb0   : > { %2734 = vmatmul.msk.bf16.gmra.mxu2 %vm373_vm1, %v3282_v26 }
  0xb2   : > { %2751 = vmatmul.msk.bf16.gmra.mxu3 %vm373_vm1, %v3284_v27 }
  0xb4   : > { %2718 = vmatmul.msk.bf16.gmra.mxu1 %vm373_vm1, %v3284_v27 }
  0xba   : > { %2769 = vmatmul.msk.bf16.gmra.mxu0 %vm373_vm1, %v2983_v15  ;;  %v3308_v15 = vpop.f32.mrf.mxu1 }
  0xc0   : > { %2735 = vmatmul.msk.bf16.gmra.mxu2 %vm373_vm1, %v3294_v32 }
  0xc2   : > { %2752 = vmatmul.msk.bf16.gmra.mxu3 %vm373_vm1, %v3298_v34 }
  0xc4   : > { %2719 = vmatmul.msk.bf16.gmra.mxu1 %vm373_vm1, %v3298_v34 }
  0xca   : > { %2770 = vmatmul.msk.bf16.gmra.mxu0 %vm373_vm1, %v3161_v53 }
  0xd0   : > { %2736 = vmatmul.msk.bf16.gmra.mxu2 %vm373_vm1, %v3312_v43 }
  0xd1   : > { %v3320_v50 = vpop.f32.mrf.mxu1 }
  0xd2   : > { %2753 = vmatmul.msk.bf16.gmra.mxu3 %vm373_vm1, %v3316_v47 }
  0xd3   : > { %v3324_v51 = vpop.f32.mrf.mxu2 }
  0xd4   : > { %2720 = vmatmul.msk.bf16.gmra.mxu1 %vm373_vm1, %v3316_v47 }
  0xd5   : > { %v3328_v53 = vpop.f32.mrf.mxu3 }
  0xd7   : > { %v3330_v52 = vpop.f32.mrf.mxu0 }
  0xd9   : > { %v3332_v56 = vpop.f32.mrf.mxu1 }
  0xda   : > { %2771 = vmatmul.msk.bf16.gmra.mxu0 %vm373_vm1, %v3211_v4 }
  0xdb   : > { %v3336_v57 = vpop.f32.mrf.mxu2 }
  0xdd   : > { %v3340_v62 = vpop.f32.mrf.mxu3 }
  0xdf   : > { %v3344_v0 = vpop.f32.mrf.mxu0 }
  0xe0   : > { %2737 = vmatmul.msk.bf16.gmra.mxu2 %vm373_vm1, %v3338_v60 }
  0xe1   : > { %v3348_v1 = vpop.f32.mrf.mxu1 }
  0xe2   : > { %2754 = vmatmul.msk.bf16.gmra.mxu3 %vm373_vm1, %v3342_v63 }
  0xe3   : > { %v3352_v4 = vpop.f32.mrf.mxu2 }
  0xe4   : > { %2721 = vmatmul.msk.bf16.gmra.mxu1 %vm373_vm1, %v3342_v63 }
  0xe5   : > { %v3356_v6 = vpop.f32.mrf.mxu3 }
  0xe6   : > { %3889 = vst [vmem:[#allocation3_spill] sm:$0xff] %v3356_v6 }
  0xe7   : > { %v3358_v7 = vpop.f32.mrf.mxu0 }
  0xe9   : > { %v3360_v10 = vpop.f32.mrf.mxu1 }
  0xea   : > { %2772 = vmatmul.msk.bf16.gmra.mxu0 %vm373_vm1, %v3228_v49 }
  0xeb   : > { %v3364_v11 = vpop.f32.mrf.mxu2 }
  0xed   : > { %v3368_v16 = vpop.f32.mrf.mxu3 }
  0xee   : > { %3890 = vst [vmem:[#allocation4_spill] sm:$0xff] %v3368_v16 }
  0xef   : > { %v3372_v18 = vpop.f32.mrf.mxu0 }
  0xf0   : > { %2738 = vmatmul.msk.bf16.gmra.mxu2 %vm373_vm1, %v3366_v14 }
  0xf1   : > { %v3376_v19 = vpop.f32.mrf.mxu1 }
  0xf2   : > { %2755 = vmatmul.msk.bf16.gmra.mxu3 %vm373_vm1, %v3370_v17 }
  0xf3   : > { %v3380_v49 = vpop.f32.mrf.mxu2 }
  0xf4   : > { %2722 = vmatmul.msk.bf16.gmra.mxu1 %vm373_vm1, %v3370_v17 }
  0xf5   : > { %v3384_v22 = vpop.f32.mrf.mxu3 }
  0xf6   : > { %3891 = vst [vmem:[#allocation5_spill] sm:$0xff] %v3384_v22 }
  0xf7   : > { %v3386_v23 = vpop.f32.mrf.mxu0 }
  0xf9   : > { %v3388_v28 = vpop.f32.mrf.mxu1 }
  0xfa   : > { %2773 = vmatmul.msk.bf16.gmra.mxu0 %vm373_vm1, %v3144_v38 }
  0xfb   : > { %v3392_v29 = vpop.f32.mrf.mxu2 }
  0xfd   : > { %v3396_v40 = vpop.f32.mrf.mxu3 }
  0xfe   : > { %3892 = vst [vmem:[#allocation6_spill] sm:$0xff] %v3396_v40  ;;  %v3421_v40 = vpack.c.bf16 %v1081_v25, %v1080_v24 }
  0xff   : > { %v3400_v42 = vpop.f32.mrf.mxu0 }
 0x100   : > { %2739 = vmatmul.msk.bf16.gmra.mxu2 %vm373_vm1, %v3394_v37  ;;  %3897 = vst [vmem:[#allocation11_spill] sm:$0xff] %v3421_v40 }
 0x101   : > { %v762_v54 = vpop.f32.mrf.mxu1 }
 0x102   : > { %2756 = vmatmul.msk.bf16.gmra.mxu3 %vm373_vm1, %v3398_v41 }
 0x103   : > { %v3406_v38 = vpop.f32.mrf.mxu2 }
 0x104   : > { %2723 = vmatmul.msk.bf16.gmra.mxu1 %vm373_vm1, %v3398_v41  ;;  %v763_v41 = vadd.f32 %v762_v54, %v3304_v36 }
 0x105   : > { %v3410_v55 = vpop.f32.mrf.mxu3 }
 0x106   : > { %3894 = vst [vmem:[#allocation8_spill] sm:$0xff] %v3410_v55 }
 0x107   : > { %v1396_v58 = vpop.f32.mrf.mxu0 }
 0x109   : > { %v764_v3 = vpop.f32.mrf.mxu1 }
 0x10a   : > { %2774 = vmatmul.msk.bf16.gmra.mxu0 %vm373_vm1, %v3201_v31  ;;  %v765_v12 = vadd.f32 %v764_v3, %v3314_v46 }
 0x10b   : > { %v3415_v13 = vpop.f32.mrf.mxu2 }
 0x10d   : > { %v3419_v2 = vpop.f32.mrf.mxu3 }
 0x10e   : > { %3896 = vst [vmem:[#allocation10_spill] sm:$0xff] %v3419_v2  ;;  %v860_v2 = vld [vmem:[#allocation2 + $0xda] sm:$0xff] }
 0x10f   : > { %v1398_v55 = vpop.f32.mrf.mxu0 }
 0x110   : > { %2740 = vmatmul.msk.bf16.gmra.mxu2 %vm373_vm1, %v3417_v30  ;;  %v861_v30 = vld [vmem:[#allocation2 + $0xe2] sm:$0xff] }
 0x111   : > { %v767_v22 = vpop.f32.mrf.mxu1 }
 0x112   : > { %2757 = vmatmul.msk.bf16.gmra.mxu3 %vm373_vm1, %v3421_v40  ;;  %v768_v31 = vadd.f32 %v767_v22, %v3330_v52  ;;  %v1082_v52 = vld [vmem:[#allocation2 + $0xf0] sm:$0xff]  ;;  %v1083_v22 = vld [vmem:[#allocation2 + $0xf8] sm:$0xff] }
 0x113   : > { %v952_v46 = vpop.f32.mrf.mxu2 }
 0x114   : > { %v1032_v3 = vadd.f32 %v952_v46, %v763_v41  ;;  %2724 = vmatmul.msk.bf16.gmra.mxu1 %vm373_vm1, %v3421_v40  ;;  %v3436_v46 = vpack.c.bf16 %v861_v30, %v860_v2 }
 0x115   : > { %v1174_v59 = vpop.f32.mrf.mxu3 }
 0x116   : > { %v1254_v9 = vadd.f32 %v1174_v59, %v1032_v3  ;;  %v3438_v3 = vpack.c.bf16 %v1083_v22, %v1082_v52  ;;  %v863_v52 = vld [vmem:[#allocation2 + $0xfa] sm:$0xff] }
 0x117   : > { %v1401_v24 = vpop.f32.mrf.mxu0 }
 0x118   : > { %v3431_v25 = vadd.f32 %v1396_v58, %v1254_v9 }
 0x119   : > { %v769_v16 = vpop.f32.mrf.mxu1 }
 0x11a   : > { %2775 = vmatmul.msk.bf16.gmra.mxu0 %vm373_vm1, %v3222_v44  ;;  %v770_v36 = vadd.f32 %v769_v16, %v3344_v0 }
 0x11b   : > { %v954_v54 = vpop.f32.mrf.mxu2 }
 0x11c   : > { %v1033_v41 = vadd.f32 %v954_v54, %v765_v12  ;;  %v862_v54 = vld [vmem:[#allocation2 + $0xf2] sm:$0xff] }
 0x11d   : > { %v1176_v40 = vpop.f32.mrf.mxu3 }
 0x11e   : > { %v1255_v6 = vadd.f32 %v1176_v40, %v1033_v41  ;;  %v1085_v41 = vld [vmem:[#allocation2 + $0x110] sm:$0xff] }
 0x11f   : > { %v1403_v58 = vpop.f32.mrf.mxu0 }
 0x120   : > { %2741 = vmatmul.msk.bf16.gmra.mxu2 %vm373_vm1, %v3436_v46  ;;  %v3442_v59 = vadd.f32 %v1398_v55, %v1255_v6 }
 0x121   : > { %v772_v9 = vpop.f32.mrf.mxu1 }
 0x122   : > { %3898 = vst [vmem:[#allocation12_spill] sm:$0xff] %v3442_v59  ;;  %2758 = vmatmul.msk.bf16.gmra.mxu3 %vm373_vm1, %v3438_v3  ;;  %v773_v44 = vadd.f32 %v772_v9, %v3358_v7  ;;  %v1084_v7 = vld [vmem:[#allocation2 + $0x108] sm:$0xff]  ;;  %v3454_v9 = vpack.c.bf16 %v863_v52, %v862_v54 }
 0x123   : > { %v957_v0 = vpop.f32.mrf.mxu2 }
 0x124   : > { %v1034_v16 = vadd.f32 %v957_v0, %v768_v31  ;;  %2725 = vmatmul.msk.bf16.gmra.mxu1 %vm373_vm1, %v3438_v3 }
 0x125   : > { %v1179_v40 = vpop.f32.mrf.mxu3 }
 0x126   : > { %v1256_v12 = vadd.f32 %v1179_v40, %v1034_v16  ;;  %v3456_v16 = vpack.c.bf16 %v1085_v41, %v1084_v7  ;;  %v864_v7 = vld [vmem:[#allocation2 + $0x10a] sm:$0xff]  ;;  %v865_v41 = vld [vmem:[#allocation2 + $0x112] sm:$0xff] }
 0x127   : > { %v1406_v30 = vpop.f32.mrf.mxu0 }
 0x128   : > { %v3449_v2 = vadd.f32 %v1401_v24, %v1256_v12 }
 0x129   : > { %v774_v6 = vpop.f32.mrf.mxu1 }
 0x12a   : > { %2776 = vmatmul.msk.bf16.gmra.mxu0 %vm373_vm1, %v3254_v5  ;;  %v775_v55 = vadd.f32 %v774_v6, %v3372_v18 }
 0x12b   : > { %v959_v22 = vpop.f32.mrf.mxu2 }
 0x12c   : > { %v1035_v31 = vadd.f32 %v959_v22, %v770_v36 }
 0x12d   : > { %v1181_v0 = vpop.f32.mrf.mxu3 }
 0x12e   : > { %v1257_v59 = vadd.f32 %v1181_v0, %v1035_v31  ;;  %v1087_v0 = vld [vmem:[#allocation2 + $0x128] sm:$0xff] }
 0x12f   : > { %v1408_v24 = vpop.f32.mrf.mxu0 }
 0x130   : > { %2742 = vmatmul.msk.bf16.gmra.mxu2 %vm373_vm1, %v3454_v9  ;;  %v3460_v40 = vadd.f32 %v1403_v58, %v1257_v59 }
 0x131   : > { %v777_v12 = vpop.f32.mrf.mxu1 }
 0x132   : > { %3899 = vst [vmem:[#allocation13_spill] sm:$0xff] %v3460_v40  ;;  %2759 = vmatmul.msk.bf16.gmra.mxu3 %vm373_vm1, %v3456_v16  ;;  %v778_v5 = vadd.f32 %v777_v12, %v3386_v23  ;;  %v1086_v23 = vld [vmem:[#allocation2 + $0x120] sm:$0xff]  ;;  %v3472_v12 = vpack.c.bf16 %v865_v41, %v864_v7 }
 0x133   : > { %v962_v18 = vpop.f32.mrf.mxu2 }
 0x134   : > { %v1036_v36 = vadd.f32 %v962_v18, %v773_v44  ;;  %2726 = vmatmul.msk.bf16.gmra.mxu1 %vm373_vm1, %v3456_v16 }
 0x135   : > { %v1184_v54 = vpop.f32.mrf.mxu3 }
 0x136   : > { %v1258_v52 = vadd.f32 %v1184_v54, %v1036_v36  ;;  %v3474_v36 = vpack.c.bf16 %v1087_v0, %v1086_v23  ;;  %v867_v23 = vld [vmem:[#allocation2 + $0x12a] sm:$0xff]  ;;  %v1088_v0 = vld [vmem:[#allocation2 + $0x138] sm:$0xff] }
 0x137   : > { %v1411_v6 = vpop.f32.mrf.mxu0 }
 0x138   : > { %v3467_v22 = vadd.f32 %v1406_v30, %v1258_v52 }
 0x139   : > { %v779_v58 = vpop.f32.mrf.mxu1 }
 0x13a   : > { %3900 = vst [vmem:[#allocation14_spill] sm:$0xff] %v3467_v22  ;;  %2777 = vmatmul.msk.bf16.gmra.mxu0 %vm373_vm1, %v3152_v45  ;;  %v780_v59 = vadd.f32 %v779_v58, %v3400_v42  ;;  %v268_v22 = vld [vmem:[%s2938_s27 + $0xf8] sm:$0xff] }
 0x13b   : > { %v964_v31 = vpop.f32.mrf.mxu2 }
 0x13c   : > { %v1037_v44 = vadd.f32 %v964_v31, %v775_v55  ;;  %v866_v31 = vld [vmem:[#allocation2 + $0x122] sm:$0xff] }
 0x13d   : > { %v1186_v18 = vpop.f32.mrf.mxu3 }
 0x13e   : > { %v1259_v40 = vadd.f32 %v1186_v18, %v1037_v44  ;;  %v1089_v44 = vld [vmem:[#allocation2 + $0x140] sm:$0xff]  ;;  %v3488_v18 = vpack.c.bf16 %v867_v23, %v866_v31 }
 0x13f   : > { %v1413_v30 = vpop.f32.mrf.mxu0 }
 0x140   : > { %2743 = vmatmul.msk.bf16.gmra.mxu2 %vm373_vm1, %v3472_v12  ;;  %v3478_v54 = vadd.f32 %v1408_v24, %v1259_v40 }
 0x141   : > { %v782_v52 = vpop.f32.mrf.mxu1 }
 0x142   : > { %3901 = vst [vmem:[#allocation15_spill] sm:$0xff] %v3478_v54  ;;  %2760 = vmatmul.msk.bf16.gmra.mxu3 %vm373_vm1, %v3474_v36 }
 0x143   : > { %v967_v45 = vpop.f32.mrf.mxu2 }
 0x144   : > { %v1038_v42 = vadd.f32 %v967_v45, %v778_v5  ;;  %2727 = vmatmul.msk.bf16.gmra.mxu1 %vm373_vm1, %v3474_v36 }
 0x145   : > { %v1189_v55 = vpop.f32.mrf.mxu3 }
 0x146   : > { %v1260_v7 = vadd.f32 %v1189_v55, %v1038_v42  ;;  %v3490_v42 = vpack.c.bf16 %v1089_v44, %v1088_v0 }
 0x147   : > { %v1416_v41 = vpop.f32.mrf.mxu0 }
 0x148   : > { %v3484_v58 = vadd.f32 %v1411_v6, %v1260_v7 }
 0x149   : > { %v784_v24 = vpop.f32.mrf.mxu1 }
 0x14a   : > { %3902 = vst [vmem:[#allocation16_spill] sm:$0xff] %v3484_v58  ;;  %2778 = vmatmul.msk.bf16.gmra.mxu0 %vm373_vm1, %v3205_v35  ;;  %v267_v58 = vld [vmem:[%s2938_s27 + $0xf0] sm:$0xff]  ;;  %v783_v35 = vadd.f32 %v782_v52, %v3296_v33 }
 0x14b   : > { %v969_v40 = vpop.f32.mrf.mxu2 }
 0x14c   : > { %v1039_v5 = vadd.f32 %v969_v40, %v780_v59  ;;  %v2868_v59 = vld [vmem:[%s3881_s2] ss:$0 sm:$0xff] }
 0x14d   : > { %v1191_v45 = vpop.f32.mrf.mxu3  ;;  %v303_v31 = vmul.f32 %v2868_v59, %v267_v58  ;;  %v304_v23 = vmul.f32 %v2868_v59, %v268_v22  ;;  %v868_v22 = vld [vmem:[#allocation2 + $0x13a] sm:$0xff] }
 0x14e   : > { %v1261_v54 = vadd.f32 %v1191_v45, %v1039_v5 }
 0x14f   : > { %v1418_v6 = vpop.f32.mrf.mxu0 }
 0x150   : > { %2744 = vmatmul.msk.bf16.gmra.mxu2 %vm373_vm1, %v3488_v18  ;;  %v3494_v55 = vadd.f32 %v1413_v30, %v1261_v54  ;;  %v2869_v30 = vld [vmem:[%s3882_s3] ss:$0 sm:$0xff] }
 0x151   : > { %v787_v7 = vpop.f32.mrf.mxu1  ;;  %v339_v54 = vadd.f32 %v2869_v30, %v303_v31  ;;  %v340_v33 = vadd.f32 %v2869_v30, %v304_v23  ;;  %v1090_v23 = vld [vmem:[#allocation2 + $0x150] sm:$0xff] }
 0x152   : > { %3903 = vst [vmem:[#allocation17_spill] sm:$0xff] %v3494_v55  ;;  %2761 = vmatmul.msk.bf16.gmra.mxu3 %vm373_vm1, %v3490_v42 }
 0x153   : > { %v972_v40 = vpop.f32.mrf.mxu2  ;;  %v371_v5 = vmax.f32 %v339_v54, 0.0  ;;  %v372_v45 = vmax.f32 %v340_v33, 0.0 }
 0x154   : > { %v1040_v0 = vadd.f32 %v972_v40, %v783_v35  ;;  %2728 = vmatmul.msk.bf16.gmra.mxu1 %vm373_vm1, %v3490_v42  ;;  %v869_v35 = vld [vmem:[#allocation2 + $0x142] sm:$0xff]  ;;  %v785_v40 = vadd.f32 %v784_v24, %v3308_v15  ;;  %v788_v15 = vadd.f32 %v787_v7, %v3320_v50 }
 0x155   : > { %v1194_v52 = vpop.f32.mrf.mxu3  ;;  %460 = vst.msk [vmem:[#allocation2 + $0x181] sm:$0xff] %vm373_vm1, %v371_v5  ;;  %v3516_v54 = vpack.c.bf16 %v869_v35, %v868_v22  ;;  %v1092_v7 = vld [vmem:[#allocation2 + $0x168] sm:$0xff] }
 0x156   : > { %v1262_v44 = vadd.f32 %v1194_v52, %v1040_v0  ;;  %461 = vst.msk [vmem:[#allocation2 + $0x189] sm:$0xff] %vm373_vm1, %v372_v45  ;;  %v1091_v0 = vld [vmem:[#allocation2 + $0x158] sm:$0xff] }
 0x157   : > { %v1421_v55 = vpop.f32.mrf.mxu0 }
 0x158   : > { %v3510_v58 = vadd.f32 %v1416_v41, %v1262_v44  ;;  %v1109_v41 = vpack.c.bf16 %v1091_v0, %v1090_v23  ;;  %v870_v23 = vld [vmem:[#allocation2 + $0x152] sm:$0xff]  ;;  %v871_v0 = vld [vmem:[#allocation2 + $0x15a] sm:$0xff] }
 0x159   : > { %v789_v59 = vpop.f32.mrf.mxu1 }
 0x15a   : > { %3904 = vst [vmem:[#allocation18_spill] sm:$0xff] %v3510_v58  ;;  %2779 = vmatmul.msk.bf16.gmra.mxu0 %vm373_vm1, %v3224_v48 }
 0x15b   : > { %v974_v31 = vpop.f32.mrf.mxu2 }
 0x15c   : > { %v1041_v30 = vadd.f32 %v974_v31, %v785_v40 }
 0x15d   : > { %v1196_v33 = vpop.f32.mrf.mxu3 }
 0x15e   : > { %v1263_v52 = vadd.f32 %v1196_v33, %v1041_v30  ;;  %v1093_v33 = vld [vmem:[#allocation2 + $0x170] sm:$0xff] }
 0x15f   : > { %v1423_v44 = vpop.f32.mrf.mxu0 }
 0x160   : > { %2745 = vmatmul.msk.bf16.gmra.mxu2 %vm373_vm1, %v3516_v54  ;;  %v3520_v5 = vadd.f32 %v1418_v6, %v1263_v52  ;;  %v790_v6 = vadd.f32 %v789_v59, %v3332_v56  ;;  %v1316_v59 = vld [vmem:[#allocation2 + $0x181] sm:$0xff] }
 0x161   : > { %v792_v45 = vpop.f32.mrf.mxu1 }
 0x162   : > { %3905 = vst [vmem:[#allocation19_spill] sm:$0xff] %v3520_v5  ;;  %2762 = vmatmul.msk.bf16.gmra.mxu3 %vm373_vm1, %v1109_v41  ;;  %v793_v56 = vadd.f32 %v792_v45, %v3348_v1  ;;  %v1094_v45 = vld [vmem:[#allocation2 + $0x180] sm:$0xff] }
 0x163   : > { %v977_v48 = vpop.f32.mrf.mxu2 }
 0x164   : > { %v1042_v24 = vadd.f32 %v977_v48, %v788_v15  ;;  %2729 = vmatmul.msk.bf16.gmra.mxu1 %vm373_vm1, %v1109_v41  ;;  %v3530_v15 = vpack.c.bf16 %v871_v0, %v870_v23 }
 0x165   : > { %v1199_v22 = vpop.f32.mrf.mxu3 }
 0x166   : > { %v1264_v35 = vadd.f32 %v1199_v22, %v1042_v24  ;;  %v1110_v24 = vpack.c.bf16 %v1093_v33, %v1092_v7 }
 0x167   : > { %v1426_v40 = vpop.f32.mrf.mxu0 }
 0x168   : > { %v3525_v31 = vadd.f32 %v1421_v55, %v1264_v35 }
 0x169   : > { %v794_v30 = vpop.f32.mrf.mxu1 }
 0x16a   : > { %3906 = vst [vmem:[#allocation20_spill] sm:$0xff] %v3525_v31  ;;  %2780 = vmatmul.msk.bf16.gmra.mxu0 %vm373_vm1, %v3256_v8  ;;  %v1317_v31 = vld [vmem:[#allocation2 + $0x189] sm:$0xff] }
 0x16b   : > { %v979_v50 = vpop.f32.mrf.mxu2 }
 0x16c   : > { %v1043_v52 = vadd.f32 %v979_v50, %v790_v6  ;;  %v1333_v50 = vpack.c.bf16 %v1317_v31, %v1316_v59 }
 0x16d   : > { %v1201_v41 = vpop.f32.mrf.mxu3 }
 0x16e   : > { %v1265_v48 = vadd.f32 %v1201_v41, %v1043_v52  ;;  %v872_v52 = vld [vmem:[#allocation2 + $0x16a] sm:$0xff] }
 0x16f   : > { %v1428_v22 = vpop.f32.mrf.mxu0 }
 0x170   : > { %2746 = vmatmul.msk.bf16.gmra.mxu2 %vm373_vm1, %v3530_v15  ;;  %v3534_v55 = vadd.f32 %v1423_v44, %v1265_v48  ;;  %v873_v44 = vld [vmem:[#allocation2 + $0x172] sm:$0xff]  ;;  %v795_v48 = vadd.f32 %v794_v30, %v3360_v10 }
 0x171   : > { %v797_v35 = vpop.f32.mrf.mxu1 }
 0x172   : > { %3907 = vst [vmem:[#allocation21_spill] sm:$0xff] %v3534_v55  ;;  %2763 = vmatmul.msk.bf16.gmra.mxu3 %vm373_vm1, %v1110_v24  ;;  %v1095_v55 = vld [vmem:[#allocation2 + $0x188] sm:$0xff]  ;;  %v798_v59 = vadd.f32 %v797_v35, %v3376_v19 }
 0x173   : > { %v982_v8 = vpop.f32.mrf.mxu2  ;;  %v1111_v58 = vpack.c.bf16 %v1095_v55, %v1094_v45 }
 0x174   : > { %v1044_v6 = vadd.f32 %v982_v8, %v793_v56  ;;  %2730 = vmatmul.msk.bf16.gmra.mxu1 %vm373_vm1, %v1110_v24  ;;  %v889_v56 = vpack.c.bf16 %v873_v44, %v872_v52 }
 0x175   : > { %v1204_v23 = vpop.f32.mrf.mxu3 }
 0x176   : > { %v1266_v0 = vadd.f32 %v1204_v23, %v1044_v6 }
 0x177   : > { %v1431_v7 = vpop.f32.mrf.mxu0 }
 0x178   : > { %v3539_v33 = vadd.f32 %v1426_v40, %v1266_v0 }
 0x179   : > { %v799_v41 = vpop.f32.mrf.mxu1 }
 0x17a   : > { %2781 = vmatmul.msk.bf16.gmra.mxu0 %vm373_vm1, %v1333_v50  ;;  %v800_v52 = vadd.f32 %v799_v41, %v3388_v28 }
 0x17b   : > { %v984_v1 = vpop.f32.mrf.mxu2 }
 0x17c   : > { %v1045_v5 = vadd.f32 %v984_v1, %v795_v48 }
 0x17d   : > { %v1206_v8 = vpop.f32.mrf.mxu3 }
 0x17e   : > { %v1267_v24 = vadd.f32 %v1206_v8, %v1045_v5 }
 0x17f   : > { %v1433_v6 = vpop.f32.mrf.mxu0 }
 0x180   : > { %2747 = vmatmul.msk.bf16.gmra.mxu2 %vm373_vm1, %v889_v56  ;;  %v3544_v40 = vadd.f32 %v1428_v22, %v1267_v24 }
 0x181   : > { %v802_v31 = vpop.f32.mrf.mxu1 }
 0x182   : > { %2764 = vmatmul.msk.bf16.gmra.mxu3 %vm373_vm1, %v1111_v58 }
 0x183   : > { %v987_v10 = vpop.f32.mrf.mxu2 }
 0x184   : > { %v1046_v30 = vadd.f32 %v987_v10, %v798_v59  ;;  %2783 = vmatmul.msk.bf16.vlgmr.msra.gmra.mxu1 %vm373_vm1, %v3270_v21 }
 0x185   : > { %v1209_v23 = vpop.f32.mrf.mxu3 }
 0x186   : > { %v1268_v0 = vadd.f32 %v1209_v23, %v1046_v30 }
 0x187   : > { %v1436_v50 = vpop.f32.mrf.mxu0 }
 0x188   : > { %v3550_v5 = vadd.f32 %v1431_v7, %v1268_v0  ;;  %v803_v7 = vadd.f32 %v802_v31, %v3324_v51 }
 0x189   : > { %v804_v55 = vpop.f32.mrf.mxu1 }
 0x18a   : > { %2834 = vmatmul.msk.bf16.vlgmr.msra.gmra.mxu0 %vm373_vm1, %v3282_v26 }
 0x18b   : > { %v989_v22 = vpop.f32.mrf.mxu2 }
 0x18c   : > { %v1047_v19 = vadd.f32 %v989_v22, %v800_v52 }
 0x18d   : > { %v1211_v35 = vpop.f32.mrf.mxu3 }
 0x18e   : > { %v1269_v58 = vadd.f32 %v1211_v35, %v1047_v19  ;;  %v1957_v19 = vld [vmem:[#allocation2 + $0x61] sm:$0xff]  ;;  %v1958_v35 = vld [vmem:[#allocation2 + $0x69] sm:$0xff] }
 0x18f   : > { %v1438_v44 = vpop.f32.mrf.mxu0 }
 0x190   : > { %2800 = vmatmul.msk.bf16.vlgmr.msra.gmra.mxu2 %vm373_vm1, %v3272_v20  ;;  %v3557_v21 = vadd.f32 %v1433_v6, %v1269_v58  ;;  %v805_v20 = vadd.f32 %v804_v55, %v3336_v57 }
 0x191   : > { %v807_v48 = vpop.f32.mrf.mxu1 }
 0x192   : > { %2817 = vmatmul.msk.bf16.vlgmr.msra.gmra.mxu3 %vm373_vm1, %v3218_v39  ;;  %v808_v30 = vadd.f32 %v807_v48, %v3352_v4  ;;  %v1987_v48 = vpack.c.bf16 %v1958_v35, %v1957_v19 }
 0x193   : > { %v992_v28 = vpop.f32.mrf.mxu2 }
 0x194   : > { %v1048_v41 = vadd.f32 %v992_v28, %v803_v7  ;;  %2784 = vmatmul.msk.bf16.gmra.mxu1 %vm373_vm1, %v3282_v26 }
 0x195   : > { %v1214_v1 = vpop.f32.mrf.mxu3 }
 0x196   : > { %v1270_v45 = vadd.f32 %v1214_v1, %v1048_v41 }
 0x197   : > { %v1441_v56 = vpop.f32.mrf.mxu0 }
 0x198   : > { %v3564_v8 = vadd.f32 %v1436_v50, %v1270_v45 }
 0x199   : > { %v809_v24 = vpop.f32.mrf.mxu1 }
 0x19a   : > { %2835 = vmatmul.msk.bf16.gmra.mxu0 %vm373_vm1, %v3294_v32 }
 0x19b   : > { %v994_v51 = vpop.f32.mrf.mxu2 }
 0x19c   : > { %v1049_v6 = vadd.f32 %v994_v51, %v805_v20 }
 0x19d   : > { %v1216_v31 = vpop.f32.mrf.mxu3 }
 0x19e   : > { %v1271_v39 = vadd.f32 %v1216_v31, %v1049_v6  ;;  %v1960_v31 = vld [vmem:[#allocation2 + $0x81] sm:$0xff] }
 0x19f   : > { %v1443_v59 = vpop.f32.mrf.mxu0 }
 0x1a0   : > { %2801 = vmatmul.msk.bf16.gmra.mxu2 %vm373_vm1, %v3284_v27  ;;  %v3571_v26 = vadd.f32 %v1438_v44, %v1271_v39  ;;  %v810_v27 = vadd.f32 %v809_v24, %v3364_v11 }
 0x1a1   : > { %v812_v10 = vpop.f32.mrf.mxu1 }
 0x1a2   : > { %2818 = vmatmul.msk.bf16.gmra.mxu3 %vm373_vm1, %v3250_v61  ;;  %v813_v41 = vadd.f32 %v812_v10, %v3380_v49  ;;  %v1959_v49 = vld [vmem:[#allocation2 + $0x79] sm:$0xff] }
 0x1a3   : > { %v997_v57 = vpop.f32.mrf.mxu2 }
 0x1a4   : > { %v1050_v23 = vadd.f32 %v997_v57, %v808_v30  ;;  %2785 = vmatmul.msk.bf16.gmra.mxu1 %vm373_vm1, %v3294_v32  ;;  %v1988_v30 = vpack.c.bf16 %v1960_v31, %v1959_v49  ;;  %v1964_v49 = vld [vmem:[#allocation2 + $0xb1] sm:$0xff] }
 0x1a5   : > { %v1219_v0 = vpop.f32.mrf.mxu3 }
 0x1a6   : > { %v1272_v50 = vadd.f32 %v1219_v0, %v1050_v23 }
 0x1a7   : > { %v1446_v55 = vpop.f32.mrf.mxu0 }
 0x1a8   : > { %v3578_v52 = vadd.f32 %v1441_v56, %v1272_v50 }
 0x1a9   : > { %v814_v22 = vpop.f32.mrf.mxu1 }
 0x1aa   : > { %2836 = vmatmul.msk.bf16.gmra.mxu0 %vm373_vm1, %v3312_v43 }
 0x1ab   : > { %v999_v4 = vpop.f32.mrf.mxu2 }
 0x1ac   : > { %v1051_v61 = vadd.f32 %v999_v4, %v810_v27 }
 0x1ad   : > { %v1221_v58 = vpop.f32.mrf.mxu3 }
 0x1ae   : > { %v1273_v44 = vadd.f32 %v1221_v58, %v1051_v61  ;;  %v1962_v61 = vld [vmem:[#allocation2 + $0x99] sm:$0xff] }
 0x1af   : > { %v1448_v7 = vpop.f32.mrf.mxu0 }
 0x1b0   : > { %2802 = vmatmul.msk.bf16.gmra.mxu2 %vm373_vm1, %v3298_v34  ;;  %v3585_v32 = vadd.f32 %v1443_v59, %v1273_v44  ;;  %v815_v34 = vadd.f32 %v814_v22, %v3392_v29 }
 0x1b1   : > { %v817_v28 = vpop.f32.mrf.mxu1 }
 0x1b2   : > { %2819 = vmatmul.msk.bf16.gmra.mxu3 %vm373_vm1, %v1987_v48  ;;  %v818_v0 = vadd.f32 %v817_v28, %v3406_v38  ;;  %v1961_v38 = vld [vmem:[#allocation2 + $0x91] sm:$0xff] }
 0x1b3   : > { %v1002_v11 = vpop.f32.mrf.mxu2 }
 0x1b4   : > { %v1052_v1 = vadd.f32 %v1002_v11, %v813_v41  ;;  %2786 = vmatmul.msk.bf16.gmra.mxu1 %vm373_vm1, %v3312_v43 }
 0x1b5   : > { %v1224_v45 = vpop.f32.mrf.mxu3 }
 0x1b6   : > { %v1274_v56 = vadd.f32 %v1224_v45, %v1052_v1 }
 0x1b7   : > { %v1451_v24 = vpop.f32.mrf.mxu0 }
 0x1b8   : > { %v3591_v20 = vadd.f32 %v1446_v55, %v1274_v56 }
 0x1b9   : > { %v819_v51 = vpop.f32.mrf.mxu1 }
 0x1ba   : > { %2837 = vmatmul.msk.bf16.gmra.mxu0 %vm373_vm1, %v3338_v60 }
 0x1bb   : > { %v1004_v6 = vpop.f32.mrf.mxu2 }
 0x1bc   : > { %v1053_v39 = vadd.f32 %v1004_v6, %v815_v34 }
 0x1bd   : > { %v1226_v59 = vpop.f32.mrf.mxu3 }
 0x1be   : > { %v1275_v10 = vadd.f32 %v1226_v59, %v1053_v39 }
 0x1bf   : > { %v1453_v57 = vpop.f32.mrf.mxu0 }
 0x1c0   : > { %2803 = vmatmul.msk.bf16.gmra.mxu2 %vm373_vm1, %v3316_v47  ;;  %v3598_v43 = vadd.f32 %v1448_v7, %v1275_v10  ;;  %v820_v47 = vadd.f32 %v819_v51, %v3415_v13  ;;  %v1989_v7 = vpack.c.bf16 %v1962_v61, %v1961_v38  ;;  %v1965_v61 = vld [vmem:[#allocation2 + $0xc1] sm:$0xff] }
 0x1c1   : > { %v822_v23 = vpop.f32.mrf.mxu1 }
 0x1c2   : > { %2820 = vmatmul.msk.bf16.gmra.mxu3 %vm373_vm1, %v1988_v30  ;;  %v823_v11 = vadd.f32 %v822_v23, %v3328_v53  ;;  %v1963_v53 = vld [vmem:[#allocation2 + $0xa9] sm:$0xff] }
 0x1c3   : > { %v1007_v29 = vpop.f32.mrf.mxu2  ;;  %v1990_v10 = vpack.c.bf16 %v1964_v49, %v1963_v53  ;;  %v3908_v23 = vld [vmem:[#allocation3_spill] sm:$0xff] }
 0x1c4   : > { %v1054_v50 = vadd.f32 %v1007_v29, %v818_v0  ;;  %2787 = vmatmul.msk.bf16.gmra.mxu1 %vm373_vm1, %v3338_v60 }
 0x1c5   : > { %v1229_v55 = vpop.f32.mrf.mxu3 }
 0x1c6   : > { %v1276_v22 = vadd.f32 %v1229_v55, %v1054_v50 }
 0x1c7   : > { %v1456_v27 = vpop.f32.mrf.mxu0 }
 0x1c8   : > { %v3604_v4 = vadd.f32 %v1451_v24, %v1276_v22 }
 0x1c9   : > { %v824_v19 = vpop.f32.mrf.mxu1 }
 0x1ca   : > { %2838 = vmatmul.msk.bf16.gmra.mxu0 %vm373_vm1, %v3366_v14 }
 0x1cb   : > { %v1009_v35 = vpop.f32.mrf.mxu2 }
 0x1cc   : > { %v1055_v58 = vadd.f32 %v1009_v35, %v820_v47  ;;  %v3909_v47 = vld [vmem:[#allocation4_spill] sm:$0xff]  ;;  %v3910_v35 = vld [vmem:[#allocation9_spill] sm:$0xff] }
 0x1cd   : > { %v1231_v44 = vpop.f32.mrf.mxu3 }
 0x1ce   : > { %v1277_v48 = vadd.f32 %v1231_v44, %v1055_v58  ;;  %v1966_v58 = vld [vmem:[#allocation2 + $0xc9] sm:$0xff] }
 0x1cf   : > { %v1458_v28 = vpop.f32.mrf.mxu0 }
 0x1d0   : > { %2804 = vmatmul.msk.bf16.gmra.mxu2 %vm373_vm1, %v3342_v63  ;;  %v3611_v60 = vadd.f32 %v1453_v57, %v1277_v48  ;;  %v825_v63 = vadd.f32 %v824_v19, %v3340_v62 }
 0x1d1   : > { %v827_v41 = vpop.f32.mrf.mxu1 }
 0x1d2   : > { %2821 = vmatmul.msk.bf16.gmra.mxu3 %vm373_vm1, %v1989_v7  ;;  %v828_v0 = vadd.f32 %v827_v41, %v3908_v23 }
 0x1d3   : > { %v1012_v13 = vpop.f32.mrf.mxu2 }
 0x1d4   : > { %v1056_v1 = vadd.f32 %v1012_v13, %v823_v11  ;;  %2788 = vmatmul.msk.bf16.gmra.mxu1 %vm373_vm1, %v3366_v14 }
 0x1d5   : > { %v1234_v45 = vpop.f32.mrf.mxu3 }
 0x1d6   : > { %v1278_v56 = vadd.f32 %v1234_v45, %v1056_v1  ;;  %v3912_v1 = vld [vmem:[#allocation5_spill] sm:$0xff] }
 0x1d7   : > { %v1461_v24 = vpop.f32.mrf.mxu0 }
 0x1d8   : > { %v3617_v51 = vadd.f32 %v1456_v27, %v1278_v56 }
 0x1d9   : > { %v829_v34 = vpop.f32.mrf.mxu1 }
 0x1da   : > { %2839 = vmatmul.msk.bf16.gmra.mxu0 %vm373_vm1, %v3394_v37 }
 0x1db   : > { %v1014_v6 = vpop.f32.mrf.mxu2 }
 0x1dc   : > { %v1057_v31 = vadd.f32 %v1014_v6, %v825_v63 }
 0x1dd   : > { %v1236_v39 = vpop.f32.mrf.mxu3 }
 0x1de   : > { %v1279_v59 = vadd.f32 %v1236_v39, %v1057_v31  ;;  %v3913_v31 = vld [vmem:[#allocation6_spill] sm:$0xff] }
 0x1df   : > { %v1463_v30 = vpop.f32.mrf.mxu0 }
 0x1e0   : > { %2805 = vmatmul.msk.bf16.gmra.mxu2 %vm373_vm1, %v3370_v17  ;;  %v3624_v14 = vadd.f32 %v1458_v28, %v1279_v59  ;;  %v830_v17 = vadd.f32 %v829_v34, %v3909_v47  ;;  %v1991_v28 = vpack.c.bf16 %v1966_v58, %v1965_v61  ;;  %v3915_v47 = vld [vmem:[#allocation8_spill] sm:$0xff] }
 0x1e1   : > { %v832_v57 = vpop.f32.mrf.mxu1 }
 0x1e2   : > { %2822 = vmatmul.msk.bf16.gmra.mxu3 %vm373_vm1, %v1990_v10  ;;  %v833_v45 = vadd.f32 %v832_v57, %v3912_v1  ;;  %v1967_v10 = vld [vmem:[#allocation2 + $0xd9] sm:$0xff] }
 0x1e3   : > { %v1017_v62 = vpop.f32.mrf.mxu2 }
 0x1e4   : > { %v1058_v29 = vadd.f32 %v1017_v62, %v828_v0  ;;  %2789 = vmatmul.msk.bf16.gmra.mxu1 %vm373_vm1, %v3394_v37  ;;  %v3911_v37 = vld [vmem:[#allocation7_spill] sm:$0xff] }
 0x1e5   : > { %v1239_v50 = vpop.f32.mrf.mxu3 }
 0x1e6   : > { %v1280_v55 = vadd.f32 %v1239_v50, %v1058_v29  ;;  %v3914_v50 = vld [vmem:[#allocation11_spill] sm:$0xff] }
 0x1e7   : > { %v1466_v22 = vpop.f32.mrf.mxu0 }
 0x1e8   : > { %v3630_v27 = vadd.f32 %v1461_v24, %v1280_v55 }
 0x1e9   : > { %v834_v19 = vpop.f32.mrf.mxu1 }
 0x1ea   : > { %2840 = vmatmul.msk.bf16.gmra.mxu0 %vm373_vm1, %v3910_v35  ;;  %v835_v39 = vadd.f32 %v834_v19, %v3913_v31 }
 0x1eb   : > { %v1019_v38 = vpop.f32.mrf.mxu2 }
 0x1ec   : > { %v1059_v44 = vadd.f32 %v1019_v38, %v830_v17 }
 0x1ed   : > { %v1241_v48 = vpop.f32.mrf.mxu3 }
 0x1ee   : > { %v1281_v7 = vadd.f32 %v1241_v48, %v1059_v44 }
 0x1ef   : > { %v1468_v41 = vpop.f32.mrf.mxu0 }
 0x1f0   : > { %2806 = vmatmul.msk.bf16.gmra.mxu2 %vm373_vm1, %v3911_v37  ;;  %v3637_v11 = vadd.f32 %v1463_v30, %v1281_v7  ;;  %v1968_v30 = vld [vmem:[#allocation2 + $0xe1] sm:$0xff]  ;;  %v1969_v37 = vld [vmem:[#allocation2 + $0xf1] sm:$0xff] }
 0x1f1   : > { %v837_v13 = vpop.f32.mrf.mxu1  ;;  %v1992_v62 = vpack.c.bf16 %v1968_v30, %v1967_v10  ;;  %v3916_v7 = vld [vmem:[#allocation10_spill] sm:$0xff] }
 0x1f2   : > { %2823 = vmatmul.msk.bf16.gmra.mxu3 %vm373_vm1, %v1991_v28  ;;  %v838_v17 = vadd.f32 %v837_v13, %v3915_v47  ;;  %v1970_v13 = vld [vmem:[#allocation2 + $0xf9] sm:$0xff] }
 0x1f3   : > { %v1022_v56 = vpop.f32.mrf.mxu2 }
 0x1f4   : > { %v1060_v24 = vadd.f32 %v1022_v56, %v833_v45  ;;  %2790 = vmatmul.msk.bf16.gmra.mxu1 %vm373_vm1, %v3910_v35 }
 0x1f5   : > { %v1244_v34 = vpop.f32.mrf.mxu3 }
 0x1f6   : > { %v1282_v63 = vadd.f32 %v1244_v34, %v1060_v24  ;;  %v1993_v24 = vpack.c.bf16 %v1970_v13, %v1969_v37 }
 0x1f7   : > { %v1471_v6 = vpop.f32.mrf.mxu0 }
 0x1f8   : > { %v3643_v53 = vadd.f32 %v1466_v22, %v1282_v63 }
 0x1f9   : > { %v839_v49 = vpop.f32.mrf.mxu1 }
 0x1fa   : > { %2841 = vmatmul.msk.bf16.gmra.mxu0 %vm373_vm1, %v3436_v46  ;;  %v840_v28 = vadd.f32 %v839_v49, %v3916_v7 }
 0x1fb   : > { %v1024_v59 = vpop.f32.mrf.mxu2 }
 0x1fc   : > { %v1061_v57 = vadd.f32 %v1024_v59, %v835_v39 }
 0x1fd   : > { %v1246_v23 = vpop.f32.mrf.mxu3 }
 0x1fe   : > { %v1283_v0 = vadd.f32 %v1246_v23, %v1061_v57  ;;  %v1971_v23 = vld [vmem:[#allocation2 + $0x109] sm:$0xff] }
 0x1ff   : > { %v1473_v29 = vpop.f32.mrf.mxu0 }
 0x200   : > { %2807 = vmatmul.msk.bf16.gmra.mxu2 %vm373_vm1, %v3914_v50  ;;  %v3650_v55 = vadd.f32 %v1468_v41, %v1283_v0  ;;  %v1972_v0 = vld [vmem:[#allocation2 + $0x111] sm:$0xff] }
 0x201   : > { %v1618_v22 = vpop.f32.mrf.mxu1 }
 0x202   : > { %2824 = vmatmul.msk.bf16.gmra.mxu3 %vm373_vm1, %v1992_v62 }
 0x203   : > { %v1027_v19 = vpop.f32.mrf.mxu2 }
 0x204   : > { %v1062_v35 = vadd.f32 %v1027_v19, %v838_v17  ;;  %2791 = vmatmul.msk.bf16.gmra.mxu1 %vm373_vm1, %v3436_v46 }
 0x205   : > { %v1249_v38 = vpop.f32.mrf.mxu3 }
 0x206   : > { %v1284_v61 = vadd.f32 %v1249_v38, %v1062_v35 }
 0x207   : > { %v2285_v58 = vpop.f32.mrf.mxu0 }
 0x208   : > { %v3656_v44 = vadd.f32 %v1471_v6, %v1284_v61  ;;  %v1698_v6 = vadd.f32 %v1618_v22, %v3431_v25  ;;  %v3917_v25 = vld [vmem:[#allocation12_spill] sm:$0xff]  ;;  %v1994_v22 = vpack.c.bf16 %v1972_v0, %v1971_v23 }
 0x209   : > { %v1620_v48 = vpop.f32.mrf.mxu1 }
 0x20a   : > { %2842 = vmatmul.msk.bf16.gmra.mxu0 %vm373_vm1, %v3454_v9  ;;  %v1699_v57 = vadd.f32 %v1620_v48, %v3917_v25 }
 0x20b   : > { %v1029_v41 = vpop.f32.mrf.mxu2 }
 0x20c   : > { %v1063_v1 = vadd.f32 %v1029_v41, %v840_v28 }
 0x20d   : > { %v1251_v45 = vpop.f32.mrf.mxu3 }
 0x20e   : > { %v1285_v56 = vadd.f32 %v1251_v45, %v1063_v1 }
 0x20f   : > { %v2287_v46 = vpop.f32.mrf.mxu0 }
 0x210   : > { %2808 = vmatmul.msk.bf16.gmra.mxu2 %vm373_vm1, %v3438_v3  ;;  %v3663_v34 = vadd.f32 %v1473_v29, %v1285_v56 }
 0x211   : > { %v1623_v63 = vpop.f32.mrf.mxu1 }
 0x212   : > { %2825 = vmatmul.msk.bf16.gmra.mxu3 %vm373_vm1, %v1993_v24  ;;  %v1700_v48 = vadd.f32 %v1623_v63, %v3449_v2 }
 0x213   : > { %v1841_v49 = vpop.f32.mrf.mxu2 }
 0x214   : > { %v1921_v31 = vadd.f32 %v1841_v49, %v1698_v6  ;;  %2792 = vmatmul.msk.bf16.gmra.mxu1 %vm373_vm1, %v3454_v9  ;;  %v3918_v6 = vld [vmem:[#allocation13_spill] sm:$0xff] }
 0x215   : > { %v2063_v39 = vpop.f32.mrf.mxu3 }
 0x216   : > { %v2143_v59 = vadd.f32 %v2063_v39, %v1921_v31 }
 0x217   : > { %v2290_v3 = vpop.f32.mrf.mxu0 }
 0x218   : > { %v2365_v10 = vadd.f32 %v2285_v58, %v2143_v59  ;;  %v1974_v59 = vld [vmem:[#allocation2 + $0x129] sm:$0xff] }
 0x219   : > { %v1625_v30 = vpop.f32.mrf.mxu1 }
 0x21a   : > { %2397 = vst.msk [vmem:[%s3674_s30] sm:$0xff] %vm373_vm1, %v2365_v10  ;;  %2843 = vmatmul.msk.bf16.gmra.mxu0 %vm373_vm1, %v3472_v12  ;;  %v2498_v17 = vmul.f32 %v2365_v10, %v2365_v10  ;;  %v2429_v38 = vsel %vm373_vm1, %v2365_v10, 0.0  ;;  %v1701_v49 = vadd.f32 %v1625_v30, %v3918_v6 }
 0x21b   : > { %v1843_v9 = vpop.f32.mrf.mxu2 }
 0x21c   : > { %v1922_v62 = vadd.f32 %v1843_v9, %v1699_v57  ;;  %v2530_v41 = vsel %vm373_vm1, %v2498_v17, 0.0 }
 0x21d   : > { %v2065_v29 = vpop.f32.mrf.mxu3 }
 0x21e   : > { %v2144_v50 = vadd.f32 %v2065_v29, %v1922_v62 }
 0x21f   : > { %v2292_v47 = vpop.f32.mrf.mxu0 }
 0x220   : > { %v2366_v19 = vadd.f32 %v2287_v46, %v2144_v50  ;;  %2809 = vmatmul.msk.bf16.gmra.mxu2 %vm373_vm1, %v3456_v16 }
 0x221   : > { %v1628_v35 = vpop.f32.mrf.mxu1 }
 0x222   : > { %2398 = vst.msk [vmem:[%s3674_s30 + $0x8] sm:$0xff] %vm373_vm1, %v2366_v19  ;;  %v2430_v61 = vsel %vm373_vm1, %v2366_v19, 0.0  ;;  %v2499_v58 = vmul.f32 %v2366_v19, %v2366_v19  ;;  %2826 = vmatmul.msk.bf16.gmra.mxu3 %vm373_vm1, %v1994_v22  ;;  %v3919_v22 = vld [vmem:[#allocation14_spill] sm:$0xff] }
 0x223   : > { %v2431_v7 = vadd.f32 %v2430_v61, %v2429_v38  ;;  %v1846_v28 = vpop.f32.mrf.mxu2  ;;  %v1702_v17 = vadd.f32 %v1628_v35, %v3919_v22 }
 0x224   : > { %v2531_v37 = vsel %vm373_vm1, %v2499_v58, 0.0  ;;  %v1923_v16 = vadd.f32 %v1846_v28, %v1700_v48  ;;  %2793 = vmatmul.msk.bf16.gmra.mxu1 %vm373_vm1, %v3472_v12  ;;  %v1973_v12 = vld [vmem:[#allocation2 + $0x121] sm:$0xff] }
 0x225   : > { %v2532_v13 = vadd.f32 %v2531_v37, %v2530_v41  ;;  %v2068_v1 = vpop.f32.mrf.mxu3  ;;  %v1995_v23 = vpack.c.bf16 %v1974_v59, %v1973_v12 }
 0x226   : > { %v2145_v45 = vadd.f32 %v2068_v1, %v1923_v16  ;;  %v3920_v16 = vld [vmem:[#allocation15_spill] sm:$0xff] }
 0x227   : > { %v2295_v56 = vpop.f32.mrf.mxu0 }
 0x228   : > { %v2367_v24 = vadd.f32 %v2290_v3, %v2145_v45 }
 0x229   : > { %v1630_v46 = vpop.f32.mrf.mxu1 }
 0x22a   : > { %2399 = vst.msk [vmem:[%s3674_s30 + $0x10] sm:$0xff] %vm373_vm1, %v2367_v24  ;;  %v2432_v2 = vsel %vm373_vm1, %v2367_v24, 0.0  ;;  %v2500_v63 = vmul.f32 %v2367_v24, %v2367_v24  ;;  %2844 = vmatmul.msk.bf16.gmra.mxu0 %vm373_vm1, %v3488_v18  ;;  %v1976_v24 = vld [vmem:[#allocation2 + $0x141] sm:$0xff] }
 0x22b   : > { %v2433_v31 = vadd.f32 %v2432_v2, %v2431_v7  ;;  %v1848_v39 = vpop.f32.mrf.mxu2 }
 0x22c   : > { %v2533_v10 = vsel %vm373_vm1, %v2500_v63, 0.0  ;;  %v1924_v25 = vadd.f32 %v1848_v39, %v1701_v49  ;;  %v1532_v49 = vld [vmem:[#allocation2 + $0x13a] sm:$0xff] }
 0x22d   : > { %v2534_v3 = vadd.f32 %v2533_v10, %v2532_v13  ;;  %v2070_v57 = vpop.f32.mrf.mxu3  ;;  %v1703_v13 = vadd.f32 %v1630_v46, %v3920_v16  ;;  %v1978_v16 = vld [vmem:[#allocation2 + $0x159] sm:$0xff] }
 0x22e   : > { %v2146_v9 = vadd.f32 %v2070_v57, %v1924_v25  ;;  %v3921_v57 = vld [vmem:[#allocation16_spill] sm:$0xff] }
 0x22f   : > { %v2297_v0 = vpop.f32.mrf.mxu0 }
 0x230   : > { %v2368_v62 = vadd.f32 %v2292_v47, %v2146_v9  ;;  %2810 = vmatmul.msk.bf16.gmra.mxu2 %vm373_vm1, %v3474_v36 }
 0x231   : > { %v1633_v30 = vpop.f32.mrf.mxu1 }
 0x232   : > { %2400 = vst.msk [vmem:[%s3674_s30 + $0x18] sm:$0xff] %vm373_vm1, %v2368_v62  ;;  %v2434_v29 = vsel %vm373_vm1, %v2368_v62, 0.0  ;;  %v2501_v50 = vmul.f32 %v2368_v62, %v2368_v62  ;;  %2827 = vmatmul.msk.bf16.gmra.mxu3 %vm373_vm1, %v1995_v23  ;;  %v1704_v9 = vadd.f32 %v1633_v30, %v3921_v57  ;;  %v2202_v57 = vld [vmem:[#allocation2 + $0x172] sm:$0xff] }
 0x233   : > { %v2435_v19 = vadd.f32 %v2434_v29, %v2433_v31  ;;  %v1851_v38 = vpop.f32.mrf.mxu2  ;;  %v1533_v31 = vld [vmem:[#allocation2 + $0x142] sm:$0xff] }
 0x234   : > { %v2535_v61 = vsel %vm373_vm1, %v2501_v50, 0.0  ;;  %v1925_v58 = vadd.f32 %v1851_v38, %v1702_v17  ;;  %2794 = vmatmul.msk.bf16.gmra.mxu1 %vm373_vm1, %v3488_v18  ;;  %v1975_v18 = vld [vmem:[#allocation2 + $0x139] sm:$0xff]  ;;  %v1755_v38 = vld [vmem:[#allocation2 + $0x150] sm:$0xff] }
 0x235   : > { %v2536_v36 = vadd.f32 %v2535_v61, %v2534_v3  ;;  %v2073_v47 = vpop.f32.mrf.mxu3  ;;  %v1996_v12 = vpack.c.bf16 %v1976_v24, %v1975_v18  ;;  %v1756_v61 = vld [vmem:[#allocation2 + $0x158] sm:$0xff] }
 0x236   : > { %v2147_v48 = vadd.f32 %v2073_v47, %v1925_v58  ;;  %v3922_v47 = vld [vmem:[#allocation17_spill] sm:$0xff]  ;;  %v1534_v24 = vld [vmem:[#allocation2 + $0x152] sm:$0xff] }
 0x237   : > { %v2300_v7 = vpop.f32.mrf.mxu0 }
 0x238   : > { %v2369_v28 = vadd.f32 %v2295_v56, %v2147_v48 }
 0x239   : > { %v1635_v41 = vpop.f32.mrf.mxu1 }
 0x23a   : > { %2401 = vst.msk [vmem:[%s3674_s30 + $0x20] sm:$0xff] %vm373_vm1, %v2369_v28  ;;  %v2436_v35 = vsel %vm373_vm1, %v2369_v28, 0.0  ;;  %v2502_v37 = vmul.f32 %v2369_v28, %v2369_v28  ;;  %2845 = vmatmul.msk.bf16.gmra.mxu0 %vm373_vm1, %v3516_v54  ;;  %v1552_v54 = vpack.c.bf16 %v1533_v31, %v1532_v49  ;;  %v1705_v48 = vadd.f32 %v1635_v41, %v3922_v47 }
 0x23b   : > { %v2437_v1 = vadd.f32 %v2436_v35, %v2435_v19  ;;  %v1853_v45 = vpop.f32.mrf.mxu2 }
 0x23c   : > { %v2537_v2 = vsel %vm373_vm1, %v2502_v37, 0.0  ;;  %v1926_v63 = vadd.f32 %v1853_v45, %v1703_v13  ;;  %v1977_v37 = vld [vmem:[#allocation2 + $0x151] sm:$0xff] }
 0x23d   : > { %v2538_v56 = vadd.f32 %v2537_v2, %v2536_v36  ;;  %v2075_v6 = vpop.f32.mrf.mxu3  ;;  %v1535_v2 = vld [vmem:[#allocation2 + $0x15a] sm:$0xff] }
 0x23e   : > { %v2148_v39 = vadd.f32 %v2075_v6, %v1926_v63 }
 0x23f   : > { %v2302_v59 = vpop.f32.mrf.mxu0 }
 0x240   : > { %v2370_v10 = vadd.f32 %v2297_v0, %v2148_v39  ;;  %2811 = vmatmul.msk.bf16.gmra.mxu2 %vm373_vm1, %v3490_v42 }
 0x241   : > { %v1638_v46 = vpop.f32.mrf.mxu1 }
 0x242   : > { %2402 = vst.msk [vmem:[%s3674_s30 + $0x28] sm:$0xff] %vm373_vm1, %v2370_v10  ;;  %v2438_v25 = vsel %vm373_vm1, %v2370_v10, 0.0  ;;  %v2503_v3 = vmul.f32 %v2370_v10, %v2370_v10  ;;  %2828 = vmatmul.msk.bf16.gmra.mxu3 %vm373_vm1, %v1996_v12  ;;  %v3923_v12 = vld [vmem:[#allocation18_spill] sm:$0xff] }
 0x243   : > { %v2439_v23 = vadd.f32 %v2438_v25, %v2437_v1  ;;  %v1856_v62 = vpop.f32.mrf.mxu2  ;;  %v1775_v1 = vpack.c.bf16 %v1756_v61, %v1755_v38  ;;  %v1706_v10 = vadd.f32 %v1638_v46, %v3923_v12  ;;  %v1758_v46 = vld [vmem:[#allocation2 + $0x170] sm:$0xff] }
 0x244   : > { %v2539_v29 = vsel %vm373_vm1, %v2503_v3, 0.0  ;;  %v1927_v0 = vadd.f32 %v1856_v62, %v1704_v9  ;;  %2795 = vmatmul.msk.bf16.gmra.mxu1 %vm373_vm1, %v1552_v54  ;;  %v2201_v3 = vld [vmem:[#allocation2 + $0x16a] sm:$0xff] }
 0x245   : > { %v2540_v42 = vadd.f32 %v2539_v29, %v2538_v56  ;;  %v2078_v50 = vpop.f32.mrf.mxu3  ;;  %v1997_v56 = vpack.c.bf16 %v1978_v16, %v1977_v37  ;;  %v2204_v12 = vld [vmem:[#allocation2 + $0x18a] sm:$0xff] }
 0x246   : > { %v2149_v22 = vadd.f32 %v2078_v50, %v1927_v0  ;;  %v2220_v0 = vpack.c.bf16 %v2202_v57, %v2201_v3 }
 0x247   : > { %v2305_v17 = vpop.f32.mrf.mxu0 }
 0x248   : > { %v2371_v19 = vadd.f32 %v2300_v7, %v2149_v22  ;;  %v1757_v22 = vld [vmem:[#allocation2 + $0x168] sm:$0xff] }
 0x249   : > { %v1640_v58 = vpop.f32.mrf.mxu1  ;;  %v1776_v16 = vpack.c.bf16 %v1758_v46, %v1757_v22  ;;  %v3926_v22 = vld [vmem:[#allocation21_spill] sm:$0xff] }
 0x24a   : > { %2403 = vst.msk [vmem:[%s3674_s30 + $0x30] sm:$0xff] %vm373_vm1, %v2371_v19  ;;  %v2440_v30 = vsel %vm373_vm1, %v2371_v19, 0.0  ;;  %v2504_v36 = vmul.f32 %v2371_v19, %v2371_v19  ;;  %2846 = vmatmul.msk.bf16.gmra.mxu0 %vm373_vm1, %v3530_v15  ;;  %v1553_v15 = vpack.c.bf16 %v1535_v2, %v1534_v24 }
 0x24b   : > { %v2441_v28 = vadd.f32 %v2440_v30, %v2439_v23  ;;  %v1858_v35 = vpop.f32.mrf.mxu2  ;;  %v3924_v30 = vld [vmem:[#allocation19_spill] sm:$0xff] }
 0x24c   : > { %v2541_v7 = vsel %vm373_vm1, %v2504_v36, 0.0  ;;  %v1928_v13 = vadd.f32 %v1858_v35, %v1705_v48  ;;  %v1707_v36 = vadd.f32 %v1640_v58, %v3924_v30  ;;  %v1980_v35 = vld [vmem:[#allocation2 + $0x171] sm:$0xff]  ;;  %v1982_v30 = vld [vmem:[#allocation2 + $0x189] sm:$0xff] }
 0x24d   : > { %v2542_v45 = vadd.f32 %v2541_v7, %v2540_v42  ;;  %v2080_v18 = vpop.f32.mrf.mxu3 }
 0x24e   : > { %v2150_v63 = vadd.f32 %v2080_v18, %v1928_v13 }
 0x24f   : > { %v2307_v6 = vpop.f32.mrf.mxu0 }
 0x250   : > { %v2372_v41 = vadd.f32 %v2302_v59, %v2150_v63  ;;  %2812 = vmatmul.msk.bf16.gmra.mxu2 %vm373_vm1, %v1775_v1 }
 0x251   : > { %v1643_v49 = vpop.f32.mrf.mxu1 }
 0x252   : > { %2404 = vst.msk [vmem:[%s3674_s30 + $0x38] sm:$0xff] %vm373_vm1, %v2372_v41  ;;  %v2442_v31 = vsel %vm373_vm1, %v2372_v41, 0.0  ;;  %v2505_v39 = vmul.f32 %v2372_v41, %v2372_v41  ;;  %2829 = vmatmul.msk.bf16.gmra.mxu3 %vm373_vm1, %v1997_v56  ;;  %v3925_v56 = vld [vmem:[#allocation20_spill] sm:$0xff] }
 0x253   : > { %v2443_v54 = vadd.f32 %v2442_v31, %v2441_v28  ;;  %v1861_v25 = vpop.f32.mrf.mxu2  ;;  %v1979_v28 = vld [vmem:[#allocation2 + $0x169] sm:$0xff]  ;;  %v1708_v41 = vadd.f32 %v1643_v49, %v3925_v56 }
 0x254   : > { %v2543_v59 = vsel %vm373_vm1, %v2505_v39, 0.0  ;;  %v1929_v9 = vadd.f32 %v1861_v25, %v1706_v10  ;;  %2796 = vmatmul.msk.bf16.gmra.mxu1 %vm373_vm1, %v1553_v15  ;;  %v2203_v39 = vld [vmem:[#allocation2 + $0x182] sm:$0xff] }
 0x255   : > { %v2544_v23 = vadd.f32 %v2543_v59, %v2542_v45  ;;  %v2083_v62 = vpop.f32.mrf.mxu3  ;;  %v1998_v45 = vpack.c.bf16 %v1980_v35, %v1979_v28  ;;  %v2221_v57 = vpack.c.bf16 %v2204_v12, %v2203_v39  ;;  %v1760_v49 = vld [vmem:[#allocation2 + $0x188] sm:$0xff] }
 0x256   : > { %v2151_v29 = vadd.f32 %v2083_v62, %v1929_v9 }
 0x257   : > { %v2310_v42 = vpop.f32.mrf.mxu0 }
 0x258   : > { %v2373_v50 = vadd.f32 %v2305_v17, %v2151_v29 }
 0x259   : > { %v1645_v19 = vpop.f32.mrf.mxu1 }
 0x25a   : > { %2405 = vst.msk [vmem:[%s3674_s30 + $0x40] sm:$0xff] %vm373_vm1, %v2373_v50  ;;  %v2444_v38 = vsel %vm373_vm1, %v2373_v50, 0.0  ;;  %v2506_v61 = vmul.f32 %v2373_v50, %v2373_v50  ;;  %2847 = vmatmul.msk.bf16.gmra.mxu0 %vm373_vm1, %v2220_v0  ;;  %v1709_v46 = vadd.f32 %v1645_v19, %v3926_v22 }
 0x25b   : > { %v2445_v47 = vadd.f32 %v2444_v38, %v2443_v54  ;;  %v1863_v48 = vpop.f32.mrf.mxu2 }
 0x25c   : > { %v2545_v37 = vsel %vm373_vm1, %v2506_v61, 0.0  ;;  %v1930_v17 = vadd.f32 %v1863_v48, %v1707_v36  ;;  %v1981_v61 = vld [vmem:[#allocation2 + $0x181] sm:$0xff] }
 0x25d   : > { %v2546_v7 = vadd.f32 %v2545_v37, %v2544_v23  ;;  %v2085_v13 = vpop.f32.mrf.mxu3  ;;  %v1759_v23 = vld [vmem:[#allocation2 + $0x180] sm:$0xff]  ;;  %v1999_v37 = vpack.c.bf16 %v1982_v30, %v1981_v61 }
 0x25e   : > { %v2152_v1 = vadd.f32 %v2085_v13, %v1930_v17 }
 0x25f   : > { %v2312_v18 = vpop.f32.mrf.mxu0 }
 0x260   : > { %v2374_v24 = vadd.f32 %v2307_v6, %v2152_v1  ;;  %2813 = vmatmul.msk.bf16.gmra.mxu2 %vm373_vm1, %v1776_v16 }
 0x261   : > { %v1648_v58 = vpop.f32.mrf.mxu1 }
 0x262   : > { %2406 = vst.msk [vmem:[%s3674_s30 + $0x48] sm:$0xff] %vm373_vm1, %v2374_v24  ;;  %v2446_v2 = vsel %vm373_vm1, %v2374_v24, 0.0  ;;  %v2507_v63 = vmul.f32 %v2374_v24, %v2374_v24  ;;  %2830 = vmatmul.msk.bf16.gmra.mxu3 %vm373_vm1, %v1998_v45  ;;  %v1710_v1 = vadd.f32 %v1648_v58, %v3539_v33  ;;  %v1762_v33 = vld [vmem:[#allocation2 + $0x1a0] sm:$0xff] }
 0x263   : > { %v2447_v15 = vadd.f32 %v2446_v2, %v2445_v47  ;;  %v1866_v31 = vpop.f32.mrf.mxu2  ;;  %v1777_v47 = vpack.c.bf16 %v1760_v49, %v1759_v23  ;;  %v2205_v2 = vld [vmem:[#allocation2 + $0x19a] sm:$0xff] }
 0x264   : > { %v2547_v10 = vsel %vm373_vm1, %v2507_v63, 0.0  ;;  %v1931_v6 = vadd.f32 %v1866_v31, %v1708_v41  ;;  %2797 = vmatmul.msk.bf16.gmra.mxu1 %vm373_vm1, %v2220_v0  ;;  %v2206_v63 = vld [vmem:[#allocation2 + $0x1a2] sm:$0xff]  ;;  %v1983_v23 = vld [vmem:[#allocation2 + $0x199] sm:$0xff] }
 0x265   : > { %v2548_v54 = vadd.f32 %v2547_v10, %v2546_v7  ;;  %v2088_v25 = vpop.f32.mrf.mxu3  ;;  %v2222_v39 = vpack.c.bf16 %v2206_v63, %v2205_v2  ;;  %v1984_v49 = vld [vmem:[#allocation2 + $0x1a1] sm:$0xff] }
 0x266   : > { %v2153_v3 = vadd.f32 %v2088_v25, %v1931_v6  ;;  %v1761_v6 = vld [vmem:[#allocation2 + $0x198] sm:$0xff] }
 0x267   : > { %v2315_v59 = vpop.f32.mrf.mxu0 }
 0x268   : > { %v2375_v9 = vadd.f32 %v2310_v42, %v2153_v3 }
 0x269   : > { %v1650_v62 = vpop.f32.mrf.mxu1 }
 0x26a   : > { %2407 = vst.msk [vmem:[%s3674_s30 + $0x50] sm:$0xff] %vm373_vm1, %v2375_v9  ;;  %v2448_v29 = vsel %vm373_vm1, %v2375_v9, 0.0  ;;  %v2508_v50 = vmul.f32 %v2375_v9, %v2375_v9  ;;  %2848 = vmatmul.msk.bf16.gmra.mxu0 %vm373_vm1, %v2221_v57  ;;  %v1711_v3 = vadd.f32 %v1650_v62, %v3544_v40 }
 0x26b   : > { %v2449_v0 = vadd.f32 %v2448_v29, %v2447_v15  ;;  %v1868_v38 = vpop.f32.mrf.mxu2 }
 0x26c   : > { %v2549_v36 = vsel %vm373_vm1, %v2508_v50, 0.0  ;;  %v1932_v42 = vadd.f32 %v1868_v38, %v1709_v46  ;;  %v1778_v50 = vpack.c.bf16 %v1762_v33, %v1761_v6  ;;  %v2000_v38 = vpack.c.bf16 %v1984_v49, %v1983_v23 }
 0x26d   : > { %v2550_v48 = vadd.f32 %v2549_v36, %v2548_v54  ;;  %v2090_v28 = vpop.f32.mrf.mxu3 }
 0x26e   : > { %v2154_v35 = vadd.f32 %v2090_v28, %v1932_v42 }
 0x26f   : > { %v2317_v17 = vpop.f32.mrf.mxu0 }
 0x270   : > { %v2376_v16 = vadd.f32 %v2312_v18, %v2154_v35  ;;  %2814 = vmatmul.msk.bf16.gmra.mxu2 %vm373_vm1, %v1777_v47 }
 0x271   : > { %v1653_v19 = vpop.f32.mrf.mxu1 }
 0x272   : > { %2408 = vst.msk [vmem:[%s3674_s30 + $0x58] sm:$0xff] %vm373_vm1, %v2376_v16  ;;  %v2450_v7 = vsel %vm373_vm1, %v2376_v16, 0.0  ;;  %v2509_v13 = vmul.f32 %v2376_v16, %v2376_v16  ;;  %2831 = vmatmul.msk.bf16.gmra.mxu3 %vm373_vm1, %v1999_v37  ;;  %v1712_v42 = vadd.f32 %v1653_v19, %v3550_v5 }
 0x273   : > { %v2451_v45 = vadd.f32 %v2450_v7, %v2449_v0  ;;  %v1871_v24 = vpop.f32.mrf.mxu2 }
 0x274   : > { %v2551_v56 = vsel %vm373_vm1, %v2509_v13, 0.0  ;;  %v1933_v18 = vadd.f32 %v1871_v24, %v1710_v1  ;;  %2798 = vmatmul.msk.bf16.gmra.mxu1 %vm373_vm1, %v2221_v57 }
 0x275   : > { %v2552_v41 = vadd.f32 %v2551_v56, %v2550_v48  ;;  %v2093_v15 = vpop.f32.mrf.mxu3 }
 0x276   : > { %v2155_v31 = vadd.f32 %v2093_v15, %v1933_v18 }
 0x277   : > { %v2320_v12 = vpop.f32.mrf.mxu0 }
 0x278   : > { %v2377_v10 = vadd.f32 %v2315_v59, %v2155_v31 }
 0x279   : > { %v1655_v58 = vpop.f32.mrf.mxu1 }
 0x27a   : > { %2409 = vst.msk [vmem:[%s3674_s30 + $0x60] sm:$0xff] %vm373_vm1, %v2377_v10  ;;  %v2452_v54 = vsel %vm373_vm1, %v2377_v10, 0.0  ;;  %v2510_v25 = vmul.f32 %v2377_v10, %v2377_v10  ;;  %2849 = vmatmul.msk.bf16.gmra.mxu0 %vm373_vm1, %v2222_v39  ;;  %v1713_v5 = vadd.f32 %v1655_v58, %v3557_v21 }
 0x27b   : > { %v2453_v57 = vadd.f32 %v2452_v54, %v2451_v45  ;;  %v1873_v9 = vpop.f32.mrf.mxu2 }
 0x27c   : > { %v2553_v29 = vsel %vm373_vm1, %v2510_v25, 0.0  ;;  %v1934_v59 = vadd.f32 %v1873_v9, %v1711_v3 }
 0x27d   : > { %v2554_v22 = vadd.f32 %v2553_v29, %v2552_v41  ;;  %v2095_v46 = vpop.f32.mrf.mxu3 }
 0x27e   : > { %v2156_v0 = vadd.f32 %v2095_v46, %v1934_v59 }
 0x27f   : > { %v2322_v61 = vpop.f32.mrf.mxu0 }
 0x280   : > { %v2378_v30 = vadd.f32 %v2317_v17, %v2156_v0  ;;  %2815 = vmatmul.msk.bf16.gmra.mxu2 %vm373_vm1, %v1778_v50 }
 0x281   : > { %v1658_v40 = vpop.f32.mrf.mxu1 }
 0x282   : > { %2410 = vst.msk [vmem:[%s3674_s30 + $0x68] sm:$0xff] %vm373_vm1, %v2378_v30  ;;  %v2454_v62 = vsel %vm373_vm1, %v2378_v30, 0.0  ;;  %v2511_v36 = vmul.f32 %v2378_v30, %v2378_v30  ;;  %2832 = vmatmul.msk.bf16.gmra.mxu3 %vm373_vm1, %v2000_v38  ;;  %v1714_v33 = vadd.f32 %v1658_v40, %v3564_v8 }
 0x283   : > { %v2455_v47 = vadd.f32 %v2454_v62, %v2453_v57  ;;  %v1876_v48 = vpop.f32.mrf.mxu2 }
 0x284   : > { %v2555_v28 = vsel %vm373_vm1, %v2511_v36, 0.0  ;;  %v1935_v35 = vadd.f32 %v1876_v48, %v1712_v42 }
 0x285   : > { %v2556_v37 = vadd.f32 %v2555_v28, %v2554_v22  ;;  %v2098_v17 = vpop.f32.mrf.mxu3 }
 0x286   : > { %v2157_v16 = vadd.f32 %v2098_v17, %v1935_v35 }
 0x287   : > { %v2325_v7 = vpop.f32.mrf.mxu0 }
 0x288   : > { %v2379_v13 = vadd.f32 %v2320_v12, %v2157_v16 }
 0x289   : > { %v1660_v1 = vpop.f32.mrf.mxu1 }
 0x28a   : > { %2411 = vst.msk [vmem:[%s3674_s30 + $0x70] sm:$0xff] %vm373_vm1, %v2379_v13  ;;  %v2456_v45 = vsel %vm373_vm1, %v2379_v13, 0.0  ;;  %v2512_v24 = vmul.f32 %v2379_v13, %v2379_v13  ;;  %v1715_v22 = vadd.f32 %v1660_v1, %v3571_v26 }
 0x28b   : > { %v2457_v19 = vadd.f32 %v2456_v45, %v2455_v47  ;;  %v1878_v2 = vpop.f32.mrf.mxu2 }
 0x28c   : > { %v2557_v63 = vsel %vm373_vm1, %v2512_v24, 0.0  ;;  %v1936_v56 = vadd.f32 %v1878_v2, %v1713_v5 }
 0x28d   : > { %v2558_v18 = vadd.f32 %v2557_v63, %v2556_v37  ;;  %v2100_v41 = vpop.f32.mrf.mxu3 }
 0x28e   : > { %v2158_v15 = vadd.f32 %v2100_v41, %v1936_v56 }
 0x28f   : > { %v2327_v31 = vpop.f32.mrf.mxu0 }
 0x290   : > { %v2380_v39 = vadd.f32 %v2322_v61, %v2158_v15 }
 0x291   : > { %v1663_v12 = vpop.f32.mrf.mxu1 }
 0x292   : > { %2412 = vst.msk [vmem:[%s3674_s30 + $0x78] sm:$0xff] %vm373_vm1, %v2380_v39  ;;  %v2458_v10 = vsel %vm373_vm1, %v2380_v39, 0.0  ;;  %v2513_v6 = vmul.f32 %v2380_v39, %v2380_v39  ;;  %v1716_v28 = vadd.f32 %v1663_v12, %v3578_v52 }
 0x293   : > { %v2459_v21 = vadd.f32 %v2458_v10, %v2457_v19  ;;  %v1881_v58 = vpop.f32.mrf.mxu2 }
 0x294   : > { %v2559_v54 = vsel %vm373_vm1, %v2513_v6, 0.0  ;;  %v1937_v25 = vadd.f32 %v1881_v58, %v1714_v33 }
 0x295   : > { %v2560_v3 = vadd.f32 %v2559_v54, %v2558_v18  ;;  %v2103_v57 = vpop.f32.mrf.mxu3 }
 0x296   : > { %v2159_v9 = vadd.f32 %v2103_v57, %v1937_v25 }
 0x297   : > { %v2330_v23 = vpop.f32.mrf.mxu0 }
 0x298   : > { %v2381_v49 = vadd.f32 %v2325_v7, %v2159_v9 }
 0x299   : > { %v1665_v29 = vpop.f32.mrf.mxu1 }
 0x29a   : > { %2413 = vst.msk [vmem:[%s3674_s30 + $0x80] sm:$0xff] %vm373_vm1, %v2381_v49  ;;  %v2460_v59 = vsel %vm373_vm1, %v2381_v49, 0.0  ;;  %v2514_v50 = vmul.f32 %v2381_v49, %v2381_v49  ;;  %v1717_v2 = vadd.f32 %v1665_v29, %v3585_v32 }
 0x29b   : > { %v2461_v8 = vadd.f32 %v2460_v59, %v2459_v21  ;;  %v1883_v46 = vpop.f32.mrf.mxu2 }
 0x29c   : > { %v2561_v0 = vsel %vm373_vm1, %v2514_v50, 0.0  ;;  %v1938_v38 = vadd.f32 %v1883_v46, %v1715_v22 }
 0x29d   : > { %v2562_v61 = vadd.f32 %v2561_v0, %v2560_v3  ;;  %v2105_v30 = vpop.f32.mrf.mxu3 }
 0x29e   : > { %v2160_v40 = vadd.f32 %v2105_v30, %v1938_v38 }
 0x29f   : > { %v2332_v62 = vpop.f32.mrf.mxu0 }
 0x2a0   : > { %v2382_v36 = vadd.f32 %v2327_v31, %v2160_v40 }
 0x2a1   : > { %v1668_v42 = vpop.f32.mrf.mxu1 }
 0x2a2   : > { %2414 = vst.msk [vmem:[%s3674_s30 + $0x88] sm:$0xff] %vm373_vm1, %v2382_v36  ;;  %v2462_v47 = vsel %vm373_vm1, %v2382_v36, 0.0  ;;  %v2515_v48 = vmul.f32 %v2382_v36, %v2382_v36  ;;  %v1718_v21 = vadd.f32 %v1668_v42, %v3591_v20 }
 0x2a3   : > { %v2463_v26 = vadd.f32 %v2462_v47, %v2461_v8  ;;  %v1886_v35 = vpop.f32.mrf.mxu2 }
 0x2a4   : > { %v2563_v37 = vsel %vm373_vm1, %v2515_v48, 0.0  ;;  %v1939_v17 = vadd.f32 %v1886_v35, %v1716_v28 }
 0x2a5   : > { %v2564_v16 = vadd.f32 %v2563_v37, %v2562_v61  ;;  %v2108_v7 = vpop.f32.mrf.mxu3 }
 0x2a6   : > { %v2161_v13 = vadd.f32 %v2108_v7, %v1939_v17 }
 0x2a7   : > { %v2335_v1 = vpop.f32.mrf.mxu0 }
 0x2a8   : > { %v2383_v45 = vadd.f32 %v2330_v23, %v2161_v13 }
 0x2a9   : > { %v1670_v24 = vpop.f32.mrf.mxu1 }
 0x2aa   : > { %2415 = vst.msk [vmem:[%s3674_s30 + $0x90] sm:$0xff] %vm373_vm1, %v2383_v45  ;;  %v2464_v5 = vsel %vm373_vm1, %v2383_v45, 0.0  ;;  %v2516_v19 = vmul.f32 %v2383_v45, %v2383_v45  ;;  %v1719_v22 = vadd.f32 %v1670_v24, %v3598_v43 }
 0x2ab   : > { %v2465_v52 = vadd.f32 %v2464_v5, %v2463_v26  ;;  %v1888_v63 = vpop.f32.mrf.mxu2 }
 0x2ac   : > { %v2565_v56 = vsel %vm373_vm1, %v2516_v19, 0.0  ;;  %v1940_v18 = vadd.f32 %v1888_v63, %v1717_v2 }
 0x2ad   : > { %v2566_v41 = vadd.f32 %v2565_v56, %v2564_v16  ;;  %v2110_v15 = vpop.f32.mrf.mxu3 }
 0x2ae   : > { %v2162_v31 = vadd.f32 %v2110_v15, %v1940_v18 }
 0x2af   : > { %v2337_v39 = vpop.f32.mrf.mxu0 }
 0x2b0   : > { %v2384_v12 = vadd.f32 %v2332_v62, %v2162_v31 }
 0x2b1   : > { %v1673_v10 = vpop.f32.mrf.mxu1 }
 0x2b2   : > { %2416 = vst.msk [vmem:[%s3674_s30 + $0x98] sm:$0xff] %vm373_vm1, %v2384_v12  ;;  %v2466_v6 = vsel %vm373_vm1, %v2384_v12, 0.0  ;;  %v2517_v33 = vmul.f32 %v2384_v12, %v2384_v12  ;;  %v1720_v48 = vadd.f32 %v1673_v10, %v3604_v4 }
 0x2b3   : > { %v2467_v32 = vadd.f32 %v2466_v6, %v2465_v52  ;;  %v1891_v58 = vpop.f32.mrf.mxu2 }
 0x2b4   : > { %v2567_v54 = vsel %vm373_vm1, %v2517_v33, 0.0  ;;  %v1941_v25 = vadd.f32 %v1891_v58, %v1718_v21 }
 0x2b5   : > { %v2568_v3 = vadd.f32 %v2567_v54, %v2566_v41  ;;  %v2113_v57 = vpop.f32.mrf.mxu3 }
 0x2b6   : > { %v2163_v9 = vadd.f32 %v2113_v57, %v1941_v25 }
 0x2b7   : > { %v2340_v23 = vpop.f32.mrf.mxu0 }
 0x2b8   : > { %v2385_v49 = vadd.f32 %v2335_v1, %v2163_v9 }
 0x2b9   : > { %v1675_v29 = vpop.f32.mrf.mxu1 }
 0x2ba   : > { %2417 = vst.msk [vmem:[%s3674_s30 + $0xa0] sm:$0xff] %vm373_vm1, %v2385_v49  ;;  %v2468_v59 = vsel %vm373_vm1, %v2385_v49, 0.0  ;;  %v2518_v50 = vmul.f32 %v2385_v49, %v2385_v49  ;;  %v1721_v24 = vadd.f32 %v1675_v29, %v3611_v60 }
 0x2bb   : > { %v2469_v20 = vadd.f32 %v2468_v59, %v2467_v32  ;;  %v1893_v8 = vpop.f32.mrf.mxu2 }
 0x2bc   : > { %v2569_v46 = vsel %vm373_vm1, %v2518_v50, 0.0  ;;  %v1942_v0 = vadd.f32 %v1893_v8, %v1719_v22 }
 0x2bd   : > { %v2570_v38 = vadd.f32 %v2569_v46, %v2568_v3  ;;  %v2115_v61 = vpop.f32.mrf.mxu3 }
 0x2be   : > { %v2164_v30 = vadd.f32 %v2115_v61, %v1942_v0 }
 0x2bf   : > { %v2342_v40 = vpop.f32.mrf.mxu0 }
 0x2c0   : > { %v2386_v62 = vadd.f32 %v2337_v39, %v2164_v30 }
 0x2c1   : > { %v1678_v36 = vpop.f32.mrf.mxu1 }
 0x2c2   : > { %2418 = vst.msk [vmem:[%s3674_s30 + $0xa8] sm:$0xff] %vm373_vm1, %v2386_v62  ;;  %v2470_v42 = vsel %vm373_vm1, %v2386_v62, 0.0  ;;  %v2519_v47 = vmul.f32 %v2386_v62, %v2386_v62  ;;  %v1722_v39 = vadd.f32 %v1678_v36, %v3617_v51 }
 0x2c3   : > { %v2471_v43 = vadd.f32 %v2470_v42, %v2469_v20  ;;  %v1896_v28 = vpop.f32.mrf.mxu2 }
 0x2c4   : > { %v2571_v26 = vsel %vm373_vm1, %v2519_v47, 0.0  ;;  %v1943_v35 = vadd.f32 %v1896_v28, %v1720_v48 }
 0x2c5   : > { %v2572_v37 = vadd.f32 %v2571_v26, %v2570_v38  ;;  %v2118_v17 = vpop.f32.mrf.mxu3 }
 0x2c6   : > { %v2165_v16 = vadd.f32 %v2118_v17, %v1943_v35 }
 0x2c7   : > { %v2345_v13 = vpop.f32.mrf.mxu0 }
 0x2c8   : > { %v2387_v7 = vadd.f32 %v2340_v23, %v2165_v16 }
 0x2c9   : > { %v1680_v19 = vpop.f32.mrf.mxu1 }
 0x2ca   : > { %2419 = vst.msk [vmem:[%s3674_s30 + $0xb0] sm:$0xff] %vm373_vm1, %v2387_v7  ;;  %v2472_v1 = vsel %vm373_vm1, %v2387_v7, 0.0  ;;  %v2520_v45 = vmul.f32 %v2387_v7, %v2387_v7  ;;  %v1723_v9 = vadd.f32 %v1680_v19, %v3624_v14 }
 0x2cb   : > { %v2473_v5 = vadd.f32 %v2472_v1, %v2471_v43  ;;  %v1898_v4 = vpop.f32.mrf.mxu2 }
 0x2cc   : > { %v2573_v2 = vsel %vm373_vm1, %v2520_v45, 0.0  ;;  %v1944_v52 = vadd.f32 %v1898_v4, %v1721_v24 }
 0x2cd   : > { %v2574_v63 = vadd.f32 %v2573_v2, %v2572_v37  ;;  %v2120_v56 = vpop.f32.mrf.mxu3 }
 0x2ce   : > { %v2166_v18 = vadd.f32 %v2120_v56, %v1944_v52 }
 0x2cf   : > { %v2347_v10 = vpop.f32.mrf.mxu0 }
 0x2d0   : > { %v2388_v41 = vadd.f32 %v2342_v40, %v2166_v18 }
 0x2d1   : > { %v1683_v58 = vpop.f32.mrf.mxu1 }
 0x2d2   : > { %2420 = vst.msk [vmem:[%s3674_s30 + $0xb8] sm:$0xff] %vm373_vm1, %v2388_v41  ;;  %v2474_v15 = vsel %vm373_vm1, %v2388_v41, 0.0  ;;  %v2521_v31 = vmul.f32 %v2388_v41, %v2388_v41  ;;  %v1724_v61 = vadd.f32 %v1683_v58, %v3630_v27 }
 0x2d3   : > { %v2475_v12 = vadd.f32 %v2474_v15, %v2473_v5  ;;  %v1901_v60 = vpop.f32.mrf.mxu2 }
 0x2d4   : > { %v2575_v6 = vsel %vm373_vm1, %v2521_v31, 0.0  ;;  %v1945_v33 = vadd.f32 %v1901_v60, %v1722_v39 }
 0x2d5   : > { %v2576_v21 = vadd.f32 %v2575_v6, %v2574_v63  ;;  %v2123_v32 = vpop.f32.mrf.mxu3 }
 0x2d6   : > { %v2167_v54 = vadd.f32 %v2123_v32, %v1945_v33 }
 0x2d7   : > { %v2350_v22 = vpop.f32.mrf.mxu0 }
 0x2d8   : > { %v2389_v25 = vadd.f32 %v2345_v13, %v2167_v54 }
 0x2d9   : > { %v1685_v8 = vpop.f32.mrf.mxu1 }
 0x2da   : > { %2421 = vst.msk [vmem:[%s3674_s30 + $0xc0] sm:$0xff] %vm373_vm1, %v2389_v25  ;;  %v2476_v3 = vsel %vm373_vm1, %v2389_v25, 0.0  ;;  %v2522_v57 = vmul.f32 %v2389_v25, %v2389_v25  ;;  %v1725_v37 = vadd.f32 %v1685_v8, %v3637_v11 }
 0x2db   : > { %v2477_v51 = vadd.f32 %v2476_v3, %v2475_v12  ;;  %v1903_v23 = vpop.f32.mrf.mxu2 }
 0x2dc   : > { %v2577_v49 = vsel %vm373_vm1, %v2522_v57, 0.0  ;;  %v1946_v29 = vadd.f32 %v1903_v23, %v1723_v9 }
 0x2dd   : > { %v2578_v59 = vadd.f32 %v2577_v49, %v2576_v21  ;;  %v2125_v50 = vpop.f32.mrf.mxu3 }
 0x2de   : > { %v2168_v20 = vadd.f32 %v2125_v50, %v1946_v29 }
 0x2df   : > { %v2352_v48 = vpop.f32.mrf.mxu0 }
 0x2e0   : > { %v2390_v46 = vadd.f32 %v2347_v10, %v2168_v20 }
 0x2e1   : > { %v1688_v28 = vpop.f32.mrf.mxu1 }
 0x2e2   : > { %2422 = vst.msk [vmem:[%s3674_s30 + $0xc8] sm:$0xff] %vm373_vm1, %v2390_v46  ;;  %v2478_v0 = vsel %vm373_vm1, %v2390_v46, 0.0  ;;  %v2523_v38 = vmul.f32 %v2390_v46, %v2390_v46  ;;  %v1726_v2 = vadd.f32 %v1688_v28, %v3643_v53 }
 0x2e3   : > { %v2479_v14 = vadd.f32 %v2478_v0, %v2477_v51  ;;  %v1906_v30 = vpop.f32.mrf.mxu2 }
 0x2e4   : > { %v2579_v40 = vsel %vm373_vm1, %v2523_v38, 0.0  ;;  %v1947_v62 = vadd.f32 %v1906_v30, %v1724_v61 }
 0x2e5   : > { %v2580_v36 = vadd.f32 %v2579_v40, %v2578_v59  ;;  %v2128_v42 = vpop.f32.mrf.mxu3 }
 0x2e6   : > { %v2169_v47 = vadd.f32 %v2128_v42, %v1947_v62 }
 0x2e7   : > { %v2355_v5 = vpop.f32.mrf.mxu0 }
 0x2e8   : > { %v2391_v43 = vadd.f32 %v2350_v22, %v2169_v47 }
 0x2e9   : > { %v1690_v63 = vpop.f32.mrf.mxu1 }
 0x2ea   : > { %2423 = vst.msk [vmem:[%s3674_s30 + $0xd0] sm:$0xff] %vm373_vm1, %v2391_v43  ;;  %v2480_v26 = vsel %vm373_vm1, %v2391_v43, 0.0  ;;  %v2524_v35 = vmul.f32 %v2391_v43, %v2391_v43  ;;  %v1727_v10 = vadd.f32 %v1690_v63, %v3650_v55 }
 0x2eb   : > { %v2481_v27 = vadd.f32 %v2480_v26, %v2479_v14  ;;  %v1908_v17 = vpop.f32.mrf.mxu2 }
 0x2ec   : > { %v2581_v16 = vsel %vm373_vm1, %v2524_v35, 0.0  ;;  %v1948_v7 = vadd.f32 %v1908_v17, %v1725_v37 }
 0x2ed   : > { %v2582_v13 = vadd.f32 %v2581_v16, %v2580_v36  ;;  %v2130_v1 = vpop.f32.mrf.mxu3 }
 0x2ee   : > { %v2170_v45 = vadd.f32 %v2130_v1, %v1948_v7 }
 0x2ef   : > { %v2357_v53 = vpop.f32.mrf.mxu0 }
 0x2f0   : > { %v2392_v24 = vadd.f32 %v2352_v48, %v2170_v45 }
 0x2f1   : > { %v1693_v25 = vpop.f32.mrf.mxu1 }
 0x2f2   : > { %2424 = vst.msk [vmem:[%s3674_s30 + $0xd8] sm:$0xff] %vm373_vm1, %v2392_v24  ;;  %v2482_v4 = vsel %vm373_vm1, %v2392_v24, 0.0  ;;  %v2525_v19 = vmul.f32 %v2392_v24, %v2392_v24  ;;  %v1728_v23 = vadd.f32 %v1693_v25, %v3656_v44 }
 0x2f3   : > { %v2483_v52 = vadd.f32 %v2482_v4, %v2481_v27  ;;  %v1911_v11 = vpop.f32.mrf.mxu2 }
 0x2f4   : > { %v2583_v56 = vsel %vm373_vm1, %v2525_v19, 0.0  ;;  %v1949_v18 = vadd.f32 %v1911_v11, %v1726_v2 }
 0x2f5   : > { %v2584_v41 = vadd.f32 %v2583_v56, %v2582_v13  ;;  %v2133_v15 = vpop.f32.mrf.mxu3 }
 0x2f6   : > { %v2171_v31 = vadd.f32 %v2133_v15, %v1949_v18 }
 0x2f7   : > { %v2360_v22 = vpop.f32.mrf.mxu0 }
 0x2f8   : > { %v2393_v39 = vadd.f32 %v2355_v5, %v2171_v31 }
 0x2f9   : > { %v1695_v46 = vpop.f32.mrf.mxu1 }
 0x2fa   : > { %2425 = vst.msk [vmem:[%s3674_s30 + $0xe0] sm:$0xff] %vm373_vm1, %v2393_v39  ;;  %v2484_v12 = vsel %vm373_vm1, %v2393_v39, 0.0  ;;  %v2526_v60 = vmul.f32 %v2393_v39, %v2393_v39  ;;  %v1729_v14 = vadd.f32 %v1695_v46, %v3663_v34 }
 0x2fb   : > { %v2485_v6 = vadd.f32 %v2484_v12, %v2483_v52  ;;  %v1913_v33 = vpop.f32.mrf.mxu2 }
 0x2fc   : > { %v2585_v21 = vsel %vm373_vm1, %v2526_v60, 0.0  ;;  %v1950_v32 = vadd.f32 %v1913_v33, %v1727_v10 }
 0x2fd   : > { %v2586_v58 = vadd.f32 %v2585_v21, %v2584_v41  ;;  %v2135_v54 = vpop.f32.mrf.mxu3 }
 0x2fe   : > { %v2172_v3 = vadd.f32 %v2135_v54, %v1950_v32 }
 0x2ff   : > { %v2362_v48 = vpop.f32.mrf.mxu0 }
 0x300   : > { %v2394_v57 = vadd.f32 %v2357_v53, %v2172_v3 }
 0x302   : > { %2426 = vst.msk [vmem:[%s3674_s30 + $0xe8] sm:$0xff] %vm373_vm1, %v2394_v57  ;;  %v2486_v9 = vsel %vm373_vm1, %v2394_v57, 0.0  ;;  %v2527_v51 = vmul.f32 %v2394_v57, %v2394_v57 }
 0x303   : > { %v2487_v55 = vadd.f32 %v2486_v9, %v2485_v6  ;;  %v1916_v49 = vpop.f32.mrf.mxu2 }
 0x304   : > { %v2587_v29 = vsel %vm373_vm1, %v2527_v51, 0.0  ;;  %v1951_v59 = vadd.f32 %v1916_v49, %v1728_v23 }
 0x305   : > { %v2588_v50 = vadd.f32 %v2587_v29, %v2586_v58  ;;  %v2138_v20 = vpop.f32.mrf.mxu3 }
 0x306   : > { %v2173_v8 = vadd.f32 %v2138_v20, %v1951_v59 }
 0x308   : > { %v2395_v0 = vadd.f32 %v2360_v22, %v2173_v8 }
 0x30a   : > { %2427 = vst.msk [vmem:[%s3674_s30 + $0xf0] sm:$0xff] %vm373_vm1, %v2395_v0  ;;  %v2488_v38 = vsel %vm373_vm1, %v2395_v0, 0.0  ;;  %v2528_v61 = vmul.f32 %v2395_v0, %v2395_v0 }
 0x30b   : > { %v2489_v44 = vadd.f32 %v2488_v38, %v2487_v55  ;;  %v1918_v30 = vpop.f32.mrf.mxu2 }
 0x30c   : > { %v2589_v40 = vsel %vm373_vm1, %v2528_v61, 0.0  ;;  %v1952_v62 = vadd.f32 %v1918_v30, %v1729_v14 }
 0x30d   : > { %v2590_v36 = vadd.f32 %v2589_v40, %v2588_v50  ;;  %v2140_v42 = vpop.f32.mrf.mxu3 }
 0x30e   : > { %v2174_v47 = vadd.f32 %v2140_v42, %v1952_v62 }
 0x310   : > { %v2396_v43 = vadd.f32 %v2362_v48, %v2174_v47 }
 0x312   : > { %2428 = vst.msk [vmem:[%s3674_s30 + $0xf8] sm:$0xff] %vm373_vm1, %v2396_v43  ;;  %v2490_v28 = vsel %vm373_vm1, %v2396_v43, 0.0  ;;  %v2529_v26 = vmul.f32 %v2396_v43, %v2396_v43 }
 0x313   : > { %v2491_v35 = vadd.f32 %v2490_v28, %v2489_v44 }
 0x314   : > { %v2591_v37 = vsel %vm373_vm1, %v2529_v26, 0.0 }
 0x315   : > { %v2492_v34 = vrot.slane %v2491_v35, 4  ;;  %v2592_v27 = vadd.f32 %v2591_v37, %v2590_v36 }
 0x317   : > { %v2493_v17 = vadd.f32 %v2492_v34, %v2491_v35  ;;  %v2593_v16 = vrot.slane %v2592_v27, 4 }
 0x319   : > { %v2494_v7 = vrot.slane %v2493_v17, 2  ;;  %v2594_v13 = vadd.f32 %v2593_v16, %v2592_v27 }
 0x31b   : > { %v2495_v1 = vadd.f32 %v2494_v7, %v2493_v17  ;;  %v2595_v45 = vrot.slane %v2594_v13, 2 }
 0x31d   : > { %v2496_v24 = vrot.slane %v2495_v1, 1  ;;  %v2596_v5 = vadd.f32 %v2595_v45, %v2594_v13 }
 0x31f   : > { %v2597_v4 = vrot.slane %v2596_v5, 1  ;;  %v2497_v19 = vadd.f32 %v2496_v24, %v2495_v1 }
 0x321   : > { %v2598_v2 = vadd.f32 %v2597_v4, %v2596_v5 }
 0x323   : > { %v2600_v52 = vsel %vm2599_vm3, %v2497_v19, %v2598_v2 }
 0x324   : > { %2601 = vst.msk [vmem:[%s235_s8] sm:$0x3] %vm376_vm2, %v2600_v52 }
 0x325 PF: > { %s16_s18 = sadd.s32 1, %s2876_s18  }
 0x326   : > { %p13_p4 = scmp.ge.s32.totalorder %s16_s18, 4  }
 0x328   :  { %15 = sbr.rel (!%p13_p4) target bundleno = 1 (0x1), region = 88 }

</bundles_post_ra>
